<compile_context>
chip_gen: v7x
topology: tpu7x:2x2x1
jax: 0.10.0
libtpu: 0.0.40
codegen_flags: <defaults>
</compile_context>

<pallas_src>
import jax
import jax.numpy as jnp
from jax.experimental import pallas as pl
from jax.experimental.pallas import tpu as pltpu


def ffwd_kernel(x_ref, w1_ref, b1_ref, gamma_ref, beta_ref, w2_ref, b2_ref, o_ref):
    # x: (TM, Ep) bf16   w1: (Ep, H) bf16   b1/gamma/beta: (1, H) f32
    # w2: (H, Ep) bf16   b2: (1, Ep) f32    o: (TM, Ep) out dtype
    H = w1_ref.shape[1]
    inv_h = jnp.float32(1.0 / H)

    # Linear 1 on the MXU: bf16 inputs, f32 accumulation.
    h = jnp.dot(x_ref[...], w1_ref[...], preferred_element_type=jnp.float32)
    h = h + b1_ref[...]

    # LayerNorm over hidden dim, single-pass statistics (eps = PyTorch default 1e-5).
    s = jnp.sum(h, axis=-1, keepdims=True)
    s2 = jnp.sum(h * h, axis=-1, keepdims=True)
    mu = s * inv_h
    var = jnp.maximum(s2 * inv_h - mu * mu, 0.0)
    hn = (h - mu) * jax.lax.rsqrt(var + 1e-5)          # rsqrt -> EUP slot
    hn = hn * gamma_ref[...] + beta_ref[...]

    # ReLU
    hn = jnp.maximum(hn, 0.0)

    # Linear 2 on the MXU: bf16 inputs, f32 accumulation.
    out = jnp.dot(hn.astype(w2_ref.dtype), w2_ref[...],
                  preferred_element_type=jnp.float32)
    out = out + b2_ref[...]
    o_ref[...] = out.astype(o_ref.dtype)


def _ffwd_call(M_pad, E_pad, H, row_tile, out_dtype, single_buffer_weights):
    grid = (M_pad // row_tile,)
    w_kwargs = dict(pipeline_mode=pl.Buffered(1)) if single_buffer_weights else {}

    flops = 4 * M_pad * E_pad * H                      # two matmuls
    out_bytes = M_pad * E_pad * jnp.dtype(out_dtype).itemsize
    bytes_accessed = (M_pad * E_pad * 2                # x (bf16)
                      + 2 * E_pad * H * 2              # W1 + W2 (bf16)
                      + (3 * H + E_pad) * 4            # b1/gamma/beta/b2 (f32)
                      + out_bytes)

    return pl.pallas_call(
        ffwd_kernel,
        out_shape=jax.ShapeDtypeStruct((M_pad, E_pad), out_dtype),
        grid_spec=pltpu.PrefetchScalarGridSpec(
            num_scalar_prefetch=0,
            grid=grid,
            in_specs=[
                pl.BlockSpec((row_tile, E_pad), lambda i: (i, 0)),        # x rows
                pl.BlockSpec((E_pad, H), lambda i: (0, 0), **w_kwargs),   # W1 (resident)
                pl.BlockSpec((1, H), lambda i: (0, 0), **w_kwargs),       # b1
                pl.BlockSpec((1, H), lambda i: (0, 0), **w_kwargs),       # gamma
                pl.BlockSpec((1, H), lambda i: (0, 0), **w_kwargs),       # beta
                pl.BlockSpec((H, E_pad), lambda i: (0, 0), **w_kwargs),   # W2 (resident)
                pl.BlockSpec((1, E_pad), lambda i: (0, 0), **w_kwargs),   # b2
            ],
            out_specs=pl.BlockSpec((row_tile, E_pad), lambda i: (i, 0)),  # lane-dense
        ),
        compiler_params=pltpu.CompilerParams(
            dimension_semantics=("parallel",),     # M tiles shard across TCs (v7x)
            vmem_limit_bytes=64 * 1024 * 1024,
        ),
        cost_estimate=pl.CostEstimate(
            flops=flops,
            transcendentals=M_pad,
            bytes_accessed=bytes_accessed,
        ),
    )


def feedforward(x, params, *, row_tile=256):
    """x: (B, T, E) -> (B, T, E). Fused Linear -> LayerNorm -> ReLU -> Linear."""
    w1, b1, gamma, beta, w2, b2 = params
    B, T, E = x.shape
    H = w1.shape[1]
    assert row_tile % 8 == 0

    M = B * T
    M_pad = ((M + row_tile - 1) // row_tile) * row_tile
    E_pad = ((E + 127) // 128) * 128

    # Flatten tokens; zero-pad rows to a tile multiple and the embedding dim to a
    # lane multiple of 128; cast matmul operands to bf16 (f32 accumulation in-kernel).
    x2 = x.reshape(M, E)
    x2 = jnp.pad(x2, ((0, M_pad - M), (0, E_pad - E))).astype(jnp.bfloat16)
    w1p = jnp.pad(w1, ((0, E_pad - E), (0, 0))).astype(jnp.bfloat16)
    w2p = jnp.pad(w2, ((0, 0), (0, E_pad - E))).astype(jnp.bfloat16)
    b2p = jnp.pad(b2, ((0, 0), (0, E_pad - E))).astype(jnp.float32)
    b1p = b1.astype(jnp.float32)
    gammap = gamma.astype(jnp.float32)
    betap = beta.astype(jnp.float32)

    args = (x2, w1p, b1p, gammap, betap, w2p, b2p)
    try:
        out2 = _ffwd_call(M_pad, E_pad, H, row_tile, x.dtype, True)(*args)
    except Exception:
        # This JAX build does not accept single-buffer pipeline_mode on weight
        # blocks; use default (double-buffered) pipelining instead.
        out2 = _ffwd_call(M_pad, E_pad, H, row_tile, x.dtype, False)(*args)

    return out2[:M, :E].reshape(B, T, E)


def init_params(key, n_embd):
    """Deterministic synthetic init matching the PyTorch module's shapes."""
    hidden = 4 * n_embd
    k1, k2, k3, k4 = jax.random.split(key, 4)
    lim1 = 1.0 / jnp.sqrt(n_embd)
    lim2 = 1.0 / jnp.sqrt(hidden)
    w1 = jax.random.uniform(k1, (n_embd, hidden), jnp.float32, -lim1, lim1)
    b1 = jax.random.uniform(k2, (1, hidden), jnp.float32, -lim1, lim1)
    gamma = jnp.ones((1, hidden), jnp.float32)   # LayerNorm weight init
    beta = jnp.zeros((1, hidden), jnp.float32)   # LayerNorm bias init
    w2 = jax.random.uniform(k3, (hidden, n_embd), jnp.float32, -lim2, lim2)
    b2 = jax.random.uniform(k4, (1, n_embd), jnp.float32, -lim2, lim2)
    return (w1, b1, gamma, beta, w2, b2)


def feedforward_ref(x, params):
    """Pure-JAX f32 reference (mirrors the PyTorch forward)."""
    w1, b1, gamma, beta, w2, b2 = params
    h = x @ w1 + b1
    mu = jnp.mean(h, axis=-1, keepdims=True)
    var = jnp.mean((h - mu) ** 2, axis=-1, keepdims=True)
    h = (h - mu) * jax.lax.rsqrt(var + 1e-5) * gamma + beta
    h = jnp.maximum(h, 0.0)
    return h @ w2 + b2


if __name__ == "__main__":
    key = jax.random.PRNGKey(0)

    # Test 1: toy shapes from the original module (E=32 -> padded to 128 lanes).
    n_embd = 32
    B, T = 2, 8
    kx, kp, key = jax.random.split(key, 3)
    x = jax.random.normal(kx, (B, T, n_embd), jnp.float32)
    params = init_params(kp, n_embd)

    out = feedforward(x, params)
    out = jax.block_until_ready(out)
    ref = feedforward_ref(x, params)
    assert out.shape == (B, T, n_embd)
    # bf16 MXU inputs (f32 accumulation) -> loosened tolerance vs f32 reference.
    assert jnp.allclose(out, ref, atol=5e-2, rtol=5e-2), float(jnp.max(jnp.abs(out - ref)))

    # Test 2: non-divisible token count + padded embedding, multi-tile grid.
    n_embd2 = 64
    B2, T2 = 3, 100
    kx2, kp2 = jax.random.split(key)
    x2 = jax.random.normal(kx2, (B2, T2, n_embd2), jnp.float32)
    params2 = init_params(kp2, n_embd2)

    out2 = feedforward(x2, params2)
    out2 = jax.block_until_ready(out2)
    ref2 = feedforward_ref(x2, params2)
    assert out2.shape == (B2, T2, n_embd2)
    assert jnp.allclose(out2, ref2, atol=5e-2, rtol=5e-2), float(jnp.max(jnp.abs(out2 - ref2)))

    print("KERNEL_OK")
</pallas_src>

<mosaic_0001>
module attributes {stable_mosaic.version = 11 : i64} {
  func.func @ffwd_kernel(%arg0: i32, %arg1: memref<256x128xbf16, #tpu.memory_space<vmem>>, %arg2: memref<128x128xbf16, #tpu.memory_space<vmem>>, %arg3: memref<1x128xf32, #tpu.memory_space<vmem>>, %arg4: memref<1x128xf32, #tpu.memory_space<vmem>>, %arg5: memref<1x128xf32, #tpu.memory_space<vmem>>, %arg6: memref<128x128xbf16, #tpu.memory_space<vmem>>, %arg7: memref<1x128xf32, #tpu.memory_space<vmem>>, %arg8: memref<256x128xf32, #tpu.memory_space<vmem>>) attributes {dimension_semantics = [#tpu.dimension_semantics<parallel>], iteration_bounds = array<i64: 1>, scalar_prefetch = 0 : i64, scratch_operands = 0 : i64, tpu.core_type = #tpu.core_type<tc>, window_params = [{transform_indices = @transform_0, window_bounds = array<i64: 256, 128>}, {pipeline_mode = #tpu.pipeline_mode<synchronous>, transform_indices = @transform_1, window_bounds = array<i64: 128, 128>}, {pipeline_mode = #tpu.pipeline_mode<synchronous>, transform_indices = @transform_2, window_bounds = array<i64: 1, 128>}, {pipeline_mode = #tpu.pipeline_mode<synchronous>, transform_indices = @transform_3, window_bounds = array<i64: 1, 128>}, {pipeline_mode = #tpu.pipeline_mode<synchronous>, transform_indices = @transform_4, window_bounds = array<i64: 1, 128>}, {pipeline_mode = #tpu.pipeline_mode<synchronous>, transform_indices = @transform_5, window_bounds = array<i64: 128, 128>}, {pipeline_mode = #tpu.pipeline_mode<synchronous>, transform_indices = @transform_6, window_bounds = array<i64: 1, 128>}, {transform_indices = @transform_7, window_bounds = array<i64: 256, 128>}]} {
    %c0 = arith.constant 0 : index
    %c0_0 = arith.constant 0 : index
    %0 = vector.load %arg1[%c0, %c0_0] : memref<256x128xbf16, #tpu.memory_space<vmem>>, vector<256x128xbf16>
    %c0_1 = arith.constant 0 : index
    %c0_2 = arith.constant 0 : index
    %1 = vector.load %arg2[%c0_1, %c0_2] : memref<128x128xbf16, #tpu.memory_space<vmem>>, vector<128x128xbf16>
    %cst = arith.constant dense<0.000000e+00> : vector<256x128xf32>
    %2 = tpu.matmul %0, %1, %cst {dimension_numbers = #tpu.dot_dimension_numbers<[1], [0], [0], [1], [0, 0, 1, 1], [], []>} : vector<256x128xbf16>, vector<128x128xbf16>, vector<256x128xf32> -> vector<256x128xf32>
    %c0_3 = arith.constant 0 : index
    %c0_4 = arith.constant 0 : index
    %3 = vector.load %arg3[%c0_3, %c0_4] : memref<1x128xf32, #tpu.memory_space<vmem>>, vector<1x128xf32>
    %4 = vector.broadcast %3 : vector<1x128xf32> to vector<256x128xf32>
    %5 = arith.addf %2, %4 : vector<256x128xf32>
    %cst_5 = arith.constant dense<0.000000e+00> : vector<256xf32>
    %6 = vector.multi_reduction <add>, %5, %cst_5 [1] : vector<256x128xf32> to vector<256xf32>
    %7 = vector.shape_cast %6 : vector<256xf32> to vector<256x1xf32>
    %8 = arith.mulf %5, %5 : vector<256x128xf32>
    %cst_6 = arith.constant dense<0.000000e+00> : vector<256xf32>
    %9 = vector.multi_reduction <add>, %8, %cst_6 [1] : vector<256x128xf32> to vector<256xf32>
    %10 = vector.shape_cast %9 : vector<256xf32> to vector<256x1xf32>
    %cst_7 = arith.constant 7.812500e-03 : f32
    %11 = vector.broadcast %cst_7 : f32 to vector<256x1xf32>
    %12 = arith.mulf %7, %11 : vector<256x1xf32>
    %cst_8 = arith.constant 7.812500e-03 : f32
    %13 = vector.broadcast %cst_8 : f32 to vector<256x1xf32>
    %14 = arith.mulf %10, %13 : vector<256x1xf32>
    %15 = arith.mulf %12, %12 : vector<256x1xf32>
    %16 = arith.subf %14, %15 : vector<256x1xf32>
    %cst_9 = arith.constant 0.000000e+00 : f32
    %17 = vector.broadcast %cst_9 : f32 to vector<256x1xf32>
    %18 = arith.maximumf %16, %17 : vector<256x1xf32>
    %19 = vector.broadcast %12 : vector<256x1xf32> to vector<256x128xf32>
    %20 = arith.subf %5, %19 : vector<256x128xf32>
    %cst_10 = arith.constant 9.99999974E-6 : f32
    %21 = vector.broadcast %cst_10 : f32 to vector<256x1xf32>
    %22 = arith.addf %18, %21 : vector<256x1xf32>
    %23 = math.rsqrt %22 : vector<256x1xf32>
    %24 = vector.broadcast %23 : vector<256x1xf32> to vector<256x128xf32>
    %25 = arith.mulf %20, %24 : vector<256x128xf32>
    %c0_11 = arith.constant 0 : index
    %c0_12 = arith.constant 0 : index
    %26 = vector.load %arg4[%c0_11, %c0_12] : memref<1x128xf32, #tpu.memory_space<vmem>>, vector<1x128xf32>
    %27 = vector.broadcast %26 : vector<1x128xf32> to vector<256x128xf32>
    %28 = arith.mulf %25, %27 : vector<256x128xf32>
    %c0_13 = arith.constant 0 : index
    %c0_14 = arith.constant 0 : index
    %29 = vector.load %arg5[%c0_13, %c0_14] : memref<1x128xf32, #tpu.memory_space<vmem>>, vector<1x128xf32>
    %30 = vector.broadcast %29 : vector<1x128xf32> to vector<256x128xf32>
    %31 = arith.addf %28, %30 : vector<256x128xf32>
    %cst_15 = arith.constant 0.000000e+00 : f32
    %32 = vector.broadcast %cst_15 : f32 to vector<256x128xf32>
    %33 = arith.maximumf %31, %32 : vector<256x128xf32>
    %34 = arith.truncf %33 : vector<256x128xf32> to vector<256x128xbf16>
    %c0_16 = arith.constant 0 : index
    %c0_17 = arith.constant 0 : index
    %35 = vector.load %arg6[%c0_16, %c0_17] : memref<128x128xbf16, #tpu.memory_space<vmem>>, vector<128x128xbf16>
    %cst_18 = arith.constant dense<0.000000e+00> : vector<256x128xf32>
    %36 = tpu.matmul %34, %35, %cst_18 {dimension_numbers = #tpu.dot_dimension_numbers<[1], [0], [0], [1], [0, 0, 1, 1], [], []>} : vector<256x128xbf16>, vector<128x128xbf16>, vector<256x128xf32> -> vector<256x128xf32>
    %c0_19 = arith.constant 0 : index
    %c0_20 = arith.constant 0 : index
    %37 = vector.load %arg7[%c0_19, %c0_20] : memref<1x128xf32, #tpu.memory_space<vmem>>, vector<1x128xf32>
    %38 = vector.broadcast %37 : vector<1x128xf32> to vector<256x128xf32>
    %39 = arith.addf %36, %38 : vector<256x128xf32>
    %c0_21 = arith.constant 0 : index
    %c0_22 = arith.constant 0 : index
    %40 = vector.load %arg8[%c0_21, %c0_22] : memref<256x128xf32, #tpu.memory_space<vmem>>, vector<256x128xf32>
    tpu.vector_store %arg8[%c0_21, %c0_22], %39 {strides = array<i32>} : memref<256x128xf32, #tpu.memory_space<vmem>>, vector<256x128xf32>,
    return
  }
  func.func @transform_0(%arg0: i32) -> (i32, i32) {
    %c0_i32 = arith.constant 0 : i32
    %c0_i32_0 = arith.constant 0 : i32
    return %arg0, %c0_i32 : i32, i32
  }
  func.func @transform_1(%arg0: i32) -> (i32, i32) {
    %c0_i32 = arith.constant 0 : i32
    %c0_i32_0 = arith.constant 0 : i32
    %c0_i32_1 = arith.constant 0 : i32
    return %c0_i32, %c0_i32_0 : i32, i32
  }
  func.func @transform_2(%arg0: i32) -> (i32, i32) {
    %c0_i32 = arith.constant 0 : i32
    %c0_i32_0 = arith.constant 0 : i32
    %c0_i32_1 = arith.constant 0 : i32
    return %c0_i32, %c0_i32_0 : i32, i32
  }
  func.func @transform_3(%arg0: i32) -> (i32, i32) {
    %c0_i32 = arith.constant 0 : i32
    %c0_i32_0 = arith.constant 0 : i32
    %c0_i32_1 = arith.constant 0 : i32
    return %c0_i32, %c0_i32_0 : i32, i32
  }
  func.func @transform_4(%arg0: i32) -> (i32, i32) {
    %c0_i32 = arith.constant 0 : i32
    %c0_i32_0 = arith.constant 0 : i32
    %c0_i32_1 = arith.constant 0 : i32
    return %c0_i32, %c0_i32_0 : i32, i32
  }
  func.func @transform_5(%arg0: i32) -> (i32, i32) {
    %c0_i32 = arith.constant 0 : i32
    %c0_i32_0 = arith.constant 0 : i32
    %c0_i32_1 = arith.constant 0 : i32
    return %c0_i32, %c0_i32_0 : i32, i32
  }
  func.func @transform_6(%arg0: i32) -> (i32, i32) {
    %c0_i32 = arith.constant 0 : i32
    %c0_i32_0 = arith.constant 0 : i32
    %c0_i32_1 = arith.constant 0 : i32
    return %c0_i32, %c0_i32_0 : i32, i32
  }
  func.func @transform_7(%arg0: i32) -> (i32, i32) {
    %c0_i32 = arith.constant 0 : i32
    %c0_i32_0 = arith.constant 0 : i32
    return %arg0, %c0_i32 : i32, i32
  }
}

module attributes {stable_mosaic.version = 11 : i64} {
  func.func @ffwd_kernel(%arg0: i32, %arg1: memref<256x128xbf16, #tpu.memory_space<vmem>>, %arg2: memref<128x128xbf16, #tpu.memory_space<vmem>>, %arg3: memref<1x128xf32, #tpu.memory_space<vmem>>, %arg4: memref<1x128xf32, #tpu.memory_space<vmem>>, %arg5: memref<1x128xf32, #tpu.memory_space<vmem>>, %arg6: memref<128x128xbf16, #tpu.memory_space<vmem>>, %arg7: memref<1x128xf32, #tpu.memory_space<vmem>>, %arg8: memref<256x128xf32, #tpu.memory_space<vmem>>) attributes {dimension_semantics = [#tpu.dimension_semantics<parallel>], iteration_bounds = array<i64: 1>, scalar_prefetch = 0 : i64, scratch_operands = 0 : i64, tpu.core_type = #tpu.core_type<tc>, window_params = [{transform_indices = @transform_0, window_bounds = array<i64: 256, 128>}, {pipeline_mode = #tpu.pipeline_mode<synchronous>, transform_indices = @transform_1, window_bounds = array<i64: 128, 128>}, {pipeline_mode = #tpu.pipeline_mode<synchronous>, transform_indices = @transform_2, window_bounds = array<i64: 1, 128>}, {pipeline_mode = #tpu.pipeline_mode<synchronous>, transform_indices = @transform_3, window_bounds = array<i64: 1, 128>}, {pipeline_mode = #tpu.pipeline_mode<synchronous>, transform_indices = @transform_4, window_bounds = array<i64: 1, 128>}, {pipeline_mode = #tpu.pipeline_mode<synchronous>, transform_indices = @transform_5, window_bounds = array<i64: 128, 128>}, {pipeline_mode = #tpu.pipeline_mode<synchronous>, transform_indices = @transform_6, window_bounds = array<i64: 1, 128>}, {transform_indices = @transform_7, window_bounds = array<i64: 256, 128>}]} {
    %c0 = arith.constant 0 : index
    %c0_0 = arith.constant 0 : index
    %0 = vector.load %arg1[%c0, %c0_0] : memref<256x128xbf16, #tpu.memory_space<vmem>>, vector<256x128xbf16>
    %c0_1 = arith.constant 0 : index
    %c0_2 = arith.constant 0 : index
    %1 = vector.load %arg2[%c0_1, %c0_2] : memref<128x128xbf16, #tpu.memory_space<vmem>>, vector<128x128xbf16>
    %cst = arith.constant dense<0.000000e+00> : vector<256x128xf32>
    %2 = tpu.matmul %0, %1, %cst {dimension_numbers = #tpu.dot_dimension_numbers<[1], [0], [0], [1], [0, 0, 1, 1], [], []>} : vector<256x128xbf16>, vector<128x128xbf16>, vector<256x128xf32> -> vector<256x128xf32>
    %c0_3 = arith.constant 0 : index
    %c0_4 = arith.constant 0 : index
    %3 = vector.load %arg3[%c0_3, %c0_4] : memref<1x128xf32, #tpu.memory_space<vmem>>, vector<1x128xf32>
    %4 = vector.broadcast %3 : vector<1x128xf32> to vector<256x128xf32>
    %5 = arith.addf %2, %4 : vector<256x128xf32>
    %cst_5 = arith.constant dense<0.000000e+00> : vector<256xf32>
    %6 = vector.multi_reduction <add>, %5, %cst_5 [1] : vector<256x128xf32> to vector<256xf32>
    %7 = vector.shape_cast %6 : vector<256xf32> to vector<256x1xf32>
    %8 = arith.mulf %5, %5 : vector<256x128xf32>
    %cst_6 = arith.constant dense<0.000000e+00> : vector<256xf32>
    %9 = vector.multi_reduction <add>, %8, %cst_6 [1] : vector<256x128xf32> to vector<256xf32>
    %10 = vector.shape_cast %9 : vector<256xf32> to vector<256x1xf32>
    %cst_7 = arith.constant 7.812500e-03 : f32
    %11 = vector.broadcast %cst_7 : f32 to vector<256x1xf32>
    %12 = arith.mulf %7, %11 : vector<256x1xf32>
    %cst_8 = arith.constant 7.812500e-03 : f32
    %13 = vector.broadcast %cst_8 : f32 to vector<256x1xf32>
    %14 = arith.mulf %10, %13 : vector<256x1xf32>
    %15 = arith.mulf %12, %12 : vector<256x1xf32>
    %16 = arith.subf %14, %15 : vector<256x1xf32>
    %cst_9 = arith.constant 0.000000e+00 : f32
    %17 = vector.broadcast %cst_9 : f32 to vector<256x1xf32>
    %18 = arith.maximumf %16, %17 : vector<256x1xf32>
    %19 = vector.broadcast %12 : vector<256x1xf32> to vector<256x128xf32>
    %20 = arith.subf %5, %19 : vector<256x128xf32>
    %cst_10 = arith.constant 9.99999974E-6 : f32
    %21 = vector.broadcast %cst_10 : f32 to vector<256x1xf32>
    %22 = arith.addf %18, %21 : vector<256x1xf32>
    %23 = math.rsqrt %22 : vector<256x1xf32>
    %24 = vector.broadcast %23 : vector<256x1xf32> to vector<256x128xf32>
    %25 = arith.mulf %20, %24 : vector<256x128xf32>
    %c0_11 = arith.constant 0 : index
    %c0_12 = arith.constant 0 : index
    %26 = vector.load %arg4[%c0_11, %c0_12] : memref<1x128xf32, #tpu.memory_space<vmem>>, vector<1x128xf32>
    %27 = vector.broadcast %26 : vector<1x128xf32> to vector<256x128xf32>
    %28 = arith.mulf %25, %27 : vector<256x128xf32>
    %c0_13 = arith.constant 0 : index
    %c0_14 = arith.constant 0 : index
    %29 = vector.load %arg5[%c0_13, %c0_14] : memref<1x128xf32, #tpu.memory_space<vmem>>, vector<1x128xf32>
    %30 = vector.broadcast %29 : vector<1x128xf32> to vector<256x128xf32>
    %31 = arith.addf %28, %30 : vector<256x128xf32>
    %cst_15 = arith.constant 0.000000e+00 : f32
    %32 = vector.broadcast %cst_15 : f32 to vector<256x128xf32>
    %33 = arith.maximumf %31, %32 : vector<256x128xf32>
    %34 = arith.truncf %33 : vector<256x128xf32> to vector<256x128xbf16>
    %c0_16 = arith.constant 0 : index
    %c0_17 = arith.constant 0 : index
    %35 = vector.load %arg6[%c0_16, %c0_17] : memref<128x128xbf16, #tpu.memory_space<vmem>>, vector<128x128xbf16>
    %cst_18 = arith.constant dense<0.000000e+00> : vector<256x128xf32>
    %36 = tpu.matmul %34, %35, %cst_18 {dimension_numbers = #tpu.dot_dimension_numbers<[1], [0], [0], [1], [0, 0, 1, 1], [], []>} : vector<256x128xbf16>, vector<128x128xbf16>, vector<256x128xf32> -> vector<256x128xf32>
    %c0_19 = arith.constant 0 : index
    %c0_20 = arith.constant 0 : index
    %37 = vector.load %arg7[%c0_19, %c0_20] : memref<1x128xf32, #tpu.memory_space<vmem>>, vector<1x128xf32>
    %38 = vector.broadcast %37 : vector<1x128xf32> to vector<256x128xf32>
    %39 = arith.addf %36, %38 : vector<256x128xf32>
    %c0_21 = arith.constant 0 : index
    %c0_22 = arith.constant 0 : index
    %40 = vector.load %arg8[%c0_21, %c0_22] : memref<256x128xf32, #tpu.memory_space<vmem>>, vector<256x128xf32>
    tpu.vector_store %arg8[%c0_21, %c0_22], %39 {strides = array<i32>} : memref<256x128xf32, #tpu.memory_space<vmem>>, vector<256x128xf32>,
    return
  }
  func.func @transform_0(%arg0: i32) -> (i32, i32) {
    %c0_i32 = arith.constant 0 : i32
    %c0_i32_0 = arith.constant 0 : i32
    return %arg0, %c0_i32 : i32, i32
  }
  func.func @transform_1(%arg0: i32) -> (i32, i32) {
    %c0_i32 = arith.constant 0 : i32
    %c0_i32_0 = arith.constant 0 : i32
    %c0_i32_1 = arith.constant 0 : i32
    return %c0_i32, %c0_i32_0 : i32, i32
  }
  func.func @transform_2(%arg0: i32) -> (i32, i32) {
    %c0_i32 = arith.constant 0 : i32
    %c0_i32_0 = arith.constant 0 : i32
    %c0_i32_1 = arith.constant 0 : i32
    return %c0_i32, %c0_i32_0 : i32, i32
  }
  func.func @transform_3(%arg0: i32) -> (i32, i32) {
    %c0_i32 = arith.constant 0 : i32
    %c0_i32_0 = arith.constant 0 : i32
    %c0_i32_1 = arith.constant 0 : i32
    return %c0_i32, %c0_i32_0 : i32, i32
  }
  func.func @transform_4(%arg0: i32) -> (i32, i32) {
    %c0_i32 = arith.constant 0 : i32
    %c0_i32_0 = arith.constant 0 : i32
    %c0_i32_1 = arith.constant 0 : i32
    return %c0_i32, %c0_i32_0 : i32, i32
  }
  func.func @transform_5(%arg0: i32) -> (i32, i32) {
    %c0_i32 = arith.constant 0 : i32
    %c0_i32_0 = arith.constant 0 : i32
    %c0_i32_1 = arith.constant 0 : i32
    return %c0_i32, %c0_i32_0 : i32, i32
  }
  func.func @transform_6(%arg0: i32) -> (i32, i32) {
    %c0_i32 = arith.constant 0 : i32
    %c0_i32_0 = arith.constant 0 : i32
    %c0_i32_1 = arith.constant 0 : i32
    return %c0_i32, %c0_i32_0 : i32, i32
  }
  func.func @transform_7(%arg0: i32) -> (i32, i32) {
    %c0_i32 = arith.constant 0 : i32
    %c0_i32_0 = arith.constant 0 : i32
    return %arg0, %c0_i32 : i32, i32
  }
}

</mosaic_0001>

<bundles_post_ra>
// kernel: tpu_custom_call.1
= control target key start
LH: loop header
LB: loop body
LE: loop exit
PB: predicated region body
PF: predicated region fallthrough
CT: control target
= control target key end

     0   :  { %12 = vsyncpa [#allocation3], 0  ;;  %s2466_s0 = inlined_call_operand.hbm [shape: bf16[256,128], index: 0, kind: input, shape index: {}]   ;;  %s2467_s1 = inlined_call_operand.hbm [shape: bf16[128,128], index: 1, kind: input, shape index: {}]   ;;  %s2468_s2 = inlined_call_operand.hbm [shape: f32[1,128], index: 2, kind: input, shape index: {}]   ;;  %s2469_s3 = inlined_call_operand.hbm [shape: f32[1,128], index: 3, kind: input, shape index: {}]   ;;  %s2470_s4 = inlined_call_operand.hbm [shape: f32[1,128], index: 4, kind: input, shape index: {}]   ;;  %s2471_s5 = inlined_call_operand.hbm [shape: bf16[128,128], index: 5, kind: input, shape index: {}]   ;;  %s2472_s6 = inlined_call_operand.hbm [shape: f32[1,128], index: 6, kind: input, shape index: {}]   ;;  %s2473_s7 = inlined_call_operand.hbm [shape: f32[256,128], index: 7, kind: output, shape index: {}]  }
   0x1   :  { %13 = vsyncpa [#allocation6], 0 }
   0x2   :  { %14 = vsyncpa [#allocation9], 0 }
   0x3   :  { %15 = vsyncpa [#allocation12], 0 }
   0x4   :  { %16 = vsyncpa [#allocation4], 0  ;;  %s1807_s24 = smov [#allocation5]   ;;  %s1808_s26 = smov [#allocation8]  }
   0x5   :  { %s34_s25 = sshll.u32 %s1807_s24, 4  ;;  %s57_s27 = sshll.u32 %s1808_s26, 4  ;;  %s35_s25 = int_to_ptr.vmem [resolvable:$true] %s34_s25  ;;  %s1859_s27 = int_to_ptr.vmem [resolvable:$true] %s57_s27 }
   0x6   :  { %s1621_s30 = scalar_lea.hbm %s2467_s1, 1024 }
   0x7   :  { %p1622_p0 = scmp.ne.s32.totalorder %s2467_s1, %s1621_s30  ;;  %p1625_p1 = scmp.lt.u32.totalorder %s1621_s30, %s2467_s1 }
   0x9   :  { %p1627_p2 = pnand %p1625_p1, %p1622_p0 }
   0xb   :  { %1630 = shalt.err (!%p1627_p2)
}
   0xc   :  { %s1631_s12 = scalar_lea.vmem %s35_s25, 1024  ;;  %p1636_p4 = scmp.lt.s32.totalorder %s35_s25, %s35_s25 }
   0xd   :  { %p1632_p3 = scmp.ne.s32.totalorder %s35_s25, %s1631_s12  ;;  %p1637_p5 = scmp.lt.s32.totalorder %s1631_s12, %s1631_s12 }
   0xf   :  { %p1638_p6 = por %p1637_p5, %p1636_p4 }
  0x11   :  { %p1639_p7 = pnand %p1638_p6, %p1632_p3 }
  0x13   :  { %1642 = shalt.err (!%p1639_p7)
}
  0x14   :  { %s1809_s13 = smov 64   ;;  %s1810_s14 = smov 4  }
  0x15   :  { %40 = dma.hbm_to_vmem [thread:$0]  %s2467_s1, 1024, %s35_s25, [#allocation6], %s1809_s13, %s1809_s13, %s1810_s14  }
  0x16   :  { %s1643_s19 = scalar_lea.hbm %s2469_s3, 16 }
  0x17   :  { %p1644_p8 = scmp.ne.s32.totalorder %s2469_s3, %s1643_s19  ;;  %p1647_p9 = scmp.lt.u32.totalorder %s1643_s19, %s2469_s3 }
  0x19   :  { %p1649_p10 = pnand %p1647_p9, %p1644_p8 }
  0x1b   :  { %1652 = shalt.err (!%p1649_p10)
}
  0x1c   :  { %s1653_s24 = scalar_lea.vmem %s1859_s27, 16  ;;  %s1657_s1 = scalar_lea.vmem %s1859_s27, 32 }
  0x1d   :  { %p1654_p11 = scmp.ne.s32.totalorder %s1859_s27, %s1653_s24  ;;  %p1658_p12 = scmp.lt.s32.totalorder %s1859_s27, %s1859_s27 }
  0x1e   :  { %p1659_p13 = scmp.lt.s32.totalorder %s1657_s1, %s1653_s24 }
  0x20   :  { %p1660_p0 = por %p1659_p13, %p1658_p12 }
  0x22   :  { %p1661_p1 = pnand %p1660_p0, %p1654_p11 }
  0x24   :  { %1664 = shalt.err (!%p1661_p1)
}
  0x25   :  { %60 = dma.hbm_to_vmem [thread:$0]  %s2469_s3, 16, %s1859_s27, [#allocation9]  }
  0x26   :  { %s1811_s28 = smov [#allocation11]   ;;  %s1812_s30 = smov [#allocation2]  }
  0x27   :  { %s76_s29 = sshll.u32 %s1811_s28, 4  ;;  %s22_s8 = sshll.u32 %s1812_s30, 4  ;;  %s77_s29 = int_to_ptr.vmem [resolvable:$true] %s76_s29  ;;  %s1894_s8 = int_to_ptr.vmem [resolvable:$true] %s22_s8 }
  0x28   :  { %s1665_s11 = scalar_lea.hbm %s2471_s5, 1024 }
  0x29   :  { %p1666_p2 = scmp.ne.s32.totalorder %s2471_s5, %s1665_s11  ;;  %p1669_p3 = scmp.lt.u32.totalorder %s1665_s11, %s2471_s5 }
  0x2b   :  { %p1671_p4 = pnand %p1669_p3, %p1666_p2 }
  0x2d   :  { %1674 = shalt.err (!%p1671_p4)
}
  0x2e   :  { %s1675_s3 = scalar_lea.vmem %s77_s29, 1024  ;;  %p1680_p6 = scmp.lt.s32.totalorder %s77_s29, %s77_s29 }
  0x2f   :  { %p1676_p5 = scmp.ne.s32.totalorder %s77_s29, %s1675_s3  ;;  %p1681_p7 = scmp.lt.s32.totalorder %s1675_s3, %s1675_s3 }
  0x31   :  { %p1682_p8 = por %p1681_p7, %p1680_p6 }
  0x33   :  { %p1683_p9 = pnand %p1682_p8, %p1676_p5 }
  0x35   :  { %1686 = shalt.err (!%p1683_p9)
}
  0x36   :  { %82 = dma.hbm_to_vmem [thread:$0]  %s2471_s5, 1024, %s77_s29, [#allocation12], %s1809_s13, %s1809_s13, %s1810_s14  }
  0x37   :  { %s1687_s21 = scalar_lea.hbm %s2466_s0, 2048 }
  0x38   :  { %p1688_p10 = scmp.ne.s32.totalorder %s2466_s0, %s1687_s21  ;;  %p1691_p11 = scmp.lt.u32.totalorder %s1687_s21, %s2466_s0 }
  0x3a   :  { %p1693_p12 = pnand %p1691_p11, %p1688_p10 }
  0x3c   :  { %1696 = shalt.err (!%p1693_p12)
}
  0x3d   :  { %s1697_s25 = scalar_lea.vmem %s1894_s8, 2048  ;;  %p1702_p0 = scmp.lt.s32.totalorder %s1894_s8, %s1894_s8 }
  0x3e   :  { %p1698_p13 = scmp.ne.s32.totalorder %s1894_s8, %s1697_s25  ;;  %p1703_p1 = scmp.lt.s32.totalorder %s1697_s25, %s1697_s25 }
  0x40   :  { %p1704_p2 = por %p1703_p1, %p1702_p0 }
  0x42   :  { %p1705_p3 = pnand %p1704_p2, %p1698_p13 }
  0x44   :  { %1708 = shalt.err (!%p1705_p3)
}
  0x45   :  { %28 = dma.hbm_to_vmem [thread:$0]  %s2466_s0, 2048, %s1894_s8, [#allocation3], %s1809_s13, %s1809_s13, %s1810_s14  }
  0x46   :  { %s1813_s28 = smov [#allocation7]   ;;  %s1814_s30 = smov [#allocation10]  }
  0x47   :  { %s47_s29 = sshll.u32 %s1813_s28, 4  ;;  %s67_s9 = sshll.u32 %s1814_s30, 4  ;;  %s48_s29 = int_to_ptr.vmem [resolvable:$true] %s47_s29  ;;  %s68_s9 = int_to_ptr.vmem [resolvable:$true] %s67_s9 }
  0x48   :  { %s1709_s12 = scalar_lea.hbm %s2468_s2, 16 }
  0x49   :  { %p1710_p4 = scmp.ne.s32.totalorder %s2468_s2, %s1709_s12  ;;  %p1713_p5 = scmp.lt.u32.totalorder %s1709_s12, %s2468_s2 }
  0x4b   :  { %p1715_p6 = pnand %p1713_p5, %p1710_p4 }
  0x4d   :  { %1718 = shalt.err (!%p1715_p6)
}
  0x4e   :  { %s1719_s0 = scalar_lea.vmem %s48_s29, 16  ;;  %s1723_s13 = scalar_lea.vmem %s48_s29, 32 }
  0x4f   :  { %p1720_p7 = scmp.ne.s32.totalorder %s48_s29, %s1719_s0  ;;  %p1724_p8 = scmp.lt.s32.totalorder %s48_s29, %s48_s29 }
  0x50   :  { %p1725_p9 = scmp.lt.s32.totalorder %s1723_s13, %s1719_s0 }
  0x52   :  { %p1726_p10 = por %p1725_p9, %p1724_p8 }
  0x54   :  { %p1727_p11 = pnand %p1726_p10, %p1720_p7 }
  0x56   :  { %1730 = shalt.err (!%p1727_p11)
}
  0x57   :  { %50 = dma.hbm_to_vmem [thread:$0]  %s2468_s2, 16, %s48_s29, [#allocation6]  }
  0x58   :  { %s1731_s19 = scalar_lea.hbm %s2470_s4, 16 }
  0x59   :  { %p1732_p12 = scmp.ne.s32.totalorder %s2470_s4, %s1731_s19  ;;  %p1735_p13 = scmp.lt.u32.totalorder %s1731_s19, %s2470_s4 }
  0x5b   :  { %p1737_p0 = pnand %p1735_p13, %p1732_p12 }
  0x5d   :  { %1740 = shalt.err (!%p1737_p0)
}
  0x5e   :  { %s1741_s24 = scalar_lea.vmem %s68_s9, 16  ;;  %s1745_s1 = scalar_lea.vmem %s68_s9, 32 }
  0x5f   :  { %p1742_p1 = scmp.ne.s32.totalorder %s68_s9, %s1741_s24  ;;  %p1746_p2 = scmp.lt.s32.totalorder %s68_s9, %s68_s9 }
  0x60   :  { %p1747_p3 = scmp.lt.s32.totalorder %s1745_s1, %s1741_s24 }
  0x62   :  { %p1748_p4 = por %p1747_p3, %p1746_p2 }
  0x64   :  { %p1749_p5 = pnand %p1748_p4, %p1742_p1 }
  0x66   :  { %1752 = shalt.err (!%p1749_p5)
}
  0x67   :  { %70 = dma.hbm_to_vmem [thread:$0]  %s2470_s4, 16, %s68_s9, [#allocation9]  }
  0x68   :  { %s1815_s5 = smov [#allocation13]   ;;  %s1753_s30 = scalar_lea.hbm %s2472_s6, 16 }
  0x69   :  { %s89_s26 = sshll.u32 %s1815_s5, 4  ;;  %p1754_p6 = scmp.ne.s32.totalorder %s2472_s6, %s1753_s30  ;;  %s90_s26 = int_to_ptr.vmem [resolvable:$true] %s89_s26 }
  0x6a   :  { %p1757_p7 = scmp.lt.u32.totalorder %s1753_s30, %s2472_s6 }
  0x6c   :  { %p1759_p8 = pnand %p1757_p7, %p1754_p6 }
  0x6e   :  { %1762 = shalt.err (!%p1759_p8)
}
  0x6f   :  { %s1763_s16 = scalar_lea.vmem %s90_s26, 16  ;;  %s1767_s4 = scalar_lea.vmem %s90_s26, 32 }
  0x70   :  { %p1764_p9 = scmp.ne.s32.totalorder %s90_s26, %s1763_s16  ;;  %p1768_p10 = scmp.lt.s32.totalorder %s90_s26, %s90_s26 }
  0x71   :  { %p1769_p11 = scmp.lt.s32.totalorder %s1767_s4, %s1763_s16 }
  0x73   :  { %p1770_p12 = por %p1769_p11, %p1768_p10 }
  0x75   :  { %p1771_p13 = pnand %p1770_p12, %p1764_p9 }
  0x77   :  { %1774 = shalt.err (!%p1771_p13)
}
  0x78   :  { %92 = dma.hbm_to_vmem [thread:$0]  %s2472_s6, 16, %s90_s26, [#allocation12]  }
  0x79   :  { %1797 = dma.done.wait [#allocation3], 2048  }
  0x7a   :  { %1798 = vsyncadd [#allocation3], 4294965248 }
  0x7b   :  { %1799 = dma.done.wait [#allocation6], 1040  }
  0x7c   :  { %1800 = vsyncadd [#allocation6], 4294966256 }
  0x7d   :  { %1801 = dma.done.wait [#allocation9], 32  }
  0x7e   :  { %1802 = vsyncadd [#allocation9], 4294967264 }
  0x7f   :  { %1803 = dma.done.wait [#allocation12], 1040  }
  0x80   :  { %1804 = vsyncadd [#allocation12], 4294966256  ;;  %v1525_v0 = vld [vmem:[#allocation5] sm:$0xff]   ;;  %v1526_v1 = vld [vmem:[#allocation5 + $0x8] sm:$0xff]   ;;  %s1816_s6 = smov [#allocation14]  }
  0x81   :  { %1417 = vmatprep.subr.bf16.mxu0 %v1525_v0  ;;  %v1527_v2 = vld [vmem:[#allocation5 + $0x10] sm:$0xff]   ;;  %v1528_v3 = vld [vmem:[#allocation5 + $0x18] sm:$0xff]   ;;  %v1533_v4 = vld [vmem:[#allocation2] sm:$0xff]   ;;  %s1318_s3 = sshll.u32 %s1816_s6, 4  ;;  %s1319_s3 = int_to_ptr.vmem [resolvable:$true] %s1318_s3 }
  0x82   :  { %1418 = vmatpush3.bf16.msra.mxu0 %v1525_v0  ;;  %1433 = vmatprep.mubr.bf16.mxu0 %v1533_v4  ;;  %v1529_v5 = vld [vmem:[#allocation5 + $0x20] sm:$0xff]   ;;  %v1530_v6 = vld [vmem:[#allocation5 + $0x28] sm:$0xff]   ;;  %v1531_v7 = vld [vmem:[#allocation5 + $0x30] sm:$0xff]   ;;  %s1775_s0 = scalar_lea.vmem %s1319_s3, 4096  ;;  %p1780_p1 = scmp.lt.s32.totalorder %s1319_s3, %s1319_s3 }
  0x83   :  { %1419 = vmatprep.subr.bf16.mxu0 %v1526_v1  ;;  %v1532_v8 = vld [vmem:[#allocation5 + $0x38] sm:$0xff]   ;;  %v1534_v9 = vld [vmem:[#allocation2 + $0x8] sm:$0xff]   ;;  %v1535_v10 = vld [vmem:[#allocation2 + $0x10] sm:$0xff]   ;;  %p1776_p0 = scmp.ne.s32.totalorder %s1319_s3, %s1775_s0  ;;  %p1781_p2 = scmp.lt.s32.totalorder %s1775_s0, %s1775_s0 }
  0x84   :  { %v1536_v11 = vld [vmem:[#allocation2 + $0x18] sm:$0xff]   ;;  %v1537_v12 = vld [vmem:[#allocation2 + $0x20] sm:$0xff]   ;;  %v1538_v13 = vld [vmem:[#allocation2 + $0x28] sm:$0xff]  }
  0x85   :  { %v1539_v14 = vld [vmem:[#allocation2 + $0x30] sm:$0xff]   ;;  %v1540_v15 = vld [vmem:[#allocation2 + $0x38] sm:$0xff]   ;;  %v1541_v16 = vld [vmem:[#allocation2 + $0x40] sm:$0xff]   ;;  %p1782_p3 = por %p1781_p2, %p1780_p1 }
  0x86   :  { %1420 = vmatpush3.bf16.msra.mxu0 %v1526_v1  ;;  %v1542_v17 = vld [vmem:[#allocation2 + $0x48] sm:$0xff]   ;;  %v1543_v18 = vld [vmem:[#allocation2 + $0x50] sm:$0xff]   ;;  %v1544_v19 = vld [vmem:[#allocation2 + $0x58] sm:$0xff]  }
  0x87   :  { %1421 = vmatprep.subr.bf16.mxu0 %v1527_v2  ;;  %v1545_v20 = vld [vmem:[#allocation2 + $0x60] sm:$0xff]   ;;  %v1546_v21 = vld [vmem:[#allocation2 + $0x68] sm:$0xff]   ;;  %v1547_v22 = vld [vmem:[#allocation2 + $0x70] sm:$0xff]   ;;  %p1783_p4 = pnand %p1782_p3, %p1776_p0 }
  0x88   :  { %v1548_v23 = vld [vmem:[#allocation2 + $0x78] sm:$0xff]   ;;  %v1967_v24 = vld [vmem:[#allocation7] ss:$0 sm:$0xff]  ;;  %v1549_v54 = vld [vmem:[#allocation11] sm:$0xff]  }
  0x89   :  { %1465 = vmatprep.subr.bf16.mxu1 %v1549_v54  ;;  %v1550_v58 = vld [vmem:[#allocation11 + $0x8] sm:$0xff]  }
  0x8a   :  { %1422 = vmatpush3.bf16.msra.mxu0 %v1527_v2  ;;  %1466 = vmatpush3.bf16.msra.mxu1 %v1549_v54  ;;  %v1551_v2 = vld [vmem:[#allocation11 + $0x10] sm:$0xff]  }
  0x8b   :  { %1423 = vmatprep.subr.bf16.mxu0 %v1528_v3  ;;  %1467 = vmatprep.subr.bf16.mxu1 %v1550_v58 }
  0x8e   :  { %1424 = vmatpush3.bf16.msra.mxu0 %v1528_v3  ;;  %1468 = vmatpush3.bf16.msra.mxu1 %v1550_v58 }
  0x8f   :  { %1425 = vmatprep.subr.bf16.mxu0 %v1529_v5  ;;  %1469 = vmatprep.subr.bf16.mxu1 %v1551_v2 }
  0x92   :  { %1426 = vmatpush3.bf16.msra.mxu0 %v1529_v5  ;;  %1470 = vmatpush3.bf16.msra.mxu1 %v1551_v2 }
  0x93   :  { %1427 = vmatprep.subr.bf16.mxu0 %v1530_v6 }
  0x96   :  { %1428 = vmatpush3.bf16.msra.mxu0 %v1530_v6 }
  0x97   :  { %1429 = vmatprep.subr.bf16.mxu0 %v1531_v7 }
  0x9a   :  { %1430 = vmatpush3.bf16.msra.mxu0 %v1531_v7 }
  0x9b   :  { %1431 = vmatprep.subr.bf16.mxu0 %v1532_v8 }
  0x9e   :  { %1432 = vmatpush3.bf16.msra.mxu0 %v1532_v8  ;;  %v1552_v8 = vld [vmem:[#allocation11 + $0x18] sm:$0xff]  }
  0x9f   :  { %1471 = vmatprep.subr.bf16.mxu1 %v1552_v8 }
  0xa0   :  { %1472 = vmatpush3.bf16.msra.mxu1 %v1552_v8 }
  0xa1   :  { %1434 = vmatmul.mubr.bf16.vlgmr.msra.gmra.mrb[0].mxu0 %v1534_v9 }
  0xa2   :  { %1437 = vmatprep.mubr.bf16.mxu0 %v1535_v10 }
  0xa9   :  { %1438 = vmatmul.mubr.bf16.gmra.mrb[4].mxu0 %v1536_v11 }
  0xaa   :  { %1441 = vmatprep.mubr.bf16.mxu0 %v1537_v12 }
  0xb1   :  { %1442 = vmatmul.mubr.bf16.gmra.mrb[8].mxu0 %v1538_v13 }
  0xb2   :  { %1445 = vmatprep.mubr.bf16.mxu0 %v1539_v14 }
  0xb9   :  { %1446 = vmatmul.mubr.bf16.gmra.mrb[12].mxu0 %v1540_v15 }
  0xba   :  { %1449 = vmatprep.mubr.bf16.mxu0 %v1541_v16  ;;  %v1553_v16 = vld [vmem:[#allocation11 + $0x20] sm:$0xff]  }
  0xbb   :  { %1473 = vmatprep.subr.bf16.mxu1 %v1553_v16 }
  0xbc   :  { %1474 = vmatpush3.bf16.msra.mxu1 %v1553_v16 }
  0xc1   :  { %1450 = vmatmul.mubr.bf16.gmra.mrb[16].mxu0 %v1542_v17 }
  0xc2   :  { %1453 = vmatprep.mubr.bf16.mxu0 %v1543_v18 }
  0xc9   :  { %1454 = vmatmul.mubr.bf16.gmra.mrb[20].mxu0 %v1544_v19 }
  0xca   :  { %1457 = vmatprep.mubr.bf16.mxu0 %v1545_v20 }
  0xd1   :  { %1458 = vmatmul.mubr.bf16.gmra.mrb[24].mxu0 %v1546_v21 }
  0xd2   :  { %1461 = vmatprep.mubr.bf16.mxu0 %v1547_v22  ;;  %v1554_v22 = vld [vmem:[#allocation11 + $0x28] sm:$0xff]  }
  0xd3   :  { %1475 = vmatprep.subr.bf16.mxu1 %v1554_v22 }
  0xd4   :  { %1476 = vmatpush3.bf16.msra.mxu1 %v1554_v22 }
  0xd9   :  { %1462 = vmatmul.mubr.bf16.gmra.mrb[28].mxu0 %v1548_v23 }
 0x174   :  { %v1435_v25 = vpop.f32.mrb[0].mxu0 }
 0x175   :  { %v1970_v26 = vadd.f32 %v1435_v25, %v1967_v24  ;;  %v348_v27 = vpop.f32.mrb[1].mxu0 }
 0x176   :  { %v1973_v28 = vadd.f32 %v1967_v24, %v348_v27  ;;  %v1436_v29 = vpop.f32.mrb[2].mxu0 }
 0x177   :  { %479 = vadd.xlane.f32.xlu1 %v1970_v26  ;;  %v351_v30 = vpop.f32.mrb[3].mxu0  ;;  %v1978_v31 = vadd.f32 %v1436_v29, %v1967_v24  ;;  %v541_v32 = vmul.f32 %v1970_v26, %v1970_v26 }
 0x178   :  { %475 = vadd.xlane.f32.xlu0 %v1973_v28  ;;  %v1984_v34 = vadd.f32 %v1967_v24, %v351_v30  ;;  %v539_v40 = vmul.f32 %v1973_v28, %v1973_v28 }
 0x179   :  { %v542_v35 = vmul.f32 %v1978_v31, %v1978_v31 }
 0x17a   :  { %v540_v39 = vmul.f32 %v1984_v34, %v1984_v34 }
 0x17b   :  { %481 = vadd.xlane.f32.xlu1 %v1978_v31 }
 0x17c   :  { %575 = vadd.xlane.f32.xlu0 %v541_v32  ;;  %v1439_v33 = vpop.f32.mrb[4].mxu0 }
 0x17d   :  { %v364_v36 = vpop.f32.mrb[5].mxu0  ;;  %v1997_v44 = vadd.f32 %v1439_v33, %v1967_v24 }
 0x17e   :  { %v1440_v37 = vpop.f32.mrb[6].mxu0  ;;  %v2005_v48 = vadd.f32 %v1967_v24, %v364_v36 }
 0x17f   :  { %577 = vadd.xlane.f32.xlu1 %v542_v35  ;;  %v367_v38 = vpop.f32.mrb[7].mxu0  ;;  %v1994_v41 = vadd.f32 %v1440_v37, %v1967_v24  ;;  %v545_v52 = vmul.f32 %v1997_v44, %v1997_v44  ;;  %v1555_v35 = vld [vmem:[#allocation11 + $0x30] sm:$0xff]  }
 0x180   :  { %477 = vadd.xlane.f32.xlu0 %v1984_v34  ;;  %v2002_v47 = vadd.f32 %v1967_v24, %v367_v38  ;;  %v543_v57 = vmul.f32 %v2005_v48, %v2005_v48  ;;  %1477 = vmatprep.subr.bf16.mxu1 %v1555_v35 }
 0x181   :  { %v546_v50 = vmul.f32 %v1994_v41, %v1994_v41  ;;  %1478 = vmatpush3.bf16.msra.mxu1 %v1555_v35 }
 0x182   :  { %v544_v56 = vmul.f32 %v2002_v47, %v2002_v47 }
 0x183   :  { %573 = vadd.xlane.f32.xlu1 %v540_v39 }
 0x184   :  { %571 = vadd.xlane.f32.xlu0 %v539_v40  ;;  %v1443_v42 = vpop.f32.mrb[8].mxu0 }
 0x185   :  { %v380_v43 = vpop.f32.mrb[9].mxu0  ;;  %v2030_v63 = vadd.f32 %v1443_v42, %v1967_v24  ;;  %v1556_v42 = vld [vmem:[#allocation11 + $0x38] sm:$0xff]  }
 0x186   :  { %v1444_v45 = vpop.f32.mrb[10].mxu0  ;;  %v2047_v7 = vadd.f32 %v1967_v24, %v380_v43  ;;  %1479 = vmatprep.subr.bf16.mxu1 %v1556_v42 }
 0x187   :  { %489 = vadd.xlane.f32.xlu1 %v1994_v41  ;;  %v383_v46 = vpop.f32.mrb[11].mxu0  ;;  %v2024_v59 = vadd.f32 %v1444_v45, %v1967_v24  ;;  %v549_v13 = vmul.f32 %v2030_v63, %v2030_v63  ;;  %1480 = vmatpush3.bf16.msra.mxu1 %v1556_v42 }
 0x188   :  { %487 = vadd.xlane.f32.xlu0 %v1997_v44  ;;  %v2044_v6 = vadd.f32 %v1967_v24, %v383_v46  ;;  %v547_v21 = vmul.f32 %v2047_v7, %v2047_v7 }
 0x189   :  { %v550_v10 = vmul.f32 %v2024_v59, %v2024_v59 }
 0x18a   :  { %v548_v20 = vmul.f32 %v2044_v6, %v2044_v6 }
 0x18b   :  { %485 = vadd.xlane.f32.xlu1 %v2002_v47 }
 0x18c   :  { %483 = vadd.xlane.f32.xlu0 %v2005_v48  ;;  %v2009_v49 = vpop.f32.mrb[12].mxu0 }
 0x18d   :  { %v2013_v51 = vpop.f32.mrb[13].mxu0  ;;  %v2079_v30 = vadd.f32 %v2009_v49, %v1967_v24 }
 0x18e   :  { %v1448_v53 = vpop.f32.mrb[14].mxu0  ;;  %v2098_v40 = vadd.f32 %v1967_v24, %v2013_v51 }
 0x18f   :  { %585 = vadd.xlane.f32.xlu1 %v546_v50  ;;  %v2017_v55 = vpop.f32.mrb[15].mxu0  ;;  %v2072_v23 = vadd.f32 %v1448_v53, %v1967_v24  ;;  %v553_v50 = vmul.f32 %v2079_v30, %v2079_v30 }
 0x190   :  { %583 = vadd.xlane.f32.xlu0 %v545_v52  ;;  %v2094_v39 = vadd.f32 %v1967_v24, %v2017_v55 }
 0x191   :  { %v554_v45 = vmul.f32 %v2072_v23, %v2072_v23 }
 0x193   :  { %581 = vadd.xlane.f32.xlu1 %v544_v56  ;;  %v552_v56 = vmul.f32 %v2094_v39, %v2094_v39 }
 0x194   :  { %579 = vadd.xlane.f32.xlu0 %v543_v57  ;;  %v1451_v60 = vpop.f32.mrb[16].mxu0  ;;  %v551_v57 = vmul.f32 %v2098_v40, %v2098_v40 }
 0x195   :  { %v2027_v61 = vadd.f32 %v1451_v60, %v1967_v24  ;;  %v412_v62 = vpop.f32.mrb[17].mxu0 }
 0x196   :  { %v2033_v0 = vadd.f32 %v1967_v24, %v412_v62  ;;  %v1452_v1 = vpop.f32.mrb[18].mxu0 }
 0x197   :  { %497 = vadd.xlane.f32.xlu1 %v2024_v59  ;;  %v2037_v3 = vadd.f32 %v1452_v1, %v1967_v24  ;;  %v415_v4 = vpop.f32.mrb[19].mxu0  ;;  %v557_v58 = vmul.f32 %v2027_v61, %v2027_v61 }
 0x198   :  { %495 = vadd.xlane.f32.xlu0 %v2030_v63  ;;  %v2041_v5 = vadd.f32 %v1967_v24, %v415_v4  ;;  %v555_v62 = vmul.f32 %v2033_v0, %v2033_v0 }
 0x19a   :  { %v556_v60 = vmul.f32 %v2041_v5, %v2041_v5 }
 0x19b   :  { %493 = vadd.xlane.f32.xlu1 %v2044_v6 }
 0x19c   :  { %491 = vadd.xlane.f32.xlu0 %v2047_v7  ;;  %v1455_v9 = vpop.f32.mrb[20].mxu0 }
 0x19d   :  { %v2054_v11 = vadd.f32 %v1455_v9, %v1967_v24  ;;  %v428_v12 = vpop.f32.mrb[21].mxu0 }
 0x19e   :  { %v2059_v14 = vadd.f32 %v1967_v24, %v428_v12  ;;  %v1456_v15 = vpop.f32.mrb[22].mxu0 }
 0x19f   :  { %593 = vadd.xlane.f32.xlu1 %v550_v10  ;;  %v2062_v17 = vadd.f32 %v1456_v15, %v1967_v24  ;;  %v431_v18 = vpop.f32.mrb[23].mxu0  ;;  %v561_v2 = vmul.f32 %v2054_v11, %v2054_v11 }
 0x1a0   :  { %591 = vadd.xlane.f32.xlu0 %v549_v13  ;;  %v2065_v19 = vadd.f32 %v1967_v24, %v431_v18  ;;  %v559_v8 = vmul.f32 %v2059_v14, %v2059_v14 }
 0x1a1   :  { %v562_v1 = vmul.f32 %v2062_v17, %v2062_v17 }
 0x1a2   :  { %v560_v4 = vmul.f32 %v2065_v19, %v2065_v19 }
 0x1a3   :  { %589 = vadd.xlane.f32.xlu1 %v548_v20 }
 0x1a4   :  { %587 = vadd.xlane.f32.xlu0 %v547_v21  ;;  %v1459_v25 = vpop.f32.mrb[24].mxu0 }
 0x1a5   :  { %v2075_v27 = vadd.f32 %v1459_v25, %v1967_v24  ;;  %v444_v29 = vpop.f32.mrb[25].mxu0 }
 0x1a6   :  { %v2082_v32 = vadd.f32 %v1967_v24, %v444_v29  ;;  %v1460_v33 = vpop.f32.mrb[26].mxu0 }
 0x1a7   :  { %505 = vadd.xlane.f32.xlu1 %v2072_v23  ;;  %v2086_v36 = vadd.f32 %v1460_v33, %v1967_v24  ;;  %v447_v37 = vpop.f32.mrb[27].mxu0  ;;  %v565_v10 = vmul.f32 %v2075_v27, %v2075_v27 }
 0x1a8   :  { %503 = vadd.xlane.f32.xlu0 %v2079_v30  ;;  %v2090_v38 = vadd.f32 %v1967_v24, %v447_v37  ;;  %v563_v13 = vmul.f32 %v2082_v32, %v2082_v32 }
 0x1a9   :  { %v566_v9 = vmul.f32 %v2086_v36, %v2086_v36 }
 0x1aa   :  { %v564_v12 = vmul.f32 %v2090_v38, %v2090_v38 }
 0x1ab   :  { %501 = vadd.xlane.f32.xlu1 %v2094_v39 }
 0x1ac   :  { %499 = vadd.xlane.f32.xlu0 %v2098_v40  ;;  %v1463_v43 = vpop.f32.mrb[28].mxu0 }
 0x1ad   :  { %v2105_v46 = vadd.f32 %v1463_v43, %v1967_v24  ;;  %v460_v49 = vpop.f32.mrb[29].mxu0 }
 0x1ae   :  { %v2110_v51 = vadd.f32 %v1967_v24, %v460_v49  ;;  %v1464_v52 = vpop.f32.mrb[30].mxu0 }
 0x1af   :  { %601 = vadd.xlane.f32.xlu1 %v554_v45  ;;  %v2113_v53 = vadd.f32 %v1464_v52, %v1967_v24  ;;  %v463_v54 = vpop.f32.mrb[31].mxu0  ;;  %v569_v20 = vmul.f32 %v2105_v46, %v2105_v46 }
 0x1b0   :  { %599 = vadd.xlane.f32.xlu0 %v553_v50  ;;  %v2116_v55 = vadd.f32 %v1967_v24, %v463_v54  ;;  %v558_v24 = vmul.f32 %v2037_v3, %v2037_v3  ;;  %v567_v16 = vmul.f32 %v2110_v51, %v2110_v51 }
 0x1b1   :  { %v570_v18 = vmul.f32 %v2113_v53, %v2113_v53 }
 0x1b2   :  { %v568_v15 = vmul.f32 %v2116_v55, %v2116_v55 }
 0x1b3   :  { %597 = vadd.xlane.f32.xlu1 %v552_v56 }
 0x1b4   :  { %595 = vadd.xlane.f32.xlu0 %v551_v57 }
 0x1b7   :  { %513 = vadd.xlane.f32.xlu1 %v2037_v3 }
 0x1b8   :  { %511 = vadd.xlane.f32.xlu0 %v2027_v61 }
 0x1bb   :  { %509 = vadd.xlane.f32.xlu1 %v2041_v5 }
 0x1bc   :  { %507 = vadd.xlane.f32.xlu0 %v2033_v0 }
 0x1bf   :  { %609 = vadd.xlane.f32.xlu1 %v558_v24 }
 0x1c0   :  { %607 = vadd.xlane.f32.xlu0 %v557_v58 }
 0x1c3   :  { %605 = vadd.xlane.f32.xlu1 %v556_v60 }
 0x1c4   :  { %603 = vadd.xlane.f32.xlu0 %v555_v62 }
 0x1c7   :  { %521 = vadd.xlane.f32.xlu1 %v2062_v17 }
 0x1c8   :  { %519 = vadd.xlane.f32.xlu0 %v2054_v11 }
 0x1cb   :  { %517 = vadd.xlane.f32.xlu1 %v2065_v19 }
 0x1cc   :  { %515 = vadd.xlane.f32.xlu0 %v2059_v14 }
 0x1cf   :  { %617 = vadd.xlane.f32.xlu1 %v562_v1 }
 0x1d0   :  { %615 = vadd.xlane.f32.xlu0 %v561_v2 }
 0x1d3   :  { %613 = vadd.xlane.f32.xlu1 %v560_v4 }
 0x1d4   :  { %611 = vadd.xlane.f32.xlu0 %v559_v8 }
 0x1d7   :  { %529 = vadd.xlane.f32.xlu1 %v2086_v36 }
 0x1d8   :  { %527 = vadd.xlane.f32.xlu0 %v2075_v27 }
 0x1db   :  { %525 = vadd.xlane.f32.xlu1 %v2090_v38 }
 0x1dc   :  { %523 = vadd.xlane.f32.xlu0 %v2082_v32 }
 0x1df   :  { %625 = vadd.xlane.f32.xlu1 %v566_v9 }
 0x1e0   :  { %623 = vadd.xlane.f32.xlu0 %v565_v10 }
 0x1e3   :  { %621 = vadd.xlane.f32.xlu1 %v564_v12 }
 0x1e4   :  { %619 = vadd.xlane.f32.xlu0 %v563_v13 }
 0x1e7   :  { %537 = vadd.xlane.f32.xlu1 %v2113_v53 }
 0x1e8   :  { %535 = vadd.xlane.f32.xlu0 %v2105_v46 }
 0x1eb   :  { %533 = vadd.xlane.f32.xlu1 %v2116_v55 }
 0x1ec   :  { %531 = vadd.xlane.f32.xlu0 %v2110_v51 }
 0x1ef   :  { %629 = vadd.xlane.f32.xlu1 %v568_v15 }
 0x1f0   :  { %627 = vadd.xlane.f32.xlu0 %v567_v16 }
 0x1f3   :  { %633 = vadd.xlane.f32.xlu1 %v570_v18 }
 0x1f4   :  { %631 = vadd.xlane.f32.xlu0 %v569_v20 }
 0x204   :  { %v480_v21 = vpop.xlane.xlu1 %479 }
 0x205   :  { %v476_v22 = vpop.xlane.xlu0 %475  ;;  %v637_v25 = vmul.f32 0.0078125, %v480_v21 }
 0x206   :  { %v2170_v54 = vmul.f32 0.0078125, %v476_v22 }
 0x207   :  { %v701_v37 = vmul.f32 %v637_v25, %v637_v25 }
 0x208   :  { %v482_v29 = vpop.xlane.xlu1 %481  ;;  %v699_v8 = vmul.f32 %v2170_v54, %v2170_v54 }
 0x209   :  { %v638_v33 = vmul.f32 0.0078125, %v482_v29  ;;  %v576_v35 = vpop.xlane.xlu0 %575 }
 0x20a   :  { %v669_v42 = vmul.f32 0.0078125, %v576_v35 }
 0x20b   :  { %v702_v49 = vmul.f32 %v638_v33, %v638_v33 }
 0x20c   :  { %v733_v43 = vsub.f32 %v669_v42, %v701_v37  ;;  %v578_v45 = vpop.xlane.xlu1 %577 }
 0x20d   :  { %v670_v50 = vmul.f32 0.0078125, %v578_v45  ;;  %v478_v52 = vpop.xlane.xlu0 %477 }
 0x20e   :  { %v765_v56 = vmax.f32 %v733_v43, 0.0  ;;  %v2172_v57 = vmul.f32 0.0078125, %v478_v52 }
 0x20f   :  { %v734_v24 = vsub.f32 %v670_v50, %v702_v49  ;;  %v797_v49 = vsub.f32 %v1970_v26, %v637_v25 }
 0x210   :  { %v829_v58 = vadd.f32 1e-05, %v765_v56  ;;  %v700_v60 = vmul.f32 %v2172_v57, %v2172_v57  ;;  %v574_v62 = vpop.xlane.xlu1 %573 }
 0x211   :  { %v766_v1 = vmax.f32 %v734_v24, 0.0  ;;  %v668_v2 = vmul.f32 0.0078125, %v574_v62  ;;  %v572_v4 = vpop.xlane.xlu0 %571 }
 0x212   :  { %v667_v9 = vmul.f32 0.0078125, %v572_v4  ;;  %1557 = vrsqrt.f32 %v829_v58  ;;  %v798_v58 = vsub.f32 %v1978_v31, %v638_v33 }
 0x213   :  { %v830_v10 = vadd.f32 1e-05, %v766_v1  ;;  %v732_v12 = vsub.f32 %v668_v2, %v700_v60 }
 0x214   :  { %v731_v13 = vsub.f32 %v667_v9, %v699_v8  ;;  %v490_v15 = vpop.xlane.xlu1 %489 }
 0x215   :  { %1559 = vrsqrt.f32 %v830_v10  ;;  %v764_v16 = vmax.f32 %v732_v12, 0.0  ;;  %v488_v18 = vpop.xlane.xlu0 %487  ;;  %v2178_v35 = vmul.f32 0.0078125, %v490_v15  ;;  %v796_v10 = vsub.f32 %v1984_v34, %v2172_v57  ;;  %v2196_v15 = vld [vmem:[#allocation8] ss:$0 sm:$0xff] }
 0x216   :  { %v763_v20 = vmax.f32 %v731_v13, 0.0  ;;  %v2180_v42 = vmul.f32 0.0078125, %v488_v18 }
 0x217   :  { %v828_v21 = vadd.f32 1e-05, %v764_v16  ;;  %v706_v50 = vmul.f32 %v2178_v35, %v2178_v35 }
 0x218   :  { %v827_v22 = vadd.f32 1e-05, %v763_v20  ;;  %v486_v29 = vpop.xlane.xlu1 %485  ;;  %v705_v60 = vmul.f32 %v2180_v42, %v2180_v42 }
 0x219   :  { %1561 = vrsqrt.f32 %v828_v21  ;;  %v484_v37 = vpop.xlane.xlu0 %483  ;;  %v2185_v52 = vmul.f32 0.0078125, %v486_v29  ;;  %v795_v29 = vsub.f32 %v1973_v28, %v2170_v54 }
 0x21a   :  { %1563 = vrsqrt.f32 %v827_v22  ;;  %v2190_v62 = vmul.f32 0.0078125, %v484_v37 }
 0x21b   :  { %v704_v12 = vmul.f32 %v2185_v52, %v2185_v52 }
 0x21c   :  { %v586_v43 = vpop.xlane.xlu1 %585  ;;  %v1558_v45 = vpop.eup %1557  ;;  %v703_v16 = vmul.f32 %v2190_v62, %v2190_v62 }
 0x21d   :  { %v674_v56 = vmul.f32 0.0078125, %v586_v43  ;;  %v584_v24 = vpop.xlane.xlu0 %583  ;;  %v893_v26 = vmul.f32 %v1558_v45, %v797_v49 }
 0x21e   :  { %v673_v1 = vmul.f32 0.0078125, %v584_v24 }
 0x21f   :  { %v1560_v2 = vpop.eup %1559  ;;  %v738_v4 = vsub.f32 %v674_v56, %v706_v50  ;;  %v932_v56 = vmul.f32 %v2196_v15, %v893_v26 }
 0x220   :  { %v737_v8 = vsub.f32 %v673_v1, %v705_v60  ;;  %v582_v9 = vpop.xlane.xlu1 %581  ;;  %v894_v25 = vmul.f32 %v1560_v2, %v798_v58  ;;  %v2204_v1 = vld [vmem:[#allocation10] ss:$0 sm:$0xff] }
 0x221   :  { %v770_v13 = vmax.f32 %v738_v4, 0.0  ;;  %v672_v31 = vmul.f32 0.0078125, %v582_v9  ;;  %v580_v33 = vpop.xlane.xlu0 %579  ;;  %v971_v26 = vadd.f32 %v2204_v1, %v932_v56 }
 0x222   :  { %v769_v18 = vmax.f32 %v737_v8, 0.0  ;;  %v671_v20 = vmul.f32 0.0078125, %v580_v33  ;;  %v933_v21 = vmul.f32 %v2196_v15, %v894_v25 }
 0x223   :  { %v1562_v22 = vpop.eup %1561  ;;  %v834_v34 = vadd.f32 1e-05, %v770_v13  ;;  %v736_v57 = vsub.f32 %v672_v31, %v704_v12 }
 0x224   :  { %v1564_v37 = vpop.eup %1563  ;;  %v833_v43 = vadd.f32 1e-05, %v769_v18  ;;  %v735_v45 = vsub.f32 %v671_v20, %v703_v16  ;;  %v498_v49 = vpop.xlane.xlu1 %497  ;;  %v892_v50 = vmul.f32 %v1562_v22, %v796_v10  ;;  %v972_v28 = vadd.f32 %v2204_v1, %v933_v21 }
 0x225   :  { %1565 = vrsqrt.f32 %v834_v34  ;;  %v768_v24 = vmax.f32 %v736_v57, 0.0  ;;  %v496_v58 = vpop.xlane.xlu0 %495  ;;  %v891_v60 = vmul.f32 %v1564_v37, %v795_v29  ;;  %v2211_v12 = vmul.f32 0.0078125, %v498_v49 }
 0x226   :  { %1567 = vrsqrt.f32 %v833_v43  ;;  %v767_v2 = vmax.f32 %v735_v45, 0.0  ;;  %v931_v4 = vmul.f32 %v2196_v15, %v892_v50  ;;  %v2214_v33 = vmul.f32 0.0078125, %v496_v58 }
 0x227   :  { %v832_v54 = vadd.f32 1e-05, %v768_v24  ;;  %v930_v8 = vmul.f32 %v2196_v15, %v891_v60  ;;  %v1004_v18 = vmax.f32 %v972_v28, 0.0  ;;  %v802_v21 = vsub.f32 %v1994_v41, %v2178_v35 }
 0x228   :  { %v831_v9 = vadd.f32 1e-05, %v767_v2  ;;  %v494_v25 = vpop.xlane.xlu1 %493  ;;  %v970_v10 = vadd.f32 %v2204_v1, %v931_v4  ;;  %v1003_v29 = vmax.f32 %v971_v26, 0.0  ;;  %v710_v34 = vmul.f32 %v2211_v12, %v2211_v12 }
 0x229   :  { %1569 = vrsqrt.f32 %v832_v54  ;;  %v492_v13 = vpop.xlane.xlu0 %491  ;;  %v969_v31 = vadd.f32 %v2204_v1, %v930_v8  ;;  %v2220_v57 = vmul.f32 0.0078125, %v494_v25  ;;  %v709_v49 = vmul.f32 %v2214_v33, %v2214_v33 }
 0x22a   :  { %1571 = vrsqrt.f32 %v831_v9  ;;  %v1002_v16 = vmax.f32 %v970_v10, 0.0  ;;  %v2224_v50 = vmul.f32 0.0078125, %v492_v13  ;;  %v1034_v24 = vpack.c.bf16 %v1004_v18, %v1003_v29 }
 0x22b   :  { %v1001_v20 = vmax.f32 %v969_v31, 0.0  ;;  %v801_v41 = vsub.f32 %v1997_v44, %v2180_v42  ;;  %v800_v2 = vsub.f32 %v2002_v47, %v2185_v52  ;;  %v708_v8 = vmul.f32 %v2220_v57, %v2220_v57 }
 0x22c   :  { %v594_v22 = vpop.xlane.xlu1 %593  ;;  %v707_v44 = vmul.f32 %v2224_v50, %v2224_v50  ;;  %v799_v47 = vsub.f32 %v2005_v48, %v2190_v62 }
 0x22d   :  { %v678_v37 = vmul.f32 0.0078125, %v594_v22  ;;  %v592_v43 = vpop.xlane.xlu0 %591  ;;  %v1033_v45 = vpack.c.bf16 %v1002_v16, %v1001_v20 }
 0x22e   :  { %v677_v56 = vmul.f32 0.0078125, %v592_v43 }
 0x22f   :  { %v1566_v58 = vpop.eup %1565  ;;  %v742_v35 = vsub.f32 %v678_v37, %v710_v34  ;;  %1481 = vmatprep.mubr.bf16.mxu1 %v1033_v45 }
 0x230   :  { %v1568_v60 = vpop.eup %1567  ;;  %v741_v4 = vsub.f32 %v677_v56, %v709_v49  ;;  %v590_v28 = vpop.xlane.xlu1 %589  ;;  %1482 = vmatmul.mubr.bf16.vlgmr.msra.gmra.mrb[0].mxu1 %v1034_v24  ;;  %v898_v54 = vmul.f32 %v1566_v58, %v802_v21 }
 0x231   :  { %v774_v9 = vmax.f32 %v742_v35, 0.0  ;;  %v676_v25 = vmul.f32 0.0078125, %v590_v28  ;;  %v588_v10 = vpop.xlane.xlu0 %587  ;;  %v897_v26 = vmul.f32 %v1568_v60, %v801_v41 }
 0x232   :  { %v773_v42 = vmax.f32 %v741_v4, 0.0  ;;  %v675_v13 = vmul.f32 0.0078125, %v588_v10  ;;  %v937_v31 = vmul.f32 %v2196_v15, %v898_v54 }
 0x233   :  { %v1570_v16 = vpop.eup %1569  ;;  %v838_v52 = vadd.f32 1e-05, %v774_v9  ;;  %v740_v18 = vsub.f32 %v676_v25, %v708_v8  ;;  %v936_v49 = vmul.f32 %v2196_v15, %v897_v26 }
 0x234   :  { %v1572_v20 = vpop.eup %1571  ;;  %v837_v21 = vadd.f32 1e-05, %v773_v42  ;;  %v739_v22 = vsub.f32 %v675_v13, %v707_v44  ;;  %v506_v29 = vpop.xlane.xlu1 %505  ;;  %v896_v34 = vmul.f32 %v1570_v16, %v800_v2  ;;  %v976_v58 = vadd.f32 %v2204_v1, %v937_v31 }
 0x235   :  { %1573 = vrsqrt.f32 %v838_v52  ;;  %v772_v37 = vmax.f32 %v740_v18, 0.0  ;;  %v504_v43 = vpop.xlane.xlu0 %503  ;;  %v895_v45 = vmul.f32 %v1572_v20, %v799_v47  ;;  %v2242_v2 = vmul.f32 0.0078125, %v506_v29 }
 0x236   :  { %1575 = vrsqrt.f32 %v837_v21  ;;  %v771_v56 = vmax.f32 %v739_v22, 0.0  ;;  %v935_v24 = vmul.f32 %v2196_v15, %v896_v34  ;;  %v975_v54 = vadd.f32 %v2204_v1, %v936_v49 }
 0x237   :  { %v836_v48 = vadd.f32 1e-05, %v772_v37  ;;  %v934_v62 = vmul.f32 %v2196_v15, %v895_v45  ;;  %v2246_v8 = vmul.f32 0.0078125, %v504_v43  ;;  %v1008_v25 = vmax.f32 %v976_v58, 0.0 }
 0x238   :  { %v835_v41 = vadd.f32 1e-05, %v771_v56  ;;  %v502_v35 = vpop.xlane.xlu1 %501  ;;  %v974_v60 = vadd.f32 %v2204_v1, %v935_v24  ;;  %v1007_v26 = vmax.f32 %v975_v54, 0.0  ;;  %v806_v44 = vsub.f32 %v2024_v59, %v2211_v12 }
 0x239   :  { %1577 = vrsqrt.f32 %v836_v48  ;;  %v500_v4 = vpop.xlane.xlu0 %499  ;;  %v973_v28 = vadd.f32 %v2204_v1, %v934_v62  ;;  %v714_v13 = vmul.f32 %v2242_v2, %v2242_v2  ;;  %v2252_v31 = vmul.f32 0.0078125, %v502_v35 }
 0x23a   :  { %1579 = vrsqrt.f32 %v835_v41  ;;  %v1006_v9 = vmax.f32 %v974_v60, 0.0  ;;  %v713_v18 = vmul.f32 %v2246_v8, %v2246_v8  ;;  %v2256_v20 = vmul.f32 0.0078125, %v500_v4 }
 0x23b   :  { %v1005_v10 = vmax.f32 %v973_v28, 0.0  ;;  %v1036_v22 = vpack.c.bf16 %v1008_v25, %v1007_v26  ;;  %v805_v59 = vsub.f32 %v2030_v63, %v2214_v33  ;;  %v804_v37 = vsub.f32 %v2044_v6, %v2220_v57 }
 0x23c   :  { %v602_v42 = vpop.xlane.xlu1 %601  ;;  %v712_v56 = vmul.f32 %v2252_v31, %v2252_v31  ;;  %v711_v63 = vmul.f32 %v2256_v20, %v2256_v20  ;;  %v803_v6 = vsub.f32 %v2047_v7, %v2224_v50 }
 0x23d   :  { %v682_v16 = vmul.f32 0.0078125, %v602_v42  ;;  %v600_v47 = vpop.xlane.xlu0 %599  ;;  %v1035_v52 = vpack.c.bf16 %v1006_v9, %v1005_v10 }
 0x23e   :  { %v681_v21 = vmul.f32 0.0078125, %v600_v47 }
 0x23f   :  { %v1574_v29 = vpop.eup %1573  ;;  %v746_v12 = vsub.f32 %v682_v16, %v714_v13  ;;  %1485 = vmatprep.mubr.bf16.mxu1 %v1035_v52 }
 0x240   :  { %v1576_v34 = vpop.eup %1575  ;;  %v745_v43 = vsub.f32 %v681_v21, %v713_v18  ;;  %v598_v45 = vpop.xlane.xlu1 %597  ;;  %1486 = vmatmul.mubr.bf16.gmra.mrb[4].mxu1 %v1036_v22  ;;  %v902_v49 = vmul.f32 %v1574_v29, %v806_v44 }
 0x241   :  { %v778_v24 = vmax.f32 %v746_v12, 0.0  ;;  %v680_v58 = vmul.f32 0.0078125, %v598_v45  ;;  %v596_v48 = vpop.xlane.xlu0 %595  ;;  %v901_v62 = vmul.f32 %v1576_v34, %v805_v59 }
 0x242   :  { %v777_v33 = vmax.f32 %v745_v43, 0.0  ;;  %v679_v41 = vmul.f32 0.0078125, %v596_v48  ;;  %v941_v35 = vmul.f32 %v2196_v15, %v902_v49 }
 0x243   :  { %v1578_v60 = vpop.eup %1577  ;;  %v842_v57 = vadd.f32 1e-05, %v778_v24  ;;  %v744_v4 = vsub.f32 %v680_v58, %v712_v56  ;;  %v940_v13 = vmul.f32 %v2196_v15, %v901_v62  ;;  %v810_v24 = vsub.f32 %v2072_v23, %v2242_v2 }
 0x244   :  { %v1580_v28 = vpop.eup %1579  ;;  %v841_v54 = vadd.f32 1e-05, %v777_v33  ;;  %v743_v9 = vsub.f32 %v679_v41, %v711_v63  ;;  %v514_v25 = vpop.xlane.xlu1 %513  ;;  %v900_v10 = vmul.f32 %v1578_v60, %v804_v37  ;;  %v980_v52 = vadd.f32 %v2204_v1, %v941_v35 }
 0x245   :  { %1581 = vrsqrt.f32 %v842_v57  ;;  %v776_v26 = vmax.f32 %v744_v4, 0.0  ;;  %v512_v44 = vpop.xlane.xlu0 %511  ;;  %v899_v42 = vmul.f32 %v1580_v28, %v803_v6  ;;  %v2274_v29 = vmul.f32 0.0078125, %v514_v25 }
 0x246   :  { %1583 = vrsqrt.f32 %v841_v54  ;;  %v775_v16 = vmax.f32 %v743_v9, 0.0  ;;  %v939_v47 = vmul.f32 %v2196_v15, %v900_v10  ;;  %v979_v34 = vadd.f32 %v2204_v1, %v940_v13 }
 0x247   :  { %v840_v7 = vadd.f32 1e-05, %v776_v26  ;;  %v938_v50 = vmul.f32 %v2196_v15, %v899_v42  ;;  %v2278_v37 = vmul.f32 0.0078125, %v512_v44  ;;  %v1012_v45 = vmax.f32 %v980_v52, 0.0 }
 0x248   :  { %v839_v18 = vadd.f32 1e-05, %v775_v16  ;;  %v510_v21 = vpop.xlane.xlu1 %509  ;;  %v978_v22 = vadd.f32 %v2204_v1, %v939_v47  ;;  %v1011_v56 = vmax.f32 %v979_v34, 0.0  ;;  %v718_v48 = vmul.f32 %v2274_v29, %v2274_v29 }
 0x249   :  { %1585 = vrsqrt.f32 %v840_v7  ;;  %v508_v59 = vpop.xlane.xlu0 %507  ;;  %v977_v12 = vadd.f32 %v2204_v1, %v938_v50  ;;  %v2284_v62 = vmul.f32 0.0078125, %v510_v21  ;;  %v717_v35 = vmul.f32 %v2278_v37, %v2278_v37 }
 0x24a   :  { %1587 = vrsqrt.f32 %v839_v18  ;;  %v1010_v43 = vmax.f32 %v978_v22, 0.0  ;;  %v2288_v60 = vmul.f32 0.0078125, %v508_v59  ;;  %v1038_v57 = vpack.c.bf16 %v1012_v45, %v1011_v56 }
 0x24b   :  { %v1009_v49 = vmax.f32 %v977_v12, 0.0  ;;  %v809_v23 = vsub.f32 %v2079_v30, %v2246_v8  ;;  %v808_v54 = vsub.f32 %v2094_v39, %v2252_v31  ;;  %v716_v26 = vmul.f32 %v2284_v62, %v2284_v62 }
 0x24c   :  { %v610_v58 = vpop.xlane.xlu1 %609  ;;  %v715_v30 = vmul.f32 %v2288_v60, %v2288_v60  ;;  %v807_v39 = vsub.f32 %v2098_v40, %v2256_v20 }
 0x24d   :  { %v686_v63 = vmul.f32 0.0078125, %v610_v58  ;;  %v608_v33 = vpop.xlane.xlu0 %607  ;;  %v1037_v41 = vpack.c.bf16 %v1010_v43, %v1009_v49 }
 0x24e   :  { %v685_v6 = vmul.f32 0.0078125, %v608_v33 }
 0x24f   :  { %v1582_v4 = vpop.eup %1581  ;;  %v750_v2 = vsub.f32 %v686_v63, %v718_v48  ;;  %1489 = vmatprep.mubr.bf16.mxu1 %v1037_v41 }
 0x250   :  { %v1584_v28 = vpop.eup %1583  ;;  %v749_v9 = vsub.f32 %v685_v6, %v717_v35  ;;  %v606_v25 = vpop.xlane.xlu1 %605  ;;  %1490 = vmatmul.mubr.bf16.gmra.mrb[8].mxu1 %v1038_v57  ;;  %v906_v10 = vmul.f32 %v1582_v4, %v810_v24 }
 0x251   :  { %v782_v44 = vmax.f32 %v750_v2, 0.0  ;;  %v684_v42 = vmul.f32 0.0078125, %v606_v25  ;;  %v604_v13 = vpop.xlane.xlu0 %603  ;;  %v905_v16 = vmul.f32 %v1584_v28, %v809_v23 }
 0x252   :  { %v781_v8 = vmax.f32 %v749_v9, 0.0  ;;  %v683_v47 = vmul.f32 0.0078125, %v604_v13  ;;  %v945_v52 = vmul.f32 %v2196_v15, %v906_v10  ;;  %v814_v9 = vsub.f32 %v2037_v3, %v2274_v29 }
 0x253   :  { %v1586_v7 = vpop.eup %1585  ;;  %v846_v31 = vadd.f32 1e-05, %v782_v44  ;;  %v748_v50 = vsub.f32 %v684_v42, %v716_v26  ;;  %v944_v49 = vmul.f32 %v2196_v15, %v905_v16  ;;  %v813_v3 = vsub.f32 %v2027_v61, %v2278_v37 }
 0x254   :  { %v1588_v18 = vpop.eup %1587  ;;  %v845_v21 = vadd.f32 1e-05, %v781_v8  ;;  %v747_v22 = vsub.f32 %v683_v47, %v715_v30  ;;  %v522_v59 = vpop.xlane.xlu1 %521  ;;  %v904_v12 = vmul.f32 %v1586_v7, %v808_v54  ;;  %v984_v58 = vadd.f32 %v2204_v1, %v945_v52 }
 0x255   :  { %1589 = vrsqrt.f32 %v846_v31  ;;  %v780_v34 = vmax.f32 %v748_v50, 0.0  ;;  %v520_v43 = vpop.xlane.xlu0 %519  ;;  %v903_v45 = vmul.f32 %v1588_v18, %v807_v39  ;;  %v2306_v41 = vmul.f32 0.0078125, %v522_v59 }
 0x256   :  { %1591 = vrsqrt.f32 %v845_v21  ;;  %v779_v56 = vmax.f32 %v747_v22, 0.0  ;;  %v943_v24 = vmul.f32 %v2196_v15, %v904_v12  ;;  %v983_v57 = vadd.f32 %v2204_v1, %v944_v49 }
 0x257   :  { %v844_v40 = vadd.f32 1e-05, %v780_v34  ;;  %v942_v20 = vmul.f32 %v2196_v15, %v903_v45  ;;  %v2310_v4 = vmul.f32 0.0078125, %v520_v43  ;;  %v1016_v2 = vmax.f32 %v984_v58, 0.0 }
 0x258   :  { %v843_v48 = vadd.f32 1e-05, %v779_v56  ;;  %v518_v63 = vpop.xlane.xlu1 %517  ;;  %v982_v33 = vadd.f32 %v2204_v1, %v943_v24  ;;  %v1015_v54 = vmax.f32 %v983_v57, 0.0  ;;  %v722_v10 = vmul.f32 %v2306_v41, %v2306_v41 }
 0x259   :  { %1593 = vrsqrt.f32 %v844_v40  ;;  %v516_v35 = vpop.xlane.xlu0 %515  ;;  %v981_v6 = vadd.f32 %v2204_v1, %v942_v20  ;;  %v2316_v26 = vmul.f32 0.0078125, %v518_v63  ;;  %v721_v16 = vmul.f32 %v2310_v4, %v2310_v4 }
 0x25a   :  { %1595 = vrsqrt.f32 %v843_v48  ;;  %v1014_v23 = vmax.f32 %v982_v33, 0.0  ;;  %v2320_v30 = vmul.f32 0.0078125, %v516_v35  ;;  %v1040_v47 = vpack.c.bf16 %v1016_v2, %v1015_v54 }
 0x25b   :  { %v1013_v28 = vmax.f32 %v981_v6, 0.0  ;;  %v812_v39 = vsub.f32 %v2041_v5, %v2284_v62  ;;  %v720_v21 = vmul.f32 %v2316_v26, %v2316_v26  ;;  %v811_v5 = vsub.f32 %v2033_v0, %v2288_v60 }
 0x25c   :  { %v618_v25 = vpop.xlane.xlu1 %617  ;;  %v719_v61 = vmul.f32 %v2320_v30, %v2320_v30 }
 0x25d   :  { %v690_v44 = vmul.f32 0.0078125, %v618_v25  ;;  %v616_v42 = vpop.xlane.xlu0 %615  ;;  %v1039_v13 = vpack.c.bf16 %v1014_v23, %v1013_v28 }
 0x25e   :  { %v689_v8 = vmul.f32 0.0078125, %v616_v42 }
 0x25f   :  { %v1590_v52 = vpop.eup %1589  ;;  %v754_v29 = vsub.f32 %v690_v44, %v722_v10  ;;  %1493 = vmatprep.mubr.bf16.mxu1 %v1039_v13 }
 0x260   :  { %v1592_v7 = vpop.eup %1591  ;;  %v753_v31 = vsub.f32 %v689_v8, %v721_v16  ;;  %v614_v50 = vpop.xlane.xlu1 %613  ;;  %1494 = vmatmul.mubr.bf16.gmra.mrb[12].mxu1 %v1040_v47  ;;  %v910_v18 = vmul.f32 %v1590_v52, %v814_v9 }
 0x261   :  { %v786_v22 = vmax.f32 %v754_v29, 0.0  ;;  %v688_v59 = vmul.f32 0.0078125, %v614_v50  ;;  %v612_v12 = vpop.xlane.xlu0 %611  ;;  %v909_v34 = vmul.f32 %v1592_v7, %v813_v3  ;;  %v818_v3 = vsub.f32 %v2062_v17, %v2306_v41 }
 0x262   :  { %v785_v37 = vmax.f32 %v753_v31, 0.0  ;;  %v687_v43 = vmul.f32 0.0078125, %v612_v12  ;;  %v949_v45 = vmul.f32 %v2196_v15, %v910_v18  ;;  %v817_v17 = vsub.f32 %v2054_v11, %v2310_v4 }
 0x263   :  { %v1594_v49 = vpop.eup %1593  ;;  %v850_v62 = vadd.f32 1e-05, %v786_v22  ;;  %v752_v56 = vsub.f32 %v688_v59, %v720_v21  ;;  %v948_v6 = vmul.f32 %v2196_v15, %v909_v34 }
 0x264   :  { %v1596_v24 = vpop.eup %1595  ;;  %v849_v58 = vadd.f32 1e-05, %v785_v37  ;;  %v751_v40 = vsub.f32 %v687_v43, %v719_v61  ;;  %v530_v20 = vpop.xlane.xlu1 %529  ;;  %v908_v48 = vmul.f32 %v1594_v49, %v812_v39  ;;  %v988_v2 = vadd.f32 %v2204_v1, %v949_v45 }
 0x265   :  { %1597 = vrsqrt.f32 %v850_v62  ;;  %v784_v63 = vmax.f32 %v752_v56, 0.0  ;;  %v528_v33 = vpop.xlane.xlu0 %527  ;;  %v907_v35 = vmul.f32 %v1596_v24, %v811_v5  ;;  %v2338_v25 = vmul.f32 0.0078125, %v530_v20 }
 0x266   :  { %1599 = vrsqrt.f32 %v849_v58  ;;  %v783_v57 = vmax.f32 %v751_v40, 0.0  ;;  %v947_v23 = vmul.f32 %v2196_v15, %v908_v48  ;;  %v987_v42 = vadd.f32 %v2204_v1, %v948_v6 }
 0x267   :  { %v848_v0 = vadd.f32 1e-05, %v784_v63  ;;  %v946_v60 = vmul.f32 %v2196_v15, %v907_v35  ;;  %v2342_v13 = vmul.f32 0.0078125, %v528_v33  ;;  %v1020_v8 = vmax.f32 %v988_v2, 0.0 }
 0x268   :  { %v847_v28 = vadd.f32 1e-05, %v783_v57  ;;  %v526_v54 = vpop.xlane.xlu1 %525  ;;  %v986_v9 = vadd.f32 %v2204_v1, %v947_v23  ;;  %v1019_v52 = vmax.f32 %v987_v42, 0.0  ;;  %v726_v7 = vmul.f32 %v2338_v25, %v2338_v25 }
 0x269   :  { %1601 = vrsqrt.f32 %v848_v0  ;;  %v524_v10 = vpop.xlane.xlu0 %523  ;;  %v985_v44 = vadd.f32 %v2204_v1, %v946_v60  ;;  %v2348_v39 = vmul.f32 0.0078125, %v526_v54  ;;  %v725_v21 = vmul.f32 %v2342_v13, %v2342_v13 }
 0x26a   :  { %1603 = vrsqrt.f32 %v847_v28  ;;  %v1018_v16 = vmax.f32 %v986_v9, 0.0  ;;  %v2352_v22 = vmul.f32 0.0078125, %v524_v10  ;;  %v1042_v12 = vpack.c.bf16 %v1020_v8, %v1019_v52 }
 0x26b   :  { %v1017_v47 = vmax.f32 %v985_v44, 0.0  ;;  %v816_v37 = vsub.f32 %v2065_v19, %v2316_v26  ;;  %v724_v5 = vmul.f32 %v2348_v39, %v2348_v39  ;;  %v815_v19 = vsub.f32 %v2059_v14, %v2320_v30 }
 0x26c   :  { %v626_v29 = vpop.xlane.xlu1 %625  ;;  %v723_v11 = vmul.f32 %v2352_v22, %v2352_v22 }
 0x26d   :  { %v694_v31 = vmul.f32 0.0078125, %v626_v29  ;;  %v624_v50 = vpop.xlane.xlu0 %623  ;;  %v1041_v18 = vpack.c.bf16 %v1018_v16, %v1017_v47 }
 0x26e   :  { %v693_v59 = vmul.f32 0.0078125, %v624_v50 }
 0x26f   :  { %v1598_v34 = vpop.eup %1597  ;;  %v758_v41 = vsub.f32 %v694_v31, %v726_v7  ;;  %1497 = vmatprep.mubr.bf16.mxu1 %v1041_v18 }
 0x270   :  { %v1600_v61 = vpop.eup %1599  ;;  %v757_v43 = vsub.f32 %v693_v59, %v725_v21  ;;  %v622_v45 = vpop.xlane.xlu1 %621  ;;  %1498 = vmatmul.mubr.bf16.gmra.mrb[16].mxu1 %v1042_v12  ;;  %v914_v49 = vmul.f32 %v1598_v34, %v818_v3  ;;  %v822_v21 = vsub.f32 %v2086_v36, %v2338_v25  ;;  %v821_v36 = vsub.f32 %v2075_v27, %v2342_v13 }
 0x271   :  { %v790_v62 = vmax.f32 %v758_v41, 0.0  ;;  %v692_v56 = vmul.f32 0.0078125, %v622_v45  ;;  %v620_v24 = vpop.xlane.xlu0 %619  ;;  %v913_v58 = vmul.f32 %v1600_v61, %v817_v17 }
 0x272   :  { %v789_v4 = vmax.f32 %v757_v43, 0.0  ;;  %v691_v40 = vmul.f32 0.0078125, %v620_v24  ;;  %v953_v20 = vmul.f32 %v2196_v15, %v914_v49 }
 0x273   :  { %v1602_v48 = vpop.eup %1601  ;;  %v854_v26 = vadd.f32 1e-05, %v790_v62  ;;  %v756_v63 = vsub.f32 %v692_v56, %v724_v5  ;;  %v952_v28 = vmul.f32 %v2196_v15, %v913_v58  ;;  %v820_v56 = vsub.f32 %v2090_v38, %v2348_v39 }
 0x274   :  { %v1604_v33 = vpop.eup %1603  ;;  %v853_v35 = vadd.f32 1e-05, %v789_v4  ;;  %v755_v6 = vsub.f32 %v691_v40, %v723_v11  ;;  %v538_v57 = vpop.xlane.xlu1 %537  ;;  %v912_v23 = vmul.f32 %v1602_v48, %v816_v37  ;;  %v992_v10 = vadd.f32 %v2204_v1, %v953_v20 }
 0x275   :  { %1605 = vrsqrt.f32 %v854_v26  ;;  %v788_v2 = vmax.f32 %v756_v63, 0.0  ;;  %v536_v0 = vpop.xlane.xlu0 %535  ;;  %v911_v60 = vmul.f32 %v1604_v33, %v815_v19  ;;  %v991_v3 = vadd.f32 %v2204_v1, %v952_v28 }
 0x276   :  { %1607 = vrsqrt.f32 %v853_v35  ;;  %v787_v54 = vmax.f32 %v755_v6, 0.0  ;;  %v951_v9 = vmul.f32 %v2196_v15, %v912_v23  ;;  %v1024_v31 = vmax.f32 %v992_v10, 0.0 }
 0x277   :  { %v852_v14 = vadd.f32 1e-05, %v788_v2  ;;  %v950_v30 = vmul.f32 %v2196_v15, %v911_v60  ;;  %v1023_v18 = vmax.f32 %v991_v3, 0.0  ;;  %v2378_v12 = vmul.f32 0.0078125, %v538_v57 }
 0x278   :  { %v851_v44 = vadd.f32 1e-05, %v787_v54  ;;  %v534_v42 = vpop.xlane.xlu1 %533  ;;  %v990_v16 = vadd.f32 %v2204_v1, %v951_v9  ;;  %v2382_v37 = vmul.f32 0.0078125, %v536_v0  ;;  %v819_v38 = vsub.f32 %v2082_v32, %v2352_v22 }
 0x279   :  { %1609 = vrsqrt.f32 %v852_v14  ;;  %v2370_v8 = vmul.f32 0.0078125, %v534_v42  ;;  %v532_v47 = vpop.xlane.xlu0 %531  ;;  %v989_v52 = vadd.f32 %v2204_v1, %v950_v30  ;;  %v1044_v49 = vpack.c.bf16 %v1024_v31, %v1023_v18 }
 0x27a   :  { %1611 = vrsqrt.f32 %v851_v44  ;;  %v2374_v29 = vmul.f32 0.0078125, %v532_v47  ;;  %v1022_v7 = vmax.f32 %v990_v16, 0.0  ;;  %v730_v4 = vmul.f32 %v2378_v12, %v2378_v12 }
 0x27b   :  { %v1021_v50 = vmax.f32 %v989_v52, 0.0  ;;  %v728_v34 = vmul.f32 %v2370_v8, %v2370_v8  ;;  %v729_v27 = vmul.f32 %v2382_v37, %v2382_v37  ;;  %v824_v31 = vsub.f32 %v2116_v55, %v2370_v8 }
 0x27c   :  { %v630_v59 = vpop.xlane.xlu1 %629  ;;  %v727_v43 = vmul.f32 %v2374_v29, %v2374_v29 }
 0x27d   :  { %v696_v17 = vmul.f32 0.0078125, %v630_v59  ;;  %v628_v41 = vpop.xlane.xlu0 %627  ;;  %v1043_v61 = vpack.c.bf16 %v1022_v7, %v1021_v50 }
 0x27e   :  { %v695_v45 = vmul.f32 0.0078125, %v628_v41  ;;  %v826_v41 = vsub.f32 %v2113_v53, %v2378_v12 }
 0x27f   :  { %v1606_v5 = vpop.eup %1605  ;;  %v760_v25 = vsub.f32 %v696_v17, %v728_v34  ;;  %1501 = vmatprep.mubr.bf16.mxu1 %v1043_v61 }
 0x280   :  { %v1608_v62 = vpop.eup %1607  ;;  %v759_v24 = vsub.f32 %v695_v45, %v727_v43  ;;  %v634_v58 = vpop.xlane.xlu1 %633  ;;  %1502 = vmatmul.mubr.bf16.gmra.mrb[20].mxu1 %v1044_v49  ;;  %v918_v11 = vmul.f32 %v1606_v5, %v822_v21  ;;  %v823_v21 = vsub.f32 %v2110_v51, %v2374_v29  ;;  %v825_v45 = vsub.f32 %v2105_v46, %v2382_v37 }
 0x281   :  { %v792_v40 = vmax.f32 %v760_v25, 0.0  ;;  %v698_v20 = vmul.f32 0.0078125, %v634_v58  ;;  %v632_v48 = vpop.xlane.xlu0 %631  ;;  %v917_v19 = vmul.f32 %v1608_v62, %v821_v36 }
 0x282   :  { %v791_v13 = vmax.f32 %v759_v24, 0.0  ;;  %v697_v26 = vmul.f32 0.0078125, %v632_v48  ;;  %v957_v63 = vmul.f32 %v2196_v15, %v918_v11  ;;  %v2420_v11 = vld [vmem:[#allocation13] ss:$0 sm:$0xff] }
 0x283   :  { %v1610_v33 = vpop.eup %1609  ;;  %v856_v39 = vadd.f32 1e-05, %v792_v40  ;;  %v762_v35 = vsub.f32 %v698_v20, %v730_v4  ;;  %v956_v6 = vmul.f32 %v2196_v15, %v917_v19 }
 0x284   :  { %v1612_v57 = vpop.eup %1611  ;;  %v855_v23 = vadd.f32 1e-05, %v791_v13  ;;  %v761_v2 = vsub.f32 %v697_v26, %v729_v27  ;;  %v916_v0 = vmul.f32 %v1610_v33, %v820_v56  ;;  %v996_v54 = vadd.f32 %v2204_v1, %v957_v63 }
 0x285   :  { %1613 = vrsqrt.f32 %v856_v39  ;;  %v794_v60 = vmax.f32 %v762_v35, 0.0  ;;  %v915_v28 = vmul.f32 %v1612_v57, %v819_v38  ;;  %v995_v14 = vadd.f32 %v2204_v1, %v956_v6 }
 0x286   :  { %1615 = vrsqrt.f32 %v855_v23  ;;  %v793_v9 = vmax.f32 %v761_v2, 0.0  ;;  %v955_v10 = vmul.f32 %v2196_v15, %v916_v0  ;;  %v1028_v52 = vmax.f32 %v996_v54, 0.0 }
 0x287   :  { %v858_v32 = vadd.f32 1e-05, %v794_v60  ;;  %v954_v22 = vmul.f32 %v2196_v15, %v915_v28  ;;  %v1027_v47 = vmax.f32 %v995_v14, 0.0 }
 0x288   :  { %v857_v30 = vadd.f32 1e-05, %v793_v9  ;;  %v994_v44 = vadd.f32 %v2204_v1, %v955_v10 }
 0x289   :  { %1617 = vrsqrt.f32 %v858_v32  ;;  %v993_v42 = vadd.f32 %v2204_v1, %v954_v22  ;;  %v1046_v50 = vpack.c.bf16 %v1028_v52, %v1027_v47 }
 0x28a   :  { %1619 = vrsqrt.f32 %v857_v30  ;;  %v1026_v16 = vmax.f32 %v994_v44, 0.0 }
 0x28b   :  { %v1025_v3 = vmax.f32 %v993_v42, 0.0 }
 0x28d   :  { %v1045_v7 = vpack.c.bf16 %v1026_v16, %v1025_v3 }
 0x28f   :  { %v1614_v18 = vpop.eup %1613  ;;  %1505 = vmatprep.mubr.bf16.mxu1 %v1045_v7 }
 0x290   :  { %v1616_v59 = vpop.eup %1615  ;;  %1506 = vmatmul.mubr.bf16.gmra.mrb[24].mxu1 %v1046_v50  ;;  %v920_v34 = vmul.f32 %v1614_v18, %v824_v31 }
 0x291   :  { %v919_v17 = vmul.f32 %v1616_v59, %v823_v21 }
 0x292   :  { %v959_v61 = vmul.f32 %v2196_v15, %v920_v34 }
 0x293   :  { %v1618_v43 = vpop.eup %1617  ;;  %v958_v55 = vmul.f32 %v2196_v15, %v919_v17 }
 0x294   :  { %v1620_v8 = vpop.eup %1619  ;;  %v998_v49 = vadd.f32 %v2204_v1, %v959_v61  ;;  %v922_v51 = vmul.f32 %v1618_v43, %v826_v41 }
 0x295   :  { %v997_v29 = vadd.f32 %v2204_v1, %v958_v55  ;;  %v921_v5 = vmul.f32 %v1620_v8, %v825_v45 }
 0x296   :  { %v1030_v36 = vmax.f32 %v998_v49, 0.0  ;;  %v961_v25 = vmul.f32 %v2196_v15, %v922_v51 }
 0x297   :  { %v1029_v62 = vmax.f32 %v997_v29, 0.0  ;;  %v960_v53 = vmul.f32 %v2196_v15, %v921_v5 }
 0x298   :  { %v1000_v12 = vadd.f32 %v2204_v1, %v961_v25 }
 0x299   :  { %v1047_v56 = vpack.c.bf16 %v1030_v36, %v1029_v62  ;;  %v999_v46 = vadd.f32 %v2204_v1, %v960_v53 }
 0x29a   :  { %v1032_v37 = vmax.f32 %v1000_v12, 0.0 }
 0x29b   :  { %1509 = vmatprep.mubr.bf16.mxu1 %v1047_v56  ;;  %v1031_v24 = vmax.f32 %v999_v46, 0.0 }
 0x29d   :  { %v1048_v58 = vpack.c.bf16 %v1032_v37, %v1031_v24 }
 0x29f   :  { %1510 = vmatmul.mubr.bf16.gmra.mrb[28].mxu1 %v1048_v58 }
 0x303   :  { %v1483_v4 = vpop.f32.mrb[0].mxu1 }
 0x304   :  { %v1163_v40 = vadd.f32 %v1483_v4, %v2420_v11  ;;  %v1154_v20 = vpop.f32.mrb[1].mxu1 }
 0x305   :  { %v1155_v48 = vadd.f32 %v2420_v11, %v1154_v20  ;;  %v1484_v19 = vpop.f32.mrb[2].mxu1 }
 0x306   :  { %1283 = vst [vmem:[#allocation14 + $0x10] sm:$0xff] %v1163_v40  ;;  %v1166_v15 = vadd.f32 %v1484_v19, %v2420_v11  ;;  %v1157_v27 = vpop.f32.mrb[3].mxu1 }
 0x307   :  { %1281 = vst [vmem:[#allocation14] sm:$0xff] %v1155_v48  ;;  %v1158_v1 = vadd.f32 %v2420_v11, %v1157_v27 }
 0x308   :  { %1284 = vst [vmem:[#allocation14 + $0x18] sm:$0xff] %v1166_v15 }
 0x309   :  { %1282 = vst [vmem:[#allocation14 + $0x8] sm:$0xff] %v1158_v1 }
 0x313   :  { %v1487_v13 = vpop.f32.mrb[4].mxu1 }
 0x314   :  { %v1179_v26 = vadd.f32 %v1487_v13, %v2420_v11  ;;  %v1170_v63 = vpop.f32.mrb[5].mxu1 }
 0x315   :  { %v1171_v33 = vadd.f32 %v2420_v11, %v1170_v63  ;;  %v1488_v38 = vpop.f32.mrb[6].mxu1 }
 0x316   :  { %1287 = vst [vmem:[#allocation14 + $0x30] sm:$0xff] %v1179_v26  ;;  %v1182_v39 = vadd.f32 %v1488_v38, %v2420_v11  ;;  %v1173_v35 = vpop.f32.mrb[7].mxu1 }
 0x317   :  { %1285 = vst [vmem:[#allocation14 + $0x20] sm:$0xff] %v1171_v33  ;;  %v1174_v6 = vadd.f32 %v2420_v11, %v1173_v35 }
 0x318   :  { %1288 = vst [vmem:[#allocation14 + $0x38] sm:$0xff] %v1182_v39 }
 0x319   :  { %1286 = vst [vmem:[#allocation14 + $0x28] sm:$0xff] %v1174_v6 }
 0x323   :  { %v1491_v57 = vpop.f32.mrb[8].mxu1 }
 0x324   :  { %v1195_v23 = vadd.f32 %v1491_v57, %v2420_v11  ;;  %v1186_v2 = vpop.f32.mrb[9].mxu1 }
 0x325   :  { %v1187_v0 = vadd.f32 %v2420_v11, %v1186_v2  ;;  %v1492_v60 = vpop.f32.mrb[10].mxu1 }
 0x326   :  { %1291 = vst [vmem:[#allocation14 + $0x50] sm:$0xff] %v1195_v23  ;;  %v1198_v28 = vadd.f32 %v1492_v60, %v2420_v11  ;;  %v1189_v54 = vpop.f32.mrb[11].mxu1 }
 0x327   :  { %1289 = vst [vmem:[#allocation14 + $0x40] sm:$0xff] %v1187_v0  ;;  %v1190_v9 = vadd.f32 %v2420_v11, %v1189_v54 }
 0x328   :  { %1292 = vst [vmem:[#allocation14 + $0x58] sm:$0xff] %v1198_v28 }
 0x329   :  { %1290 = vst [vmem:[#allocation14 + $0x48] sm:$0xff] %v1190_v9 }
 0x333   :  { %v1495_v10 = vpop.f32.mrb[12].mxu1 }
 0x334   :  { %v1211_v14 = vadd.f32 %v1495_v10, %v2420_v11  ;;  %v1202_v32 = vpop.f32.mrb[13].mxu1 }
 0x335   :  { %v1203_v22 = vadd.f32 %v2420_v11, %v1202_v32  ;;  %v1496_v30 = vpop.f32.mrb[14].mxu1 }
 0x336   :  { %1295 = vst [vmem:[#allocation14 + $0x70] sm:$0xff] %v1211_v14  ;;  %v1214_v44 = vadd.f32 %v1496_v30, %v2420_v11  ;;  %v1205_v42 = vpop.f32.mrb[15].mxu1 }
 0x337   :  { %1293 = vst [vmem:[#allocation14 + $0x60] sm:$0xff] %v1203_v22  ;;  %v1206_v16 = vadd.f32 %v2420_v11, %v1205_v42 }
 0x338   :  { %1296 = vst [vmem:[#allocation14 + $0x78] sm:$0xff] %v1214_v44 }
 0x339   :  { %1294 = vst [vmem:[#allocation14 + $0x68] sm:$0xff] %v1206_v16 }
 0x343   :  { %v1499_v47 = vpop.f32.mrb[16].mxu1 }
 0x344   :  { %v1227_v52 = vadd.f32 %v1499_v47, %v2420_v11  ;;  %v1218_v3 = vpop.f32.mrb[17].mxu1 }
 0x345   :  { %v1219_v7 = vadd.f32 %v2420_v11, %v1218_v3  ;;  %v1500_v31 = vpop.f32.mrb[18].mxu1 }
 0x346   :  { %1299 = vst [vmem:[#allocation14 + $0x90] sm:$0xff] %v1227_v52  ;;  %v1230_v50 = vadd.f32 %v1500_v31, %v2420_v11  ;;  %v1221_v18 = vpop.f32.mrb[19].mxu1 }
 0x347   :  { %1297 = vst [vmem:[#allocation14 + $0x80] sm:$0xff] %v1219_v7  ;;  %v1222_v21 = vadd.f32 %v2420_v11, %v1221_v18 }
 0x348   :  { %1300 = vst [vmem:[#allocation14 + $0x98] sm:$0xff] %v1230_v50 }
 0x349   :  { %1298 = vst [vmem:[#allocation14 + $0x88] sm:$0xff] %v1222_v21 }
 0x353   :  { %v1503_v59 = vpop.f32.mrb[20].mxu1 }
 0x354   :  { %v1243_v34 = vadd.f32 %v1503_v59, %v2420_v11  ;;  %v1234_v17 = vpop.f32.mrb[21].mxu1 }
 0x355   :  { %v1235_v41 = vadd.f32 %v2420_v11, %v1234_v17  ;;  %v1504_v61 = vpop.f32.mrb[22].mxu1 }
 0x356   :  { %1303 = vst [vmem:[#allocation14 + $0xb0] sm:$0xff] %v1243_v34  ;;  %v1246_v43 = vadd.f32 %v1504_v61, %v2420_v11  ;;  %v1237_v45 = vpop.f32.mrb[23].mxu1 }
 0x357   :  { %1301 = vst [vmem:[#allocation14 + $0xa0] sm:$0xff] %v1235_v41  ;;  %v1238_v55 = vadd.f32 %v2420_v11, %v1237_v45 }
 0x358   :  { %1304 = vst [vmem:[#allocation14 + $0xb8] sm:$0xff] %v1246_v43 }
 0x359   :  { %1302 = vst [vmem:[#allocation14 + $0xa8] sm:$0xff] %v1238_v55 }
 0x363   :  { %v1507_v8 = vpop.f32.mrb[24].mxu1 }
 0x364   :  { %v1259_v49 = vadd.f32 %v1507_v8, %v2420_v11  ;;  %v1250_v51 = vpop.f32.mrb[25].mxu1 }
 0x365   :  { %v1251_v29 = vadd.f32 %v2420_v11, %v1250_v51  ;;  %v1508_v5 = vpop.f32.mrb[26].mxu1 }
 0x366   :  { %1307 = vst [vmem:[#allocation14 + $0xd0] sm:$0xff] %v1259_v49  ;;  %v1262_v36 = vadd.f32 %v1508_v5, %v2420_v11  ;;  %v1253_v25 = vpop.f32.mrb[27].mxu1 }
 0x367   :  { %1305 = vst [vmem:[#allocation14 + $0xc0] sm:$0xff] %v1251_v29  ;;  %v1254_v62 = vadd.f32 %v2420_v11, %v1253_v25 }
 0x368   :  { %1308 = vst [vmem:[#allocation14 + $0xd8] sm:$0xff] %v1262_v36 }
 0x369   :  { %1306 = vst [vmem:[#allocation14 + $0xc8] sm:$0xff] %v1254_v62 }
 0x372   :  { %v1511_v53 = vpop.f32.mrb[28].mxu1 }
 0x373   :  { %v1275_v12 = vadd.f32 %v1511_v53, %v2420_v11  ;;  %v1266_v56 = vpop.f32.mrb[29].mxu1 }
 0x374   :  { %v1267_v46 = vadd.f32 %v2420_v11, %v1266_v56  ;;  %v1512_v37 = vpop.f32.mrb[30].mxu1 }
 0x375   :  { %1311 = vst [vmem:[#allocation14 + $0xf0] sm:$0xff] %v1275_v12  ;;  %v1278_v24 = vadd.f32 %v1512_v37, %v2420_v11  ;;  %v1269_v58 = vpop.f32.mrb[31].mxu1 }
 0x376   :  { %1309 = vst [vmem:[#allocation14 + $0xe0] sm:$0xff] %v1267_v46  ;;  %v1270_v4 = vadd.f32 %v2420_v11, %v1269_v58 }
 0x377   :  { %1312 = vst [vmem:[#allocation14 + $0xf8] sm:$0xff] %v1278_v24 }
 0x378   :  { %1310 = vst [vmem:[#allocation14 + $0xe8] sm:$0xff] %v1270_v4 }
 0x379   :  { %1786 = shalt.err (!%p1783_p4)
}
 0x37a   :  { %s1787_s8 = scalar_lea.hbm %s2473_s7, 4096 }
 0x37b   :  { %p1788_p5 = scmp.ne.s32.totalorder %s2473_s7, %s1787_s8  ;;  %p1791_p6 = scmp.lt.u32.totalorder %s1787_s8, %s2473_s7 }
 0x37d   :  { %p1793_p7 = pnand %p1791_p6, %p1788_p5 }
 0x37f   :  { %1796 = shalt.err (!%p1793_p7)
}
 0x380   :  { %s1817_s21 = smov 128   ;;  %s1818_s22 = smov 8  }
 0x381   :  { %1324 = dma.vmem_to_hbm [thread:$0]  %s1319_s3, 4096, %s2473_s7, [#allocation4], %s1817_s21, %s1817_s21, %s1818_s22  }
 0x382   :  { %1805 = dma.done.wait [#allocation4], 4096  }
 0x383   :  { %1806 = vsyncadd [#allocation4], 4294963200 }
 0x384   :  { %1328 = vsyncpa [#allocation3], 1 }
 0x385   :  { %1329 = vsyncpa [#allocation6], 1 }
 0x386   :  { %1330 = vsyncpa [#allocation9], 1 }
 0x387   :  { %1331 = vsyncpa [#allocation12], 1 }
 0x388   :  { %1332 = vsyncpa [#allocation4], 1 }

// kernel: tpu_custom_call.1
= control target key start
LH: loop header
LB: loop body
LE: loop exit
PB: predicated region body
PF: predicated region fallthrough
CT: control target
= control target key end

     0   :  { %12 = vsyncpa [#allocation3], 0  ;;  %s2466_s0 = inlined_call_operand.hbm [shape: bf16[256,128], index: 0, kind: input, shape index: {}]   ;;  %s2467_s1 = inlined_call_operand.hbm [shape: bf16[128,128], index: 1, kind: input, shape index: {}]   ;;  %s2468_s2 = inlined_call_operand.hbm [shape: f32[1,128], index: 2, kind: input, shape index: {}]   ;;  %s2469_s3 = inlined_call_operand.hbm [shape: f32[1,128], index: 3, kind: input, shape index: {}]   ;;  %s2470_s4 = inlined_call_operand.hbm [shape: f32[1,128], index: 4, kind: input, shape index: {}]   ;;  %s2471_s5 = inlined_call_operand.hbm [shape: bf16[128,128], index: 5, kind: input, shape index: {}]   ;;  %s2472_s6 = inlined_call_operand.hbm [shape: f32[1,128], index: 6, kind: input, shape index: {}]   ;;  %s2473_s7 = inlined_call_operand.hbm [shape: f32[256,128], index: 7, kind: output, shape index: {}]  }
   0x1   :  { %13 = vsyncpa [#allocation6], 0 }
   0x2   :  { %14 = vsyncpa [#allocation9], 0 }
   0x3   :  { %15 = vsyncpa [#allocation12], 0 }
   0x4   :  { %16 = vsyncpa [#allocation4], 0  ;;  %s1807_s24 = smov [#allocation5]   ;;  %s1808_s26 = smov [#allocation8]  }
   0x5   :  { %s34_s25 = sshll.u32 %s1807_s24, 4  ;;  %s57_s27 = sshll.u32 %s1808_s26, 4  ;;  %s35_s25 = int_to_ptr.vmem [resolvable:$true] %s34_s25  ;;  %s1859_s27 = int_to_ptr.vmem [resolvable:$true] %s57_s27 }
   0x6   :  { %s1621_s30 = scalar_lea.hbm %s2467_s1, 1024 }
   0x7   :  { %p1622_p0 = scmp.ne.s32.totalorder %s2467_s1, %s1621_s30  ;;  %p1625_p1 = scmp.lt.u32.totalorder %s1621_s30, %s2467_s1 }
   0x9   :  { %p1627_p2 = pnand %p1625_p1, %p1622_p0 }
   0xb   :  { %1630 = shalt.err (!%p1627_p2)
}
   0xc   :  { %s1631_s12 = scalar_lea.vmem %s35_s25, 1024  ;;  %p1636_p4 = scmp.lt.s32.totalorder %s35_s25, %s35_s25 }
   0xd   :  { %p1632_p3 = scmp.ne.s32.totalorder %s35_s25, %s1631_s12  ;;  %p1637_p5 = scmp.lt.s32.totalorder %s1631_s12, %s1631_s12 }
   0xf   :  { %p1638_p6 = por %p1637_p5, %p1636_p4 }
  0x11   :  { %p1639_p7 = pnand %p1638_p6, %p1632_p3 }
  0x13   :  { %1642 = shalt.err (!%p1639_p7)
}
  0x14   :  { %s1809_s13 = smov 64   ;;  %s1810_s14 = smov 4  }
  0x15   :  { %40 = dma.hbm_to_vmem [thread:$0]  %s2467_s1, 1024, %s35_s25, [#allocation6], %s1809_s13, %s1809_s13, %s1810_s14  }
  0x16   :  { %s1643_s19 = scalar_lea.hbm %s2469_s3, 16 }
  0x17   :  { %p1644_p8 = scmp.ne.s32.totalorder %s2469_s3, %s1643_s19  ;;  %p1647_p9 = scmp.lt.u32.totalorder %s1643_s19, %s2469_s3 }
  0x19   :  { %p1649_p10 = pnand %p1647_p9, %p1644_p8 }
  0x1b   :  { %1652 = shalt.err (!%p1649_p10)
}
  0x1c   :  { %s1653_s24 = scalar_lea.vmem %s1859_s27, 16  ;;  %s1657_s1 = scalar_lea.vmem %s1859_s27, 32 }
  0x1d   :  { %p1654_p11 = scmp.ne.s32.totalorder %s1859_s27, %s1653_s24  ;;  %p1658_p12 = scmp.lt.s32.totalorder %s1859_s27, %s1859_s27 }
  0x1e   :  { %p1659_p13 = scmp.lt.s32.totalorder %s1657_s1, %s1653_s24 }
  0x20   :  { %p1660_p0 = por %p1659_p13, %p1658_p12 }
  0x22   :  { %p1661_p1 = pnand %p1660_p0, %p1654_p11 }
  0x24   :  { %1664 = shalt.err (!%p1661_p1)
}
  0x25   :  { %60 = dma.hbm_to_vmem [thread:$0]  %s2469_s3, 16, %s1859_s27, [#allocation9]  }
  0x26   :  { %s1811_s28 = smov [#allocation11]   ;;  %s1812_s30 = smov [#allocation2]  }
  0x27   :  { %s76_s29 = sshll.u32 %s1811_s28, 4  ;;  %s22_s8 = sshll.u32 %s1812_s30, 4  ;;  %s77_s29 = int_to_ptr.vmem [resolvable:$true] %s76_s29  ;;  %s1894_s8 = int_to_ptr.vmem [resolvable:$true] %s22_s8 }
  0x28   :  { %s1665_s11 = scalar_lea.hbm %s2471_s5, 1024 }
  0x29   :  { %p1666_p2 = scmp.ne.s32.totalorder %s2471_s5, %s1665_s11  ;;  %p1669_p3 = scmp.lt.u32.totalorder %s1665_s11, %s2471_s5 }
  0x2b   :  { %p1671_p4 = pnand %p1669_p3, %p1666_p2 }
  0x2d   :  { %1674 = shalt.err (!%p1671_p4)
}
  0x2e   :  { %s1675_s3 = scalar_lea.vmem %s77_s29, 1024  ;;  %p1680_p6 = scmp.lt.s32.totalorder %s77_s29, %s77_s29 }
  0x2f   :  { %p1676_p5 = scmp.ne.s32.totalorder %s77_s29, %s1675_s3  ;;  %p1681_p7 = scmp.lt.s32.totalorder %s1675_s3, %s1675_s3 }
  0x31   :  { %p1682_p8 = por %p1681_p7, %p1680_p6 }
  0x33   :  { %p1683_p9 = pnand %p1682_p8, %p1676_p5 }
  0x35   :  { %1686 = shalt.err (!%p1683_p9)
}
  0x36   :  { %82 = dma.hbm_to_vmem [thread:$0]  %s2471_s5, 1024, %s77_s29, [#allocation12], %s1809_s13, %s1809_s13, %s1810_s14  }
  0x37   :  { %s1687_s21 = scalar_lea.hbm %s2466_s0, 2048 }
  0x38   :  { %p1688_p10 = scmp.ne.s32.totalorder %s2466_s0, %s1687_s21  ;;  %p1691_p11 = scmp.lt.u32.totalorder %s1687_s21, %s2466_s0 }
  0x3a   :  { %p1693_p12 = pnand %p1691_p11, %p1688_p10 }
  0x3c   :  { %1696 = shalt.err (!%p1693_p12)
}
  0x3d   :  { %s1697_s25 = scalar_lea.vmem %s1894_s8, 2048  ;;  %p1702_p0 = scmp.lt.s32.totalorder %s1894_s8, %s1894_s8 }
  0x3e   :  { %p1698_p13 = scmp.ne.s32.totalorder %s1894_s8, %s1697_s25  ;;  %p1703_p1 = scmp.lt.s32.totalorder %s1697_s25, %s1697_s25 }
  0x40   :  { %p1704_p2 = por %p1703_p1, %p1702_p0 }
  0x42   :  { %p1705_p3 = pnand %p1704_p2, %p1698_p13 }
  0x44   :  { %1708 = shalt.err (!%p1705_p3)
}
  0x45   :  { %28 = dma.hbm_to_vmem [thread:$0]  %s2466_s0, 2048, %s1894_s8, [#allocation3], %s1809_s13, %s1809_s13, %s1810_s14  }
  0x46   :  { %s1813_s28 = smov [#allocation7]   ;;  %s1814_s30 = smov [#allocation10]  }
  0x47   :  { %s47_s29 = sshll.u32 %s1813_s28, 4  ;;  %s67_s9 = sshll.u32 %s1814_s30, 4  ;;  %s48_s29 = int_to_ptr.vmem [resolvable:$true] %s47_s29  ;;  %s68_s9 = int_to_ptr.vmem [resolvable:$true] %s67_s9 }
  0x48   :  { %s1709_s12 = scalar_lea.hbm %s2468_s2, 16 }
  0x49   :  { %p1710_p4 = scmp.ne.s32.totalorder %s2468_s2, %s1709_s12  ;;  %p1713_p5 = scmp.lt.u32.totalorder %s1709_s12, %s2468_s2 }
  0x4b   :  { %p1715_p6 = pnand %p1713_p5, %p1710_p4 }
  0x4d   :  { %1718 = shalt.err (!%p1715_p6)
}
  0x4e   :  { %s1719_s0 = scalar_lea.vmem %s48_s29, 16  ;;  %s1723_s13 = scalar_lea.vmem %s48_s29, 32 }
  0x4f   :  { %p1720_p7 = scmp.ne.s32.totalorder %s48_s29, %s1719_s0  ;;  %p1724_p8 = scmp.lt.s32.totalorder %s48_s29, %s48_s29 }
  0x50   :  { %p1725_p9 = scmp.lt.s32.totalorder %s1723_s13, %s1719_s0 }
  0x52   :  { %p1726_p10 = por %p1725_p9, %p1724_p8 }
  0x54   :  { %p1727_p11 = pnand %p1726_p10, %p1720_p7 }
  0x56   :  { %1730 = shalt.err (!%p1727_p11)
}
  0x57   :  { %50 = dma.hbm_to_vmem [thread:$0]  %s2468_s2, 16, %s48_s29, [#allocation6]  }
  0x58   :  { %s1731_s19 = scalar_lea.hbm %s2470_s4, 16 }
  0x59   :  { %p1732_p12 = scmp.ne.s32.totalorder %s2470_s4, %s1731_s19  ;;  %p1735_p13 = scmp.lt.u32.totalorder %s1731_s19, %s2470_s4 }
  0x5b   :  { %p1737_p0 = pnand %p1735_p13, %p1732_p12 }
  0x5d   :  { %1740 = shalt.err (!%p1737_p0)
}
  0x5e   :  { %s1741_s24 = scalar_lea.vmem %s68_s9, 16  ;;  %s1745_s1 = scalar_lea.vmem %s68_s9, 32 }
  0x5f   :  { %p1742_p1 = scmp.ne.s32.totalorder %s68_s9, %s1741_s24  ;;  %p1746_p2 = scmp.lt.s32.totalorder %s68_s9, %s68_s9 }
  0x60   :  { %p1747_p3 = scmp.lt.s32.totalorder %s1745_s1, %s1741_s24 }
  0x62   :  { %p1748_p4 = por %p1747_p3, %p1746_p2 }
  0x64   :  { %p1749_p5 = pnand %p1748_p4, %p1742_p1 }
  0x66   :  { %1752 = shalt.err (!%p1749_p5)
}
  0x67   :  { %70 = dma.hbm_to_vmem [thread:$0]  %s2470_s4, 16, %s68_s9, [#allocation9]  }
  0x68   :  { %s1815_s5 = smov [#allocation13]   ;;  %s1753_s30 = scalar_lea.hbm %s2472_s6, 16 }
  0x69   :  { %s89_s26 = sshll.u32 %s1815_s5, 4  ;;  %p1754_p6 = scmp.ne.s32.totalorder %s2472_s6, %s1753_s30  ;;  %s90_s26 = int_to_ptr.vmem [resolvable:$true] %s89_s26 }
  0x6a   :  { %p1757_p7 = scmp.lt.u32.totalorder %s1753_s30, %s2472_s6 }
  0x6c   :  { %p1759_p8 = pnand %p1757_p7, %p1754_p6 }
  0x6e   :  { %1762 = shalt.err (!%p1759_p8)
}
  0x6f   :  { %s1763_s16 = scalar_lea.vmem %s90_s26, 16  ;;  %s1767_s4 = scalar_lea.vmem %s90_s26, 32 }
  0x70   :  { %p1764_p9 = scmp.ne.s32.totalorder %s90_s26, %s1763_s16  ;;  %p1768_p10 = scmp.lt.s32.totalorder %s90_s26, %s90_s26 }
  0x71   :  { %p1769_p11 = scmp.lt.s32.totalorder %s1767_s4, %s1763_s16 }
  0x73   :  { %p1770_p12 = por %p1769_p11, %p1768_p10 }
  0x75   :  { %p1771_p13 = pnand %p1770_p12, %p1764_p9 }
  0x77   :  { %1774 = shalt.err (!%p1771_p13)
}
  0x78   :  { %92 = dma.hbm_to_vmem [thread:$0]  %s2472_s6, 16, %s90_s26, [#allocation12]  }
  0x79   :  { %1797 = dma.done.wait [#allocation3], 2048  }
  0x7a   :  { %1798 = vsyncadd [#allocation3], 4294965248 }
  0x7b   :  { %1799 = dma.done.wait [#allocation6], 1040  }
  0x7c   :  { %1800 = vsyncadd [#allocation6], 4294966256 }
  0x7d   :  { %1801 = dma.done.wait [#allocation9], 32  }
  0x7e   :  { %1802 = vsyncadd [#allocation9], 4294967264 }
  0x7f   :  { %1803 = dma.done.wait [#allocation12], 1040  }
  0x80   :  { %1804 = vsyncadd [#allocation12], 4294966256  ;;  %v1525_v0 = vld [vmem:[#allocation5] sm:$0xff]   ;;  %v1526_v1 = vld [vmem:[#allocation5 + $0x8] sm:$0xff]   ;;  %s1816_s6 = smov [#allocation14]  }
  0x81   :  { %1417 = vmatprep.subr.bf16.mxu0 %v1525_v0  ;;  %v1527_v2 = vld [vmem:[#allocation5 + $0x10] sm:$0xff]   ;;  %v1528_v3 = vld [vmem:[#allocation5 + $0x18] sm:$0xff]   ;;  %v1533_v4 = vld [vmem:[#allocation2] sm:$0xff]   ;;  %s1318_s3 = sshll.u32 %s1816_s6, 4  ;;  %s1319_s3 = int_to_ptr.vmem [resolvable:$true] %s1318_s3 }
  0x82   :  { %1418 = vmatpush3.bf16.msra.mxu0 %v1525_v0  ;;  %1433 = vmatprep.mubr.bf16.mxu0 %v1533_v4  ;;  %v1529_v5 = vld [vmem:[#allocation5 + $0x20] sm:$0xff]   ;;  %v1530_v6 = vld [vmem:[#allocation5 + $0x28] sm:$0xff]   ;;  %v1531_v7 = vld [vmem:[#allocation5 + $0x30] sm:$0xff]   ;;  %s1775_s0 = scalar_lea.vmem %s1319_s3, 4096  ;;  %p1780_p1 = scmp.lt.s32.totalorder %s1319_s3, %s1319_s3 }
  0x83   :  { %1419 = vmatprep.subr.bf16.mxu0 %v1526_v1  ;;  %v1532_v8 = vld [vmem:[#allocation5 + $0x38] sm:$0xff]   ;;  %v1534_v9 = vld [vmem:[#allocation2 + $0x8] sm:$0xff]   ;;  %v1535_v10 = vld [vmem:[#allocation2 + $0x10] sm:$0xff]   ;;  %p1776_p0 = scmp.ne.s32.totalorder %s1319_s3, %s1775_s0  ;;  %p1781_p2 = scmp.lt.s32.totalorder %s1775_s0, %s1775_s0 }
  0x84   :  { %v1536_v11 = vld [vmem:[#allocation2 + $0x18] sm:$0xff]   ;;  %v1537_v12 = vld [vmem:[#allocation2 + $0x20] sm:$0xff]   ;;  %v1538_v13 = vld [vmem:[#allocation2 + $0x28] sm:$0xff]  }
  0x85   :  { %v1539_v14 = vld [vmem:[#allocation2 + $0x30] sm:$0xff]   ;;  %v1540_v15 = vld [vmem:[#allocation2 + $0x38] sm:$0xff]   ;;  %v1541_v16 = vld [vmem:[#allocation2 + $0x40] sm:$0xff]   ;;  %p1782_p3 = por %p1781_p2, %p1780_p1 }
  0x86   :  { %1420 = vmatpush3.bf16.msra.mxu0 %v1526_v1  ;;  %v1542_v17 = vld [vmem:[#allocation2 + $0x48] sm:$0xff]   ;;  %v1543_v18 = vld [vmem:[#allocation2 + $0x50] sm:$0xff]   ;;  %v1544_v19 = vld [vmem:[#allocation2 + $0x58] sm:$0xff]  }
  0x87   :  { %1421 = vmatprep.subr.bf16.mxu0 %v1527_v2  ;;  %v1545_v20 = vld [vmem:[#allocation2 + $0x60] sm:$0xff]   ;;  %v1546_v21 = vld [vmem:[#allocation2 + $0x68] sm:$0xff]   ;;  %v1547_v22 = vld [vmem:[#allocation2 + $0x70] sm:$0xff]   ;;  %p1783_p4 = pnand %p1782_p3, %p1776_p0 }
  0x88   :  { %v1548_v23 = vld [vmem:[#allocation2 + $0x78] sm:$0xff]   ;;  %v1967_v24 = vld [vmem:[#allocation7] ss:$0 sm:$0xff]  ;;  %v1549_v54 = vld [vmem:[#allocation11] sm:$0xff]  }
  0x89   :  { %1465 = vmatprep.subr.bf16.mxu1 %v1549_v54  ;;  %v1550_v58 = vld [vmem:[#allocation11 + $0x8] sm:$0xff]  }
  0x8a   :  { %1422 = vmatpush3.bf16.msra.mxu0 %v1527_v2  ;;  %1466 = vmatpush3.bf16.msra.mxu1 %v1549_v54  ;;  %v1551_v2 = vld [vmem:[#allocation11 + $0x10] sm:$0xff]  }
  0x8b   :  { %1423 = vmatprep.subr.bf16.mxu0 %v1528_v3  ;;  %1467 = vmatprep.subr.bf16.mxu1 %v1550_v58 }
  0x8e   :  { %1424 = vmatpush3.bf16.msra.mxu0 %v1528_v3  ;;  %1468 = vmatpush3.bf16.msra.mxu1 %v1550_v58 }
  0x8f   :  { %1425 = vmatprep.subr.bf16.mxu0 %v1529_v5  ;;  %1469 = vmatprep.subr.bf16.mxu1 %v1551_v2 }
  0x92   :  { %1426 = vmatpush3.bf16.msra.mxu0 %v1529_v5  ;;  %1470 = vmatpush3.bf16.msra.mxu1 %v1551_v2 }
  0x93   :  { %1427 = vmatprep.subr.bf16.mxu0 %v1530_v6 }
  0x96   :  { %1428 = vmatpush3.bf16.msra.mxu0 %v1530_v6 }
  0x97   :  { %1429 = vmatprep.subr.bf16.mxu0 %v1531_v7 }
  0x9a   :  { %1430 = vmatpush3.bf16.msra.mxu0 %v1531_v7 }
  0x9b   :  { %1431 = vmatprep.subr.bf16.mxu0 %v1532_v8 }
  0x9e   :  { %1432 = vmatpush3.bf16.msra.mxu0 %v1532_v8  ;;  %v1552_v8 = vld [vmem:[#allocation11 + $0x18] sm:$0xff]  }
  0x9f   :  { %1471 = vmatprep.subr.bf16.mxu1 %v1552_v8 }
  0xa0   :  { %1472 = vmatpush3.bf16.msra.mxu1 %v1552_v8 }
  0xa1   :  { %1434 = vmatmul.mubr.bf16.vlgmr.msra.gmra.mrb[0].mxu0 %v1534_v9 }
  0xa2   :  { %1437 = vmatprep.mubr.bf16.mxu0 %v1535_v10 }
  0xa9   :  { %1438 = vmatmul.mubr.bf16.gmra.mrb[4].mxu0 %v1536_v11 }
  0xaa   :  { %1441 = vmatprep.mubr.bf16.mxu0 %v1537_v12 }
  0xb1   :  { %1442 = vmatmul.mubr.bf16.gmra.mrb[8].mxu0 %v1538_v13 }
  0xb2   :  { %1445 = vmatprep.mubr.bf16.mxu0 %v1539_v14 }
  0xb9   :  { %1446 = vmatmul.mubr.bf16.gmra.mrb[12].mxu0 %v1540_v15 }
  0xba   :  { %1449 = vmatprep.mubr.bf16.mxu0 %v1541_v16  ;;  %v1553_v16 = vld [vmem:[#allocation11 + $0x20] sm:$0xff]  }
  0xbb   :  { %1473 = vmatprep.subr.bf16.mxu1 %v1553_v16 }
  0xbc   :  { %1474 = vmatpush3.bf16.msra.mxu1 %v1553_v16 }
  0xc1   :  { %1450 = vmatmul.mubr.bf16.gmra.mrb[16].mxu0 %v1542_v17 }
  0xc2   :  { %1453 = vmatprep.mubr.bf16.mxu0 %v1543_v18 }
  0xc9   :  { %1454 = vmatmul.mubr.bf16.gmra.mrb[20].mxu0 %v1544_v19 }
  0xca   :  { %1457 = vmatprep.mubr.bf16.mxu0 %v1545_v20 }
  0xd1   :  { %1458 = vmatmul.mubr.bf16.gmra.mrb[24].mxu0 %v1546_v21 }
  0xd2   :  { %1461 = vmatprep.mubr.bf16.mxu0 %v1547_v22  ;;  %v1554_v22 = vld [vmem:[#allocation11 + $0x28] sm:$0xff]  }
  0xd3   :  { %1475 = vmatprep.subr.bf16.mxu1 %v1554_v22 }
  0xd4   :  { %1476 = vmatpush3.bf16.msra.mxu1 %v1554_v22 }
  0xd9   :  { %1462 = vmatmul.mubr.bf16.gmra.mrb[28].mxu0 %v1548_v23 }
 0x174   :  { %v1435_v25 = vpop.f32.mrb[0].mxu0 }
 0x175   :  { %v1970_v26 = vadd.f32 %v1435_v25, %v1967_v24  ;;  %v348_v27 = vpop.f32.mrb[1].mxu0 }
 0x176   :  { %v1973_v28 = vadd.f32 %v1967_v24, %v348_v27  ;;  %v1436_v29 = vpop.f32.mrb[2].mxu0 }
 0x177   :  { %479 = vadd.xlane.f32.xlu1 %v1970_v26  ;;  %v351_v30 = vpop.f32.mrb[3].mxu0  ;;  %v1978_v31 = vadd.f32 %v1436_v29, %v1967_v24  ;;  %v541_v32 = vmul.f32 %v1970_v26, %v1970_v26 }
 0x178   :  { %475 = vadd.xlane.f32.xlu0 %v1973_v28  ;;  %v1984_v34 = vadd.f32 %v1967_v24, %v351_v30  ;;  %v539_v40 = vmul.f32 %v1973_v28, %v1973_v28 }
 0x179   :  { %v542_v35 = vmul.f32 %v1978_v31, %v1978_v31 }
 0x17a   :  { %v540_v39 = vmul.f32 %v1984_v34, %v1984_v34 }
 0x17b   :  { %481 = vadd.xlane.f32.xlu1 %v1978_v31 }
 0x17c   :  { %575 = vadd.xlane.f32.xlu0 %v541_v32  ;;  %v1439_v33 = vpop.f32.mrb[4].mxu0 }
 0x17d   :  { %v364_v36 = vpop.f32.mrb[5].mxu0  ;;  %v1997_v44 = vadd.f32 %v1439_v33, %v1967_v24 }
 0x17e   :  { %v1440_v37 = vpop.f32.mrb[6].mxu0  ;;  %v2005_v48 = vadd.f32 %v1967_v24, %v364_v36 }
 0x17f   :  { %577 = vadd.xlane.f32.xlu1 %v542_v35  ;;  %v367_v38 = vpop.f32.mrb[7].mxu0  ;;  %v1994_v41 = vadd.f32 %v1440_v37, %v1967_v24  ;;  %v545_v52 = vmul.f32 %v1997_v44, %v1997_v44  ;;  %v1555_v35 = vld [vmem:[#allocation11 + $0x30] sm:$0xff]  }
 0x180   :  { %477 = vadd.xlane.f32.xlu0 %v1984_v34  ;;  %v2002_v47 = vadd.f32 %v1967_v24, %v367_v38  ;;  %v543_v57 = vmul.f32 %v2005_v48, %v2005_v48  ;;  %1477 = vmatprep.subr.bf16.mxu1 %v1555_v35 }
 0x181   :  { %v546_v50 = vmul.f32 %v1994_v41, %v1994_v41  ;;  %1478 = vmatpush3.bf16.msra.mxu1 %v1555_v35 }
 0x182   :  { %v544_v56 = vmul.f32 %v2002_v47, %v2002_v47 }
 0x183   :  { %573 = vadd.xlane.f32.xlu1 %v540_v39 }
 0x184   :  { %571 = vadd.xlane.f32.xlu0 %v539_v40  ;;  %v1443_v42 = vpop.f32.mrb[8].mxu0 }
 0x185   :  { %v380_v43 = vpop.f32.mrb[9].mxu0  ;;  %v2030_v63 = vadd.f32 %v1443_v42, %v1967_v24  ;;  %v1556_v42 = vld [vmem:[#allocation11 + $0x38] sm:$0xff]  }
 0x186   :  { %v1444_v45 = vpop.f32.mrb[10].mxu0  ;;  %v2047_v7 = vadd.f32 %v1967_v24, %v380_v43  ;;  %1479 = vmatprep.subr.bf16.mxu1 %v1556_v42 }
 0x187   :  { %489 = vadd.xlane.f32.xlu1 %v1994_v41  ;;  %v383_v46 = vpop.f32.mrb[11].mxu0  ;;  %v2024_v59 = vadd.f32 %v1444_v45, %v1967_v24  ;;  %v549_v13 = vmul.f32 %v2030_v63, %v2030_v63  ;;  %1480 = vmatpush3.bf16.msra.mxu1 %v1556_v42 }
 0x188   :  { %487 = vadd.xlane.f32.xlu0 %v1997_v44  ;;  %v2044_v6 = vadd.f32 %v1967_v24, %v383_v46  ;;  %v547_v21 = vmul.f32 %v2047_v7, %v2047_v7 }
 0x189   :  { %v550_v10 = vmul.f32 %v2024_v59, %v2024_v59 }
 0x18a   :  { %v548_v20 = vmul.f32 %v2044_v6, %v2044_v6 }
 0x18b   :  { %485 = vadd.xlane.f32.xlu1 %v2002_v47 }
 0x18c   :  { %483 = vadd.xlane.f32.xlu0 %v2005_v48  ;;  %v2009_v49 = vpop.f32.mrb[12].mxu0 }
 0x18d   :  { %v2013_v51 = vpop.f32.mrb[13].mxu0  ;;  %v2079_v30 = vadd.f32 %v2009_v49, %v1967_v24 }
 0x18e   :  { %v1448_v53 = vpop.f32.mrb[14].mxu0  ;;  %v2098_v40 = vadd.f32 %v1967_v24, %v2013_v51 }
 0x18f   :  { %585 = vadd.xlane.f32.xlu1 %v546_v50  ;;  %v2017_v55 = vpop.f32.mrb[15].mxu0  ;;  %v2072_v23 = vadd.f32 %v1448_v53, %v1967_v24  ;;  %v553_v50 = vmul.f32 %v2079_v30, %v2079_v30 }
 0x190   :  { %583 = vadd.xlane.f32.xlu0 %v545_v52  ;;  %v2094_v39 = vadd.f32 %v1967_v24, %v2017_v55 }
 0x191   :  { %v554_v45 = vmul.f32 %v2072_v23, %v2072_v23 }
 0x193   :  { %581 = vadd.xlane.f32.xlu1 %v544_v56  ;;  %v552_v56 = vmul.f32 %v2094_v39, %v2094_v39 }
 0x194   :  { %579 = vadd.xlane.f32.xlu0 %v543_v57  ;;  %v1451_v60 = vpop.f32.mrb[16].mxu0  ;;  %v551_v57 = vmul.f32 %v2098_v40, %v2098_v40 }
 0x195   :  { %v2027_v61 = vadd.f32 %v1451_v60, %v1967_v24  ;;  %v412_v62 = vpop.f32.mrb[17].mxu0 }
 0x196   :  { %v2033_v0 = vadd.f32 %v1967_v24, %v412_v62  ;;  %v1452_v1 = vpop.f32.mrb[18].mxu0 }
 0x197   :  { %497 = vadd.xlane.f32.xlu1 %v2024_v59  ;;  %v2037_v3 = vadd.f32 %v1452_v1, %v1967_v24  ;;  %v415_v4 = vpop.f32.mrb[19].mxu0  ;;  %v557_v58 = vmul.f32 %v2027_v61, %v2027_v61 }
 0x198   :  { %495 = vadd.xlane.f32.xlu0 %v2030_v63  ;;  %v2041_v5 = vadd.f32 %v1967_v24, %v415_v4  ;;  %v555_v62 = vmul.f32 %v2033_v0, %v2033_v0 }
 0x19a   :  { %v556_v60 = vmul.f32 %v2041_v5, %v2041_v5 }
 0x19b   :  { %493 = vadd.xlane.f32.xlu1 %v2044_v6 }
 0x19c   :  { %491 = vadd.xlane.f32.xlu0 %v2047_v7  ;;  %v1455_v9 = vpop.f32.mrb[20].mxu0 }
 0x19d   :  { %v2054_v11 = vadd.f32 %v1455_v9, %v1967_v24  ;;  %v428_v12 = vpop.f32.mrb[21].mxu0 }
 0x19e   :  { %v2059_v14 = vadd.f32 %v1967_v24, %v428_v12  ;;  %v1456_v15 = vpop.f32.mrb[22].mxu0 }
 0x19f   :  { %593 = vadd.xlane.f32.xlu1 %v550_v10  ;;  %v2062_v17 = vadd.f32 %v1456_v15, %v1967_v24  ;;  %v431_v18 = vpop.f32.mrb[23].mxu0  ;;  %v561_v2 = vmul.f32 %v2054_v11, %v2054_v11 }
 0x1a0   :  { %591 = vadd.xlane.f32.xlu0 %v549_v13  ;;  %v2065_v19 = vadd.f32 %v1967_v24, %v431_v18  ;;  %v559_v8 = vmul.f32 %v2059_v14, %v2059_v14 }
 0x1a1   :  { %v562_v1 = vmul.f32 %v2062_v17, %v2062_v17 }
 0x1a2   :  { %v560_v4 = vmul.f32 %v2065_v19, %v2065_v19 }
 0x1a3   :  { %589 = vadd.xlane.f32.xlu1 %v548_v20 }
 0x1a4   :  { %587 = vadd.xlane.f32.xlu0 %v547_v21  ;;  %v1459_v25 = vpop.f32.mrb[24].mxu0 }
 0x1a5   :  { %v2075_v27 = vadd.f32 %v1459_v25, %v1967_v24  ;;  %v444_v29 = vpop.f32.mrb[25].mxu0 }
 0x1a6   :  { %v2082_v32 = vadd.f32 %v1967_v24, %v444_v29  ;;  %v1460_v33 = vpop.f32.mrb[26].mxu0 }
 0x1a7   :  { %505 = vadd.xlane.f32.xlu1 %v2072_v23  ;;  %v2086_v36 = vadd.f32 %v1460_v33, %v1967_v24  ;;  %v447_v37 = vpop.f32.mrb[27].mxu0  ;;  %v565_v10 = vmul.f32 %v2075_v27, %v2075_v27 }
 0x1a8   :  { %503 = vadd.xlane.f32.xlu0 %v2079_v30  ;;  %v2090_v38 = vadd.f32 %v1967_v24, %v447_v37  ;;  %v563_v13 = vmul.f32 %v2082_v32, %v2082_v32 }
 0x1a9   :  { %v566_v9 = vmul.f32 %v2086_v36, %v2086_v36 }
 0x1aa   :  { %v564_v12 = vmul.f32 %v2090_v38, %v2090_v38 }
 0x1ab   :  { %501 = vadd.xlane.f32.xlu1 %v2094_v39 }
 0x1ac   :  { %499 = vadd.xlane.f32.xlu0 %v2098_v40  ;;  %v1463_v43 = vpop.f32.mrb[28].mxu0 }
 0x1ad   :  { %v2105_v46 = vadd.f32 %v1463_v43, %v1967_v24  ;;  %v460_v49 = vpop.f32.mrb[29].mxu0 }
 0x1ae   :  { %v2110_v51 = vadd.f32 %v1967_v24, %v460_v49  ;;  %v1464_v52 = vpop.f32.mrb[30].mxu0 }
 0x1af   :  { %601 = vadd.xlane.f32.xlu1 %v554_v45  ;;  %v2113_v53 = vadd.f32 %v1464_v52, %v1967_v24  ;;  %v463_v54 = vpop.f32.mrb[31].mxu0  ;;  %v569_v20 = vmul.f32 %v2105_v46, %v2105_v46 }
 0x1b0   :  { %599 = vadd.xlane.f32.xlu0 %v553_v50  ;;  %v2116_v55 = vadd.f32 %v1967_v24, %v463_v54  ;;  %v558_v24 = vmul.f32 %v2037_v3, %v2037_v3  ;;  %v567_v16 = vmul.f32 %v2110_v51, %v2110_v51 }
 0x1b1   :  { %v570_v18 = vmul.f32 %v2113_v53, %v2113_v53 }
 0x1b2   :  { %v568_v15 = vmul.f32 %v2116_v55, %v2116_v55 }
 0x1b3   :  { %597 = vadd.xlane.f32.xlu1 %v552_v56 }
 0x1b4   :  { %595 = vadd.xlane.f32.xlu0 %v551_v57 }
 0x1b7   :  { %513 = vadd.xlane.f32.xlu1 %v2037_v3 }
 0x1b8   :  { %511 = vadd.xlane.f32.xlu0 %v2027_v61 }
 0x1bb   :  { %509 = vadd.xlane.f32.xlu1 %v2041_v5 }
 0x1bc   :  { %507 = vadd.xlane.f32.xlu0 %v2033_v0 }
 0x1bf   :  { %609 = vadd.xlane.f32.xlu1 %v558_v24 }
 0x1c0   :  { %607 = vadd.xlane.f32.xlu0 %v557_v58 }
 0x1c3   :  { %605 = vadd.xlane.f32.xlu1 %v556_v60 }
 0x1c4   :  { %603 = vadd.xlane.f32.xlu0 %v555_v62 }
 0x1c7   :  { %521 = vadd.xlane.f32.xlu1 %v2062_v17 }
 0x1c8   :  { %519 = vadd.xlane.f32.xlu0 %v2054_v11 }
 0x1cb   :  { %517 = vadd.xlane.f32.xlu1 %v2065_v19 }
 0x1cc   :  { %515 = vadd.xlane.f32.xlu0 %v2059_v14 }
 0x1cf   :  { %617 = vadd.xlane.f32.xlu1 %v562_v1 }
 0x1d0   :  { %615 = vadd.xlane.f32.xlu0 %v561_v2 }
 0x1d3   :  { %613 = vadd.xlane.f32.xlu1 %v560_v4 }
 0x1d4   :  { %611 = vadd.xlane.f32.xlu0 %v559_v8 }
 0x1d7   :  { %529 = vadd.xlane.f32.xlu1 %v2086_v36 }
 0x1d8   :  { %527 = vadd.xlane.f32.xlu0 %v2075_v27 }
 0x1db   :  { %525 = vadd.xlane.f32.xlu1 %v2090_v38 }
 0x1dc   :  { %523 = vadd.xlane.f32.xlu0 %v2082_v32 }
 0x1df   :  { %625 = vadd.xlane.f32.xlu1 %v566_v9 }
 0x1e0   :  { %623 = vadd.xlane.f32.xlu0 %v565_v10 }
 0x1e3   :  { %621 = vadd.xlane.f32.xlu1 %v564_v12 }
 0x1e4   :  { %619 = vadd.xlane.f32.xlu0 %v563_v13 }
 0x1e7   :  { %537 = vadd.xlane.f32.xlu1 %v2113_v53 }
 0x1e8   :  { %535 = vadd.xlane.f32.xlu0 %v2105_v46 }
 0x1eb   :  { %533 = vadd.xlane.f32.xlu1 %v2116_v55 }
 0x1ec   :  { %531 = vadd.xlane.f32.xlu0 %v2110_v51 }
 0x1ef   :  { %629 = vadd.xlane.f32.xlu1 %v568_v15 }
 0x1f0   :  { %627 = vadd.xlane.f32.xlu0 %v567_v16 }
 0x1f3   :  { %633 = vadd.xlane.f32.xlu1 %v570_v18 }
 0x1f4   :  { %631 = vadd.xlane.f32.xlu0 %v569_v20 }
 0x204   :  { %v480_v21 = vpop.xlane.xlu1 %479 }
 0x205   :  { %v476_v22 = vpop.xlane.xlu0 %475  ;;  %v637_v25 = vmul.f32 0.0078125, %v480_v21 }
 0x206   :  { %v2170_v54 = vmul.f32 0.0078125, %v476_v22 }
 0x207   :  { %v701_v37 = vmul.f32 %v637_v25, %v637_v25 }
 0x208   :  { %v482_v29 = vpop.xlane.xlu1 %481  ;;  %v699_v8 = vmul.f32 %v2170_v54, %v2170_v54 }
 0x209   :  { %v638_v33 = vmul.f32 0.0078125, %v482_v29  ;;  %v576_v35 = vpop.xlane.xlu0 %575 }
 0x20a   :  { %v669_v42 = vmul.f32 0.0078125, %v576_v35 }
 0x20b   :  { %v702_v49 = vmul.f32 %v638_v33, %v638_v33 }
 0x20c   :  { %v733_v43 = vsub.f32 %v669_v42, %v701_v37  ;;  %v578_v45 = vpop.xlane.xlu1 %577 }
 0x20d   :  { %v670_v50 = vmul.f32 0.0078125, %v578_v45  ;;  %v478_v52 = vpop.xlane.xlu0 %477 }
 0x20e   :  { %v765_v56 = vmax.f32 %v733_v43, 0.0  ;;  %v2172_v57 = vmul.f32 0.0078125, %v478_v52 }
 0x20f   :  { %v734_v24 = vsub.f32 %v670_v50, %v702_v49  ;;  %v797_v49 = vsub.f32 %v1970_v26, %v637_v25 }
 0x210   :  { %v829_v58 = vadd.f32 1e-05, %v765_v56  ;;  %v700_v60 = vmul.f32 %v2172_v57, %v2172_v57  ;;  %v574_v62 = vpop.xlane.xlu1 %573 }
 0x211   :  { %v766_v1 = vmax.f32 %v734_v24, 0.0  ;;  %v668_v2 = vmul.f32 0.0078125, %v574_v62  ;;  %v572_v4 = vpop.xlane.xlu0 %571 }
 0x212   :  { %v667_v9 = vmul.f32 0.0078125, %v572_v4  ;;  %1557 = vrsqrt.f32 %v829_v58  ;;  %v798_v58 = vsub.f32 %v1978_v31, %v638_v33 }
 0x213   :  { %v830_v10 = vadd.f32 1e-05, %v766_v1  ;;  %v732_v12 = vsub.f32 %v668_v2, %v700_v60 }
 0x214   :  { %v731_v13 = vsub.f32 %v667_v9, %v699_v8  ;;  %v490_v15 = vpop.xlane.xlu1 %489 }
 0x215   :  { %1559 = vrsqrt.f32 %v830_v10  ;;  %v764_v16 = vmax.f32 %v732_v12, 0.0  ;;  %v488_v18 = vpop.xlane.xlu0 %487  ;;  %v2178_v35 = vmul.f32 0.0078125, %v490_v15  ;;  %v796_v10 = vsub.f32 %v1984_v34, %v2172_v57  ;;  %v2196_v15 = vld [vmem:[#allocation8] ss:$0 sm:$0xff] }
 0x216   :  { %v763_v20 = vmax.f32 %v731_v13, 0.0  ;;  %v2180_v42 = vmul.f32 0.0078125, %v488_v18 }
 0x217   :  { %v828_v21 = vadd.f32 1e-05, %v764_v16  ;;  %v706_v50 = vmul.f32 %v2178_v35, %v2178_v35 }
 0x218   :  { %v827_v22 = vadd.f32 1e-05, %v763_v20  ;;  %v486_v29 = vpop.xlane.xlu1 %485  ;;  %v705_v60 = vmul.f32 %v2180_v42, %v2180_v42 }
 0x219   :  { %1561 = vrsqrt.f32 %v828_v21  ;;  %v484_v37 = vpop.xlane.xlu0 %483  ;;  %v2185_v52 = vmul.f32 0.0078125, %v486_v29  ;;  %v795_v29 = vsub.f32 %v1973_v28, %v2170_v54 }
 0x21a   :  { %1563 = vrsqrt.f32 %v827_v22  ;;  %v2190_v62 = vmul.f32 0.0078125, %v484_v37 }
 0x21b   :  { %v704_v12 = vmul.f32 %v2185_v52, %v2185_v52 }
 0x21c   :  { %v586_v43 = vpop.xlane.xlu1 %585  ;;  %v1558_v45 = vpop.eup %1557  ;;  %v703_v16 = vmul.f32 %v2190_v62, %v2190_v62 }
 0x21d   :  { %v674_v56 = vmul.f32 0.0078125, %v586_v43  ;;  %v584_v24 = vpop.xlane.xlu0 %583  ;;  %v893_v26 = vmul.f32 %v1558_v45, %v797_v49 }
 0x21e   :  { %v673_v1 = vmul.f32 0.0078125, %v584_v24 }
 0x21f   :  { %v1560_v2 = vpop.eup %1559  ;;  %v738_v4 = vsub.f32 %v674_v56, %v706_v50  ;;  %v932_v56 = vmul.f32 %v2196_v15, %v893_v26 }
 0x220   :  { %v737_v8 = vsub.f32 %v673_v1, %v705_v60  ;;  %v582_v9 = vpop.xlane.xlu1 %581  ;;  %v894_v25 = vmul.f32 %v1560_v2, %v798_v58  ;;  %v2204_v1 = vld [vmem:[#allocation10] ss:$0 sm:$0xff] }
 0x221   :  { %v770_v13 = vmax.f32 %v738_v4, 0.0  ;;  %v672_v31 = vmul.f32 0.0078125, %v582_v9  ;;  %v580_v33 = vpop.xlane.xlu0 %579  ;;  %v971_v26 = vadd.f32 %v2204_v1, %v932_v56 }
 0x222   :  { %v769_v18 = vmax.f32 %v737_v8, 0.0  ;;  %v671_v20 = vmul.f32 0.0078125, %v580_v33  ;;  %v933_v21 = vmul.f32 %v2196_v15, %v894_v25 }
 0x223   :  { %v1562_v22 = vpop.eup %1561  ;;  %v834_v34 = vadd.f32 1e-05, %v770_v13  ;;  %v736_v57 = vsub.f32 %v672_v31, %v704_v12 }
 0x224   :  { %v1564_v37 = vpop.eup %1563  ;;  %v833_v43 = vadd.f32 1e-05, %v769_v18  ;;  %v735_v45 = vsub.f32 %v671_v20, %v703_v16  ;;  %v498_v49 = vpop.xlane.xlu1 %497  ;;  %v892_v50 = vmul.f32 %v1562_v22, %v796_v10  ;;  %v972_v28 = vadd.f32 %v2204_v1, %v933_v21 }
 0x225   :  { %1565 = vrsqrt.f32 %v834_v34  ;;  %v768_v24 = vmax.f32 %v736_v57, 0.0  ;;  %v496_v58 = vpop.xlane.xlu0 %495  ;;  %v891_v60 = vmul.f32 %v1564_v37, %v795_v29  ;;  %v2211_v12 = vmul.f32 0.0078125, %v498_v49 }
 0x226   :  { %1567 = vrsqrt.f32 %v833_v43  ;;  %v767_v2 = vmax.f32 %v735_v45, 0.0  ;;  %v931_v4 = vmul.f32 %v2196_v15, %v892_v50  ;;  %v2214_v33 = vmul.f32 0.0078125, %v496_v58 }
 0x227   :  { %v832_v54 = vadd.f32 1e-05, %v768_v24  ;;  %v930_v8 = vmul.f32 %v2196_v15, %v891_v60  ;;  %v1004_v18 = vmax.f32 %v972_v28, 0.0  ;;  %v802_v21 = vsub.f32 %v1994_v41, %v2178_v35 }
 0x228   :  { %v831_v9 = vadd.f32 1e-05, %v767_v2  ;;  %v494_v25 = vpop.xlane.xlu1 %493  ;;  %v970_v10 = vadd.f32 %v2204_v1, %v931_v4  ;;  %v1003_v29 = vmax.f32 %v971_v26, 0.0  ;;  %v710_v34 = vmul.f32 %v2211_v12, %v2211_v12 }
 0x229   :  { %1569 = vrsqrt.f32 %v832_v54  ;;  %v492_v13 = vpop.xlane.xlu0 %491  ;;  %v969_v31 = vadd.f32 %v2204_v1, %v930_v8  ;;  %v2220_v57 = vmul.f32 0.0078125, %v494_v25  ;;  %v709_v49 = vmul.f32 %v2214_v33, %v2214_v33 }
 0x22a   :  { %1571 = vrsqrt.f32 %v831_v9  ;;  %v1002_v16 = vmax.f32 %v970_v10, 0.0  ;;  %v2224_v50 = vmul.f32 0.0078125, %v492_v13  ;;  %v1034_v24 = vpack.c.bf16 %v1004_v18, %v1003_v29 }
 0x22b   :  { %v1001_v20 = vmax.f32 %v969_v31, 0.0  ;;  %v801_v41 = vsub.f32 %v1997_v44, %v2180_v42  ;;  %v800_v2 = vsub.f32 %v2002_v47, %v2185_v52  ;;  %v708_v8 = vmul.f32 %v2220_v57, %v2220_v57 }
 0x22c   :  { %v594_v22 = vpop.xlane.xlu1 %593  ;;  %v707_v44 = vmul.f32 %v2224_v50, %v2224_v50  ;;  %v799_v47 = vsub.f32 %v2005_v48, %v2190_v62 }
 0x22d   :  { %v678_v37 = vmul.f32 0.0078125, %v594_v22  ;;  %v592_v43 = vpop.xlane.xlu0 %591  ;;  %v1033_v45 = vpack.c.bf16 %v1002_v16, %v1001_v20 }
 0x22e   :  { %v677_v56 = vmul.f32 0.0078125, %v592_v43 }
 0x22f   :  { %v1566_v58 = vpop.eup %1565  ;;  %v742_v35 = vsub.f32 %v678_v37, %v710_v34  ;;  %1481 = vmatprep.mubr.bf16.mxu1 %v1033_v45 }
 0x230   :  { %v1568_v60 = vpop.eup %1567  ;;  %v741_v4 = vsub.f32 %v677_v56, %v709_v49  ;;  %v590_v28 = vpop.xlane.xlu1 %589  ;;  %1482 = vmatmul.mubr.bf16.vlgmr.msra.gmra.mrb[0].mxu1 %v1034_v24  ;;  %v898_v54 = vmul.f32 %v1566_v58, %v802_v21 }
 0x231   :  { %v774_v9 = vmax.f32 %v742_v35, 0.0  ;;  %v676_v25 = vmul.f32 0.0078125, %v590_v28  ;;  %v588_v10 = vpop.xlane.xlu0 %587  ;;  %v897_v26 = vmul.f32 %v1568_v60, %v801_v41 }
 0x232   :  { %v773_v42 = vmax.f32 %v741_v4, 0.0  ;;  %v675_v13 = vmul.f32 0.0078125, %v588_v10  ;;  %v937_v31 = vmul.f32 %v2196_v15, %v898_v54 }
 0x233   :  { %v1570_v16 = vpop.eup %1569  ;;  %v838_v52 = vadd.f32 1e-05, %v774_v9  ;;  %v740_v18 = vsub.f32 %v676_v25, %v708_v8  ;;  %v936_v49 = vmul.f32 %v2196_v15, %v897_v26 }
 0x234   :  { %v1572_v20 = vpop.eup %1571  ;;  %v837_v21 = vadd.f32 1e-05, %v773_v42  ;;  %v739_v22 = vsub.f32 %v675_v13, %v707_v44  ;;  %v506_v29 = vpop.xlane.xlu1 %505  ;;  %v896_v34 = vmul.f32 %v1570_v16, %v800_v2  ;;  %v976_v58 = vadd.f32 %v2204_v1, %v937_v31 }
 0x235   :  { %1573 = vrsqrt.f32 %v838_v52  ;;  %v772_v37 = vmax.f32 %v740_v18, 0.0  ;;  %v504_v43 = vpop.xlane.xlu0 %503  ;;  %v895_v45 = vmul.f32 %v1572_v20, %v799_v47  ;;  %v2242_v2 = vmul.f32 0.0078125, %v506_v29 }
 0x236   :  { %1575 = vrsqrt.f32 %v837_v21  ;;  %v771_v56 = vmax.f32 %v739_v22, 0.0  ;;  %v935_v24 = vmul.f32 %v2196_v15, %v896_v34  ;;  %v975_v54 = vadd.f32 %v2204_v1, %v936_v49 }
 0x237   :  { %v836_v48 = vadd.f32 1e-05, %v772_v37  ;;  %v934_v62 = vmul.f32 %v2196_v15, %v895_v45  ;;  %v2246_v8 = vmul.f32 0.0078125, %v504_v43  ;;  %v1008_v25 = vmax.f32 %v976_v58, 0.0 }
 0x238   :  { %v835_v41 = vadd.f32 1e-05, %v771_v56  ;;  %v502_v35 = vpop.xlane.xlu1 %501  ;;  %v974_v60 = vadd.f32 %v2204_v1, %v935_v24  ;;  %v1007_v26 = vmax.f32 %v975_v54, 0.0  ;;  %v806_v44 = vsub.f32 %v2024_v59, %v2211_v12 }
 0x239   :  { %1577 = vrsqrt.f32 %v836_v48  ;;  %v500_v4 = vpop.xlane.xlu0 %499  ;;  %v973_v28 = vadd.f32 %v2204_v1, %v934_v62  ;;  %v714_v13 = vmul.f32 %v2242_v2, %v2242_v2  ;;  %v2252_v31 = vmul.f32 0.0078125, %v502_v35 }
 0x23a   :  { %1579 = vrsqrt.f32 %v835_v41  ;;  %v1006_v9 = vmax.f32 %v974_v60, 0.0  ;;  %v713_v18 = vmul.f32 %v2246_v8, %v2246_v8  ;;  %v2256_v20 = vmul.f32 0.0078125, %v500_v4 }
 0x23b   :  { %v1005_v10 = vmax.f32 %v973_v28, 0.0  ;;  %v1036_v22 = vpack.c.bf16 %v1008_v25, %v1007_v26  ;;  %v805_v59 = vsub.f32 %v2030_v63, %v2214_v33  ;;  %v804_v37 = vsub.f32 %v2044_v6, %v2220_v57 }
 0x23c   :  { %v602_v42 = vpop.xlane.xlu1 %601  ;;  %v712_v56 = vmul.f32 %v2252_v31, %v2252_v31  ;;  %v711_v63 = vmul.f32 %v2256_v20, %v2256_v20  ;;  %v803_v6 = vsub.f32 %v2047_v7, %v2224_v50 }
 0x23d   :  { %v682_v16 = vmul.f32 0.0078125, %v602_v42  ;;  %v600_v47 = vpop.xlane.xlu0 %599  ;;  %v1035_v52 = vpack.c.bf16 %v1006_v9, %v1005_v10 }
 0x23e   :  { %v681_v21 = vmul.f32 0.0078125, %v600_v47 }
 0x23f   :  { %v1574_v29 = vpop.eup %1573  ;;  %v746_v12 = vsub.f32 %v682_v16, %v714_v13  ;;  %1485 = vmatprep.mubr.bf16.mxu1 %v1035_v52 }
 0x240   :  { %v1576_v34 = vpop.eup %1575  ;;  %v745_v43 = vsub.f32 %v681_v21, %v713_v18  ;;  %v598_v45 = vpop.xlane.xlu1 %597  ;;  %1486 = vmatmul.mubr.bf16.gmra.mrb[4].mxu1 %v1036_v22  ;;  %v902_v49 = vmul.f32 %v1574_v29, %v806_v44 }
 0x241   :  { %v778_v24 = vmax.f32 %v746_v12, 0.0  ;;  %v680_v58 = vmul.f32 0.0078125, %v598_v45  ;;  %v596_v48 = vpop.xlane.xlu0 %595  ;;  %v901_v62 = vmul.f32 %v1576_v34, %v805_v59 }
 0x242   :  { %v777_v33 = vmax.f32 %v745_v43, 0.0  ;;  %v679_v41 = vmul.f32 0.0078125, %v596_v48  ;;  %v941_v35 = vmul.f32 %v2196_v15, %v902_v49 }
 0x243   :  { %v1578_v60 = vpop.eup %1577  ;;  %v842_v57 = vadd.f32 1e-05, %v778_v24  ;;  %v744_v4 = vsub.f32 %v680_v58, %v712_v56  ;;  %v940_v13 = vmul.f32 %v2196_v15, %v901_v62  ;;  %v810_v24 = vsub.f32 %v2072_v23, %v2242_v2 }
 0x244   :  { %v1580_v28 = vpop.eup %1579  ;;  %v841_v54 = vadd.f32 1e-05, %v777_v33  ;;  %v743_v9 = vsub.f32 %v679_v41, %v711_v63  ;;  %v514_v25 = vpop.xlane.xlu1 %513  ;;  %v900_v10 = vmul.f32 %v1578_v60, %v804_v37  ;;  %v980_v52 = vadd.f32 %v2204_v1, %v941_v35 }
 0x245   :  { %1581 = vrsqrt.f32 %v842_v57  ;;  %v776_v26 = vmax.f32 %v744_v4, 0.0  ;;  %v512_v44 = vpop.xlane.xlu0 %511  ;;  %v899_v42 = vmul.f32 %v1580_v28, %v803_v6  ;;  %v2274_v29 = vmul.f32 0.0078125, %v514_v25 }
 0x246   :  { %1583 = vrsqrt.f32 %v841_v54  ;;  %v775_v16 = vmax.f32 %v743_v9, 0.0  ;;  %v939_v47 = vmul.f32 %v2196_v15, %v900_v10  ;;  %v979_v34 = vadd.f32 %v2204_v1, %v940_v13 }
 0x247   :  { %v840_v7 = vadd.f32 1e-05, %v776_v26  ;;  %v938_v50 = vmul.f32 %v2196_v15, %v899_v42  ;;  %v2278_v37 = vmul.f32 0.0078125, %v512_v44  ;;  %v1012_v45 = vmax.f32 %v980_v52, 0.0 }
 0x248   :  { %v839_v18 = vadd.f32 1e-05, %v775_v16  ;;  %v510_v21 = vpop.xlane.xlu1 %509  ;;  %v978_v22 = vadd.f32 %v2204_v1, %v939_v47  ;;  %v1011_v56 = vmax.f32 %v979_v34, 0.0  ;;  %v718_v48 = vmul.f32 %v2274_v29, %v2274_v29 }
 0x249   :  { %1585 = vrsqrt.f32 %v840_v7  ;;  %v508_v59 = vpop.xlane.xlu0 %507  ;;  %v977_v12 = vadd.f32 %v2204_v1, %v938_v50  ;;  %v2284_v62 = vmul.f32 0.0078125, %v510_v21  ;;  %v717_v35 = vmul.f32 %v2278_v37, %v2278_v37 }
 0x24a   :  { %1587 = vrsqrt.f32 %v839_v18  ;;  %v1010_v43 = vmax.f32 %v978_v22, 0.0  ;;  %v2288_v60 = vmul.f32 0.0078125, %v508_v59  ;;  %v1038_v57 = vpack.c.bf16 %v1012_v45, %v1011_v56 }
 0x24b   :  { %v1009_v49 = vmax.f32 %v977_v12, 0.0  ;;  %v809_v23 = vsub.f32 %v2079_v30, %v2246_v8  ;;  %v808_v54 = vsub.f32 %v2094_v39, %v2252_v31  ;;  %v716_v26 = vmul.f32 %v2284_v62, %v2284_v62 }
 0x24c   :  { %v610_v58 = vpop.xlane.xlu1 %609  ;;  %v715_v30 = vmul.f32 %v2288_v60, %v2288_v60  ;;  %v807_v39 = vsub.f32 %v2098_v40, %v2256_v20 }
 0x24d   :  { %v686_v63 = vmul.f32 0.0078125, %v610_v58  ;;  %v608_v33 = vpop.xlane.xlu0 %607  ;;  %v1037_v41 = vpack.c.bf16 %v1010_v43, %v1009_v49 }
 0x24e   :  { %v685_v6 = vmul.f32 0.0078125, %v608_v33 }
 0x24f   :  { %v1582_v4 = vpop.eup %1581  ;;  %v750_v2 = vsub.f32 %v686_v63, %v718_v48  ;;  %1489 = vmatprep.mubr.bf16.mxu1 %v1037_v41 }
 0x250   :  { %v1584_v28 = vpop.eup %1583  ;;  %v749_v9 = vsub.f32 %v685_v6, %v717_v35  ;;  %v606_v25 = vpop.xlane.xlu1 %605  ;;  %1490 = vmatmul.mubr.bf16.gmra.mrb[8].mxu1 %v1038_v57  ;;  %v906_v10 = vmul.f32 %v1582_v4, %v810_v24 }
 0x251   :  { %v782_v44 = vmax.f32 %v750_v2, 0.0  ;;  %v684_v42 = vmul.f32 0.0078125, %v606_v25  ;;  %v604_v13 = vpop.xlane.xlu0 %603  ;;  %v905_v16 = vmul.f32 %v1584_v28, %v809_v23 }
 0x252   :  { %v781_v8 = vmax.f32 %v749_v9, 0.0  ;;  %v683_v47 = vmul.f32 0.0078125, %v604_v13  ;;  %v945_v52 = vmul.f32 %v2196_v15, %v906_v10  ;;  %v814_v9 = vsub.f32 %v2037_v3, %v2274_v29 }
 0x253   :  { %v1586_v7 = vpop.eup %1585  ;;  %v846_v31 = vadd.f32 1e-05, %v782_v44  ;;  %v748_v50 = vsub.f32 %v684_v42, %v716_v26  ;;  %v944_v49 = vmul.f32 %v2196_v15, %v905_v16  ;;  %v813_v3 = vsub.f32 %v2027_v61, %v2278_v37 }
 0x254   :  { %v1588_v18 = vpop.eup %1587  ;;  %v845_v21 = vadd.f32 1e-05, %v781_v8  ;;  %v747_v22 = vsub.f32 %v683_v47, %v715_v30  ;;  %v522_v59 = vpop.xlane.xlu1 %521  ;;  %v904_v12 = vmul.f32 %v1586_v7, %v808_v54  ;;  %v984_v58 = vadd.f32 %v2204_v1, %v945_v52 }
 0x255   :  { %1589 = vrsqrt.f32 %v846_v31  ;;  %v780_v34 = vmax.f32 %v748_v50, 0.0  ;;  %v520_v43 = vpop.xlane.xlu0 %519  ;;  %v903_v45 = vmul.f32 %v1588_v18, %v807_v39  ;;  %v2306_v41 = vmul.f32 0.0078125, %v522_v59 }
 0x256   :  { %1591 = vrsqrt.f32 %v845_v21  ;;  %v779_v56 = vmax.f32 %v747_v22, 0.0  ;;  %v943_v24 = vmul.f32 %v2196_v15, %v904_v12  ;;  %v983_v57 = vadd.f32 %v2204_v1, %v944_v49 }
 0x257   :  { %v844_v40 = vadd.f32 1e-05, %v780_v34  ;;  %v942_v20 = vmul.f32 %v2196_v15, %v903_v45  ;;  %v2310_v4 = vmul.f32 0.0078125, %v520_v43  ;;  %v1016_v2 = vmax.f32 %v984_v58, 0.0 }
 0x258   :  { %v843_v48 = vadd.f32 1e-05, %v779_v56  ;;  %v518_v63 = vpop.xlane.xlu1 %517  ;;  %v982_v33 = vadd.f32 %v2204_v1, %v943_v24  ;;  %v1015_v54 = vmax.f32 %v983_v57, 0.0  ;;  %v722_v10 = vmul.f32 %v2306_v41, %v2306_v41 }
 0x259   :  { %1593 = vrsqrt.f32 %v844_v40  ;;  %v516_v35 = vpop.xlane.xlu0 %515  ;;  %v981_v6 = vadd.f32 %v2204_v1, %v942_v20  ;;  %v2316_v26 = vmul.f32 0.0078125, %v518_v63  ;;  %v721_v16 = vmul.f32 %v2310_v4, %v2310_v4 }
 0x25a   :  { %1595 = vrsqrt.f32 %v843_v48  ;;  %v1014_v23 = vmax.f32 %v982_v33, 0.0  ;;  %v2320_v30 = vmul.f32 0.0078125, %v516_v35  ;;  %v1040_v47 = vpack.c.bf16 %v1016_v2, %v1015_v54 }
 0x25b   :  { %v1013_v28 = vmax.f32 %v981_v6, 0.0  ;;  %v812_v39 = vsub.f32 %v2041_v5, %v2284_v62  ;;  %v720_v21 = vmul.f32 %v2316_v26, %v2316_v26  ;;  %v811_v5 = vsub.f32 %v2033_v0, %v2288_v60 }
 0x25c   :  { %v618_v25 = vpop.xlane.xlu1 %617  ;;  %v719_v61 = vmul.f32 %v2320_v30, %v2320_v30 }
 0x25d   :  { %v690_v44 = vmul.f32 0.0078125, %v618_v25  ;;  %v616_v42 = vpop.xlane.xlu0 %615  ;;  %v1039_v13 = vpack.c.bf16 %v1014_v23, %v1013_v28 }
 0x25e   :  { %v689_v8 = vmul.f32 0.0078125, %v616_v42 }
 0x25f   :  { %v1590_v52 = vpop.eup %1589  ;;  %v754_v29 = vsub.f32 %v690_v44, %v722_v10  ;;  %1493 = vmatprep.mubr.bf16.mxu1 %v1039_v13 }
 0x260   :  { %v1592_v7 = vpop.eup %1591  ;;  %v753_v31 = vsub.f32 %v689_v8, %v721_v16  ;;  %v614_v50 = vpop.xlane.xlu1 %613  ;;  %1494 = vmatmul.mubr.bf16.gmra.mrb[12].mxu1 %v1040_v47  ;;  %v910_v18 = vmul.f32 %v1590_v52, %v814_v9 }
 0x261   :  { %v786_v22 = vmax.f32 %v754_v29, 0.0  ;;  %v688_v59 = vmul.f32 0.0078125, %v614_v50  ;;  %v612_v12 = vpop.xlane.xlu0 %611  ;;  %v909_v34 = vmul.f32 %v1592_v7, %v813_v3  ;;  %v818_v3 = vsub.f32 %v2062_v17, %v2306_v41 }
 0x262   :  { %v785_v37 = vmax.f32 %v753_v31, 0.0  ;;  %v687_v43 = vmul.f32 0.0078125, %v612_v12  ;;  %v949_v45 = vmul.f32 %v2196_v15, %v910_v18  ;;  %v817_v17 = vsub.f32 %v2054_v11, %v2310_v4 }
 0x263   :  { %v1594_v49 = vpop.eup %1593  ;;  %v850_v62 = vadd.f32 1e-05, %v786_v22  ;;  %v752_v56 = vsub.f32 %v688_v59, %v720_v21  ;;  %v948_v6 = vmul.f32 %v2196_v15, %v909_v34 }
 0x264   :  { %v1596_v24 = vpop.eup %1595  ;;  %v849_v58 = vadd.f32 1e-05, %v785_v37  ;;  %v751_v40 = vsub.f32 %v687_v43, %v719_v61  ;;  %v530_v20 = vpop.xlane.xlu1 %529  ;;  %v908_v48 = vmul.f32 %v1594_v49, %v812_v39  ;;  %v988_v2 = vadd.f32 %v2204_v1, %v949_v45 }
 0x265   :  { %1597 = vrsqrt.f32 %v850_v62  ;;  %v784_v63 = vmax.f32 %v752_v56, 0.0  ;;  %v528_v33 = vpop.xlane.xlu0 %527  ;;  %v907_v35 = vmul.f32 %v1596_v24, %v811_v5  ;;  %v2338_v25 = vmul.f32 0.0078125, %v530_v20 }
 0x266   :  { %1599 = vrsqrt.f32 %v849_v58  ;;  %v783_v57 = vmax.f32 %v751_v40, 0.0  ;;  %v947_v23 = vmul.f32 %v2196_v15, %v908_v48  ;;  %v987_v42 = vadd.f32 %v2204_v1, %v948_v6 }
 0x267   :  { %v848_v0 = vadd.f32 1e-05, %v784_v63  ;;  %v946_v60 = vmul.f32 %v2196_v15, %v907_v35  ;;  %v2342_v13 = vmul.f32 0.0078125, %v528_v33  ;;  %v1020_v8 = vmax.f32 %v988_v2, 0.0 }
 0x268   :  { %v847_v28 = vadd.f32 1e-05, %v783_v57  ;;  %v526_v54 = vpop.xlane.xlu1 %525  ;;  %v986_v9 = vadd.f32 %v2204_v1, %v947_v23  ;;  %v1019_v52 = vmax.f32 %v987_v42, 0.0  ;;  %v726_v7 = vmul.f32 %v2338_v25, %v2338_v25 }
 0x269   :  { %1601 = vrsqrt.f32 %v848_v0  ;;  %v524_v10 = vpop.xlane.xlu0 %523  ;;  %v985_v44 = vadd.f32 %v2204_v1, %v946_v60  ;;  %v2348_v39 = vmul.f32 0.0078125, %v526_v54  ;;  %v725_v21 = vmul.f32 %v2342_v13, %v2342_v13 }
 0x26a   :  { %1603 = vrsqrt.f32 %v847_v28  ;;  %v1018_v16 = vmax.f32 %v986_v9, 0.0  ;;  %v2352_v22 = vmul.f32 0.0078125, %v524_v10  ;;  %v1042_v12 = vpack.c.bf16 %v1020_v8, %v1019_v52 }
 0x26b   :  { %v1017_v47 = vmax.f32 %v985_v44, 0.0  ;;  %v816_v37 = vsub.f32 %v2065_v19, %v2316_v26  ;;  %v724_v5 = vmul.f32 %v2348_v39, %v2348_v39  ;;  %v815_v19 = vsub.f32 %v2059_v14, %v2320_v30 }
 0x26c   :  { %v626_v29 = vpop.xlane.xlu1 %625  ;;  %v723_v11 = vmul.f32 %v2352_v22, %v2352_v22 }
 0x26d   :  { %v694_v31 = vmul.f32 0.0078125, %v626_v29  ;;  %v624_v50 = vpop.xlane.xlu0 %623  ;;  %v1041_v18 = vpack.c.bf16 %v1018_v16, %v1017_v47 }
 0x26e   :  { %v693_v59 = vmul.f32 0.0078125, %v624_v50 }
 0x26f   :  { %v1598_v34 = vpop.eup %1597  ;;  %v758_v41 = vsub.f32 %v694_v31, %v726_v7  ;;  %1497 = vmatprep.mubr.bf16.mxu1 %v1041_v18 }
 0x270   :  { %v1600_v61 = vpop.eup %1599  ;;  %v757_v43 = vsub.f32 %v693_v59, %v725_v21  ;;  %v622_v45 = vpop.xlane.xlu1 %621  ;;  %1498 = vmatmul.mubr.bf16.gmra.mrb[16].mxu1 %v1042_v12  ;;  %v914_v49 = vmul.f32 %v1598_v34, %v818_v3  ;;  %v822_v21 = vsub.f32 %v2086_v36, %v2338_v25  ;;  %v821_v36 = vsub.f32 %v2075_v27, %v2342_v13 }
 0x271   :  { %v790_v62 = vmax.f32 %v758_v41, 0.0  ;;  %v692_v56 = vmul.f32 0.0078125, %v622_v45  ;;  %v620_v24 = vpop.xlane.xlu0 %619  ;;  %v913_v58 = vmul.f32 %v1600_v61, %v817_v17 }
 0x272   :  { %v789_v4 = vmax.f32 %v757_v43, 0.0  ;;  %v691_v40 = vmul.f32 0.0078125, %v620_v24  ;;  %v953_v20 = vmul.f32 %v2196_v15, %v914_v49 }
 0x273   :  { %v1602_v48 = vpop.eup %1601  ;;  %v854_v26 = vadd.f32 1e-05, %v790_v62  ;;  %v756_v63 = vsub.f32 %v692_v56, %v724_v5  ;;  %v952_v28 = vmul.f32 %v2196_v15, %v913_v58  ;;  %v820_v56 = vsub.f32 %v2090_v38, %v2348_v39 }
 0x274   :  { %v1604_v33 = vpop.eup %1603  ;;  %v853_v35 = vadd.f32 1e-05, %v789_v4  ;;  %v755_v6 = vsub.f32 %v691_v40, %v723_v11  ;;  %v538_v57 = vpop.xlane.xlu1 %537  ;;  %v912_v23 = vmul.f32 %v1602_v48, %v816_v37  ;;  %v992_v10 = vadd.f32 %v2204_v1, %v953_v20 }
 0x275   :  { %1605 = vrsqrt.f32 %v854_v26  ;;  %v788_v2 = vmax.f32 %v756_v63, 0.0  ;;  %v536_v0 = vpop.xlane.xlu0 %535  ;;  %v911_v60 = vmul.f32 %v1604_v33, %v815_v19  ;;  %v991_v3 = vadd.f32 %v2204_v1, %v952_v28 }
 0x276   :  { %1607 = vrsqrt.f32 %v853_v35  ;;  %v787_v54 = vmax.f32 %v755_v6, 0.0  ;;  %v951_v9 = vmul.f32 %v2196_v15, %v912_v23  ;;  %v1024_v31 = vmax.f32 %v992_v10, 0.0 }
 0x277   :  { %v852_v14 = vadd.f32 1e-05, %v788_v2  ;;  %v950_v30 = vmul.f32 %v2196_v15, %v911_v60  ;;  %v1023_v18 = vmax.f32 %v991_v3, 0.0  ;;  %v2378_v12 = vmul.f32 0.0078125, %v538_v57 }
 0x278   :  { %v851_v44 = vadd.f32 1e-05, %v787_v54  ;;  %v534_v42 = vpop.xlane.xlu1 %533  ;;  %v990_v16 = vadd.f32 %v2204_v1, %v951_v9  ;;  %v2382_v37 = vmul.f32 0.0078125, %v536_v0  ;;  %v819_v38 = vsub.f32 %v2082_v32, %v2352_v22 }
 0x279   :  { %1609 = vrsqrt.f32 %v852_v14  ;;  %v2370_v8 = vmul.f32 0.0078125, %v534_v42  ;;  %v532_v47 = vpop.xlane.xlu0 %531  ;;  %v989_v52 = vadd.f32 %v2204_v1, %v950_v30  ;;  %v1044_v49 = vpack.c.bf16 %v1024_v31, %v1023_v18 }
 0x27a   :  { %1611 = vrsqrt.f32 %v851_v44  ;;  %v2374_v29 = vmul.f32 0.0078125, %v532_v47  ;;  %v1022_v7 = vmax.f32 %v990_v16, 0.0  ;;  %v730_v4 = vmul.f32 %v2378_v12, %v2378_v12 }
 0x27b   :  { %v1021_v50 = vmax.f32 %v989_v52, 0.0  ;;  %v728_v34 = vmul.f32 %v2370_v8, %v2370_v8  ;;  %v729_v27 = vmul.f32 %v2382_v37, %v2382_v37  ;;  %v824_v31 = vsub.f32 %v2116_v55, %v2370_v8 }
 0x27c   :  { %v630_v59 = vpop.xlane.xlu1 %629  ;;  %v727_v43 = vmul.f32 %v2374_v29, %v2374_v29 }
 0x27d   :  { %v696_v17 = vmul.f32 0.0078125, %v630_v59  ;;  %v628_v41 = vpop.xlane.xlu0 %627  ;;  %v1043_v61 = vpack.c.bf16 %v1022_v7, %v1021_v50 }
 0x27e   :  { %v695_v45 = vmul.f32 0.0078125, %v628_v41  ;;  %v826_v41 = vsub.f32 %v2113_v53, %v2378_v12 }
 0x27f   :  { %v1606_v5 = vpop.eup %1605  ;;  %v760_v25 = vsub.f32 %v696_v17, %v728_v34  ;;  %1501 = vmatprep.mubr.bf16.mxu1 %v1043_v61 }
 0x280   :  { %v1608_v62 = vpop.eup %1607  ;;  %v759_v24 = vsub.f32 %v695_v45, %v727_v43  ;;  %v634_v58 = vpop.xlane.xlu1 %633  ;;  %1502 = vmatmul.mubr.bf16.gmra.mrb[20].mxu1 %v1044_v49  ;;  %v918_v11 = vmul.f32 %v1606_v5, %v822_v21  ;;  %v823_v21 = vsub.f32 %v2110_v51, %v2374_v29  ;;  %v825_v45 = vsub.f32 %v2105_v46, %v2382_v37 }
 0x281   :  { %v792_v40 = vmax.f32 %v760_v25, 0.0  ;;  %v698_v20 = vmul.f32 0.0078125, %v634_v58  ;;  %v632_v48 = vpop.xlane.xlu0 %631  ;;  %v917_v19 = vmul.f32 %v1608_v62, %v821_v36 }
 0x282   :  { %v791_v13 = vmax.f32 %v759_v24, 0.0  ;;  %v697_v26 = vmul.f32 0.0078125, %v632_v48  ;;  %v957_v63 = vmul.f32 %v2196_v15, %v918_v11  ;;  %v2420_v11 = vld [vmem:[#allocation13] ss:$0 sm:$0xff] }
 0x283   :  { %v1610_v33 = vpop.eup %1609  ;;  %v856_v39 = vadd.f32 1e-05, %v792_v40  ;;  %v762_v35 = vsub.f32 %v698_v20, %v730_v4  ;;  %v956_v6 = vmul.f32 %v2196_v15, %v917_v19 }
 0x284   :  { %v1612_v57 = vpop.eup %1611  ;;  %v855_v23 = vadd.f32 1e-05, %v791_v13  ;;  %v761_v2 = vsub.f32 %v697_v26, %v729_v27  ;;  %v916_v0 = vmul.f32 %v1610_v33, %v820_v56  ;;  %v996_v54 = vadd.f32 %v2204_v1, %v957_v63 }
 0x285   :  { %1613 = vrsqrt.f32 %v856_v39  ;;  %v794_v60 = vmax.f32 %v762_v35, 0.0  ;;  %v915_v28 = vmul.f32 %v1612_v57, %v819_v38  ;;  %v995_v14 = vadd.f32 %v2204_v1, %v956_v6 }
 0x286   :  { %1615 = vrsqrt.f32 %v855_v23  ;;  %v793_v9 = vmax.f32 %v761_v2, 0.0  ;;  %v955_v10 = vmul.f32 %v2196_v15, %v916_v0  ;;  %v1028_v52 = vmax.f32 %v996_v54, 0.0 }
 0x287   :  { %v858_v32 = vadd.f32 1e-05, %v794_v60  ;;  %v954_v22 = vmul.f32 %v2196_v15, %v915_v28  ;;  %v1027_v47 = vmax.f32 %v995_v14, 0.0 }
 0x288   :  { %v857_v30 = vadd.f32 1e-05, %v793_v9  ;;  %v994_v44 = vadd.f32 %v2204_v1, %v955_v10 }
 0x289   :  { %1617 = vrsqrt.f32 %v858_v32  ;;  %v993_v42 = vadd.f32 %v2204_v1, %v954_v22  ;;  %v1046_v50 = vpack.c.bf16 %v1028_v52, %v1027_v47 }
 0x28a   :  { %1619 = vrsqrt.f32 %v857_v30  ;;  %v1026_v16 = vmax.f32 %v994_v44, 0.0 }
 0x28b   :  { %v1025_v3 = vmax.f32 %v993_v42, 0.0 }
 0x28d   :  { %v1045_v7 = vpack.c.bf16 %v1026_v16, %v1025_v3 }
 0x28f   :  { %v1614_v18 = vpop.eup %1613  ;;  %1505 = vmatprep.mubr.bf16.mxu1 %v1045_v7 }
 0x290   :  { %v1616_v59 = vpop.eup %1615  ;;  %1506 = vmatmul.mubr.bf16.gmra.mrb[24].mxu1 %v1046_v50  ;;  %v920_v34 = vmul.f32 %v1614_v18, %v824_v31 }
 0x291   :  { %v919_v17 = vmul.f32 %v1616_v59, %v823_v21 }
 0x292   :  { %v959_v61 = vmul.f32 %v2196_v15, %v920_v34 }
 0x293   :  { %v1618_v43 = vpop.eup %1617  ;;  %v958_v55 = vmul.f32 %v2196_v15, %v919_v17 }
 0x294   :  { %v1620_v8 = vpop.eup %1619  ;;  %v998_v49 = vadd.f32 %v2204_v1, %v959_v61  ;;  %v922_v51 = vmul.f32 %v1618_v43, %v826_v41 }
 0x295   :  { %v997_v29 = vadd.f32 %v2204_v1, %v958_v55  ;;  %v921_v5 = vmul.f32 %v1620_v8, %v825_v45 }
 0x296   :  { %v1030_v36 = vmax.f32 %v998_v49, 0.0  ;;  %v961_v25 = vmul.f32 %v2196_v15, %v922_v51 }
 0x297   :  { %v1029_v62 = vmax.f32 %v997_v29, 0.0  ;;  %v960_v53 = vmul.f32 %v2196_v15, %v921_v5 }
 0x298   :  { %v1000_v12 = vadd.f32 %v2204_v1, %v961_v25 }
 0x299   :  { %v1047_v56 = vpack.c.bf16 %v1030_v36, %v1029_v62  ;;  %v999_v46 = vadd.f32 %v2204_v1, %v960_v53 }
 0x29a   :  { %v1032_v37 = vmax.f32 %v1000_v12, 0.0 }
 0x29b   :  { %1509 = vmatprep.mubr.bf16.mxu1 %v1047_v56  ;;  %v1031_v24 = vmax.f32 %v999_v46, 0.0 }
 0x29d   :  { %v1048_v58 = vpack.c.bf16 %v1032_v37, %v1031_v24 }
 0x29f   :  { %1510 = vmatmul.mubr.bf16.gmra.mrb[28].mxu1 %v1048_v58 }
 0x303   :  { %v1483_v4 = vpop.f32.mrb[0].mxu1 }
 0x304   :  { %v1163_v40 = vadd.f32 %v1483_v4, %v2420_v11  ;;  %v1154_v20 = vpop.f32.mrb[1].mxu1 }
 0x305   :  { %v1155_v48 = vadd.f32 %v2420_v11, %v1154_v20  ;;  %v1484_v19 = vpop.f32.mrb[2].mxu1 }
 0x306   :  { %1283 = vst [vmem:[#allocation14 + $0x10] sm:$0xff] %v1163_v40  ;;  %v1166_v15 = vadd.f32 %v1484_v19, %v2420_v11  ;;  %v1157_v27 = vpop.f32.mrb[3].mxu1 }
 0x307   :  { %1281 = vst [vmem:[#allocation14] sm:$0xff] %v1155_v48  ;;  %v1158_v1 = vadd.f32 %v2420_v11, %v1157_v27 }
 0x308   :  { %1284 = vst [vmem:[#allocation14 + $0x18] sm:$0xff] %v1166_v15 }
 0x309   :  { %1282 = vst [vmem:[#allocation14 + $0x8] sm:$0xff] %v1158_v1 }
 0x313   :  { %v1487_v13 = vpop.f32.mrb[4].mxu1 }
 0x314   :  { %v1179_v26 = vadd.f32 %v1487_v13, %v2420_v11  ;;  %v1170_v63 = vpop.f32.mrb[5].mxu1 }
 0x315   :  { %v1171_v33 = vadd.f32 %v2420_v11, %v1170_v63  ;;  %v1488_v38 = vpop.f32.mrb[6].mxu1 }
 0x316   :  { %1287 = vst [vmem:[#allocation14 + $0x30] sm:$0xff] %v1179_v26  ;;  %v1182_v39 = vadd.f32 %v1488_v38, %v2420_v11  ;;  %v1173_v35 = vpop.f32.mrb[7].mxu1 }
 0x317   :  { %1285 = vst [vmem:[#allocation14 + $0x20] sm:$0xff] %v1171_v33  ;;  %v1174_v6 = vadd.f32 %v2420_v11, %v1173_v35 }
 0x318   :  { %1288 = vst [vmem:[#allocation14 + $0x38] sm:$0xff] %v1182_v39 }
 0x319   :  { %1286 = vst [vmem:[#allocation14 + $0x28] sm:$0xff] %v1174_v6 }
 0x323   :  { %v1491_v57 = vpop.f32.mrb[8].mxu1 }
 0x324   :  { %v1195_v23 = vadd.f32 %v1491_v57, %v2420_v11  ;;  %v1186_v2 = vpop.f32.mrb[9].mxu1 }
 0x325   :  { %v1187_v0 = vadd.f32 %v2420_v11, %v1186_v2  ;;  %v1492_v60 = vpop.f32.mrb[10].mxu1 }
 0x326   :  { %1291 = vst [vmem:[#allocation14 + $0x50] sm:$0xff] %v1195_v23  ;;  %v1198_v28 = vadd.f32 %v1492_v60, %v2420_v11  ;;  %v1189_v54 = vpop.f32.mrb[11].mxu1 }
 0x327   :  { %1289 = vst [vmem:[#allocation14 + $0x40] sm:$0xff] %v1187_v0  ;;  %v1190_v9 = vadd.f32 %v2420_v11, %v1189_v54 }
 0x328   :  { %1292 = vst [vmem:[#allocation14 + $0x58] sm:$0xff] %v1198_v28 }
 0x329   :  { %1290 = vst [vmem:[#allocation14 + $0x48] sm:$0xff] %v1190_v9 }
 0x333   :  { %v1495_v10 = vpop.f32.mrb[12].mxu1 }
 0x334   :  { %v1211_v14 = vadd.f32 %v1495_v10, %v2420_v11  ;;  %v1202_v32 = vpop.f32.mrb[13].mxu1 }
 0x335   :  { %v1203_v22 = vadd.f32 %v2420_v11, %v1202_v32  ;;  %v1496_v30 = vpop.f32.mrb[14].mxu1 }
 0x336   :  { %1295 = vst [vmem:[#allocation14 + $0x70] sm:$0xff] %v1211_v14  ;;  %v1214_v44 = vadd.f32 %v1496_v30, %v2420_v11  ;;  %v1205_v42 = vpop.f32.mrb[15].mxu1 }
 0x337   :  { %1293 = vst [vmem:[#allocation14 + $0x60] sm:$0xff] %v1203_v22  ;;  %v1206_v16 = vadd.f32 %v2420_v11, %v1205_v42 }
 0x338   :  { %1296 = vst [vmem:[#allocation14 + $0x78] sm:$0xff] %v1214_v44 }
 0x339   :  { %1294 = vst [vmem:[#allocation14 + $0x68] sm:$0xff] %v1206_v16 }
 0x343   :  { %v1499_v47 = vpop.f32.mrb[16].mxu1 }
 0x344   :  { %v1227_v52 = vadd.f32 %v1499_v47, %v2420_v11  ;;  %v1218_v3 = vpop.f32.mrb[17].mxu1 }
 0x345   :  { %v1219_v7 = vadd.f32 %v2420_v11, %v1218_v3  ;;  %v1500_v31 = vpop.f32.mrb[18].mxu1 }
 0x346   :  { %1299 = vst [vmem:[#allocation14 + $0x90] sm:$0xff] %v1227_v52  ;;  %v1230_v50 = vadd.f32 %v1500_v31, %v2420_v11  ;;  %v1221_v18 = vpop.f32.mrb[19].mxu1 }
 0x347   :  { %1297 = vst [vmem:[#allocation14 + $0x80] sm:$0xff] %v1219_v7  ;;  %v1222_v21 = vadd.f32 %v2420_v11, %v1221_v18 }
 0x348   :  { %1300 = vst [vmem:[#allocation14 + $0x98] sm:$0xff] %v1230_v50 }
 0x349   :  { %1298 = vst [vmem:[#allocation14 + $0x88] sm:$0xff] %v1222_v21 }
 0x353   :  { %v1503_v59 = vpop.f32.mrb[20].mxu1 }
 0x354   :  { %v1243_v34 = vadd.f32 %v1503_v59, %v2420_v11  ;;  %v1234_v17 = vpop.f32.mrb[21].mxu1 }
 0x355   :  { %v1235_v41 = vadd.f32 %v2420_v11, %v1234_v17  ;;  %v1504_v61 = vpop.f32.mrb[22].mxu1 }
 0x356   :  { %1303 = vst [vmem:[#allocation14 + $0xb0] sm:$0xff] %v1243_v34  ;;  %v1246_v43 = vadd.f32 %v1504_v61, %v2420_v11  ;;  %v1237_v45 = vpop.f32.mrb[23].mxu1 }
 0x357   :  { %1301 = vst [vmem:[#allocation14 + $0xa0] sm:$0xff] %v1235_v41  ;;  %v1238_v55 = vadd.f32 %v2420_v11, %v1237_v45 }
 0x358   :  { %1304 = vst [vmem:[#allocation14 + $0xb8] sm:$0xff] %v1246_v43 }
 0x359   :  { %1302 = vst [vmem:[#allocation14 + $0xa8] sm:$0xff] %v1238_v55 }
 0x363   :  { %v1507_v8 = vpop.f32.mrb[24].mxu1 }
 0x364   :  { %v1259_v49 = vadd.f32 %v1507_v8, %v2420_v11  ;;  %v1250_v51 = vpop.f32.mrb[25].mxu1 }
 0x365   :  { %v1251_v29 = vadd.f32 %v2420_v11, %v1250_v51  ;;  %v1508_v5 = vpop.f32.mrb[26].mxu1 }
 0x366   :  { %1307 = vst [vmem:[#allocation14 + $0xd0] sm:$0xff] %v1259_v49  ;;  %v1262_v36 = vadd.f32 %v1508_v5, %v2420_v11  ;;  %v1253_v25 = vpop.f32.mrb[27].mxu1 }
 0x367   :  { %1305 = vst [vmem:[#allocation14 + $0xc0] sm:$0xff] %v1251_v29  ;;  %v1254_v62 = vadd.f32 %v2420_v11, %v1253_v25 }
 0x368   :  { %1308 = vst [vmem:[#allocation14 + $0xd8] sm:$0xff] %v1262_v36 }
 0x369   :  { %1306 = vst [vmem:[#allocation14 + $0xc8] sm:$0xff] %v1254_v62 }
 0x372   :  { %v1511_v53 = vpop.f32.mrb[28].mxu1 }
 0x373   :  { %v1275_v12 = vadd.f32 %v1511_v53, %v2420_v11  ;;  %v1266_v56 = vpop.f32.mrb[29].mxu1 }
 0x374   :  { %v1267_v46 = vadd.f32 %v2420_v11, %v1266_v56  ;;  %v1512_v37 = vpop.f32.mrb[30].mxu1 }
 0x375   :  { %1311 = vst [vmem:[#allocation14 + $0xf0] sm:$0xff] %v1275_v12  ;;  %v1278_v24 = vadd.f32 %v1512_v37, %v2420_v11  ;;  %v1269_v58 = vpop.f32.mrb[31].mxu1 }
 0x376   :  { %1309 = vst [vmem:[#allocation14 + $0xe0] sm:$0xff] %v1267_v46  ;;  %v1270_v4 = vadd.f32 %v2420_v11, %v1269_v58 }
 0x377   :  { %1312 = vst [vmem:[#allocation14 + $0xf8] sm:$0xff] %v1278_v24 }
 0x378   :  { %1310 = vst [vmem:[#allocation14 + $0xe8] sm:$0xff] %v1270_v4 }
 0x379   :  { %1786 = shalt.err (!%p1783_p4)
}
 0x37a   :  { %s1787_s8 = scalar_lea.hbm %s2473_s7, 4096 }
 0x37b   :  { %p1788_p5 = scmp.ne.s32.totalorder %s2473_s7, %s1787_s8  ;;  %p1791_p6 = scmp.lt.u32.totalorder %s1787_s8, %s2473_s7 }
 0x37d   :  { %p1793_p7 = pnand %p1791_p6, %p1788_p5 }
 0x37f   :  { %1796 = shalt.err (!%p1793_p7)
}
 0x380   :  { %s1817_s21 = smov 128   ;;  %s1818_s22 = smov 8  }
 0x381   :  { %1324 = dma.vmem_to_hbm [thread:$0]  %s1319_s3, 4096, %s2473_s7, [#allocation4], %s1817_s21, %s1817_s21, %s1818_s22  }
 0x382   :  { %1805 = dma.done.wait [#allocation4], 4096  }
 0x383   :  { %1806 = vsyncadd [#allocation4], 4294963200 }
 0x384   :  { %1328 = vsyncpa [#allocation3], 1 }
 0x385   :  { %1329 = vsyncpa [#allocation6], 1 }
 0x386   :  { %1330 = vsyncpa [#allocation9], 1 }
 0x387   :  { %1331 = vsyncpa [#allocation12], 1 }
 0x388   :  { %1332 = vsyncpa [#allocation4], 1 }

</bundles_post_ra>
